<compile_context>
chip_gen: v5e
topology: v5e:2x2
jax: 0.10.0
libtpu: 0.0.40
codegen_flags: <defaults>
</compile_context>

<pallas_src>
import functools

import jax
import jax.numpy as jnp
from jax.experimental import pallas as pl
from jax.experimental.pallas import tpu as pltpu


# ----------------------------------------------------------------------------
# Fused kernel
#
# Packed layouts (host-side packing, zeros elsewhere):
#   hidden/cell state h, c : (B, 2H)    lanes [0:H] = fwd, [H:2H] = bwd
#   gate vector       g    : (B, 8H)    blocks [i_f,i_b, f_f,f_b, g_f,g_b, o_f,o_b]
#   W_hh (per layer)       : (2H, 8H)   block-diagonal over directions, bf16
#   W_x  (per layer)       : (K, 16H)   [fwd-gate cols | bwd-gate cols], bf16
#   sequence scratch       : (T*B, 2H)  rows are time-major (row = t*B + b)
# ----------------------------------------------------------------------------
def _fused_kernel(*refs, num_layers, T, B, H, E, nh):
    H2 = 2 * H                    # == E
    G = 8 * H

    x_ref = refs[0]
    pos = 1
    layer_refs = []
    for _ in range(num_layers):
        layer_refs.append(refs[pos:pos + 3])      # wx (K,2G) bf16, bias (1,2G) f32, whh (2H,G) bf16
        pos += 3
    (wq, wkv, bq, bkv, sel, selt, wout, bout,
     gamma, beta, w1, b1, w2, b2) = refs[pos:pos + 14]
    pos += 14
    out_ref = refs[pos]
    gx_scr, seq_scr = refs[pos + 1], refs[pos + 2]

    # ------------------------------ LSTM stack ------------------------------
    cur = x_ref[...]                                          # (T*B, K) f32
    for layer in range(num_layers):
        wx, bias, whh = layer_refs[layer]

        # Hoisted fused input projection for BOTH directions: (T*B, 2G), bf16 MXU.
        gx_both = jnp.dot(cur.astype(jnp.bfloat16), wx[...],
                          preferred_element_type=jnp.float32) + bias[...]

        # Pre-combine direction gate inputs (off the serial chain):
        #   gx[t] = fwd gates from x[t] + bwd gates from x[T-1-t]
        for t in range(T):
            gx_scr[t * B:(t + 1) * B, :] = (
                gx_both[t * B:(t + 1) * B, 0:G]
                + gx_both[(T - 1 - t) * B:(T - t) * B, G:2 * G])

        whh_v = whh[...]                                      # (2H, G) bf16, stays resident
        h = jnp.zeros((B, H2), jnp.float32)
        c = jnp.zeros((B, H2), jnp.float32)

        # Serial recurrence: one small bf16 matmul + one load + nonlinearities per step.
        for t in range(T):
            g_all = (gx_scr[t * B:(t + 1) * B, :]
                     + jnp.dot(h.astype(jnp.bfloat16), whh_v,
                               preferred_element_type=jnp.float32))          # (B, 8H)
            i_g = jax.nn.sigmoid(g_all[:, 0:H2])
            f_g = jax.nn.sigmoid(g_all[:, H2:2 * H2])
            g_g = jnp.tanh(g_all[:, 2 * H2:3 * H2])
            o_g = jax.nn.sigmoid(g_all[:, 3 * H2:4 * H2])
            c = f_g * c + i_g * g_g
            h = o_g * jnp.tanh(c)
            # fwd half belongs to time t, bwd half to time T-1-t
            seq_scr[t * B:(t + 1) * B, 0:H] = h[:, 0:H]
            seq_scr[(T - 1 - t) * B:(T - t) * B, H:H2] = h[:, H:H2]

        cur = seq_scr[...]                                    # (T*B, 2H) next-layer input

    # -------- attention (last query only), head-batched via 0/1 selectors --------
    hd = E // nh
    scale = 1.0 / float(hd) ** 0.5
    x_last = cur[(T - 1) * B:T * B, :]                        # (B, E)

    q = (jnp.dot(x_last.astype(jnp.bfloat16), wq[...],
                 preferred_element_type=jnp.float32) + bq[...]) * scale      # (B, E)
    kv = (jnp.dot(cur.astype(jnp.bfloat16), wkv[...],
                  preferred_element_type=jnp.float32) + bkv[...])            # (T*B, 2E)
    k2 = kv[:, 0:E]
    v2 = kv[:, E:2 * E]

    # scores[t*B+b, h] = sum_{d in head h} q[b,d] * k[t,b,d]   (selector matmul, f32)
    q_rep = jnp.concatenate([q] * T, axis=0)                                  # (T*B, E)
    scores = jnp.dot(q_rep * k2, sel[...],
                     preferred_element_type=jnp.float32)                      # (T*B, nh)

    # softmax over the T key positions (rows are time-major)
    m = scores[0:B, :]
    for t in range(1, T):
        m = jnp.maximum(m, scores[t * B:(t + 1) * B, :])
    e = jnp.exp(scores - jnp.concatenate([m] * T, axis=0))                    # (T*B, nh)
    denom = e[0:B, :]
    for t in range(1, T):
        denom = denom + e[t * B:(t + 1) * B, :]
    attn = e * jnp.concatenate([1.0 / denom] * T, axis=0)                     # (T*B, nh)

    # broadcast per-head weights back to E lanes, reduce over keys
    attn_e = jnp.dot(attn, selt[...], preferred_element_type=jnp.float32)     # (T*B, E)
    wv = attn_e * v2
    ctx = wv[0:B, :]
    for t in range(1, T):
        ctx = ctx + wv[t * B:(t + 1) * B, :]                                  # (B, E)

    attn_out = jnp.dot(ctx.astype(jnp.bfloat16), wout[...],
                       preferred_element_type=jnp.float32) + bout[...]

    # LayerNorm (PyTorch default eps=1e-5, biased variance) -- f32 math
    mu = jnp.mean(attn_out, axis=-1, keepdims=True)
    var = jnp.mean((attn_out - mu) ** 2, axis=-1, keepdims=True)
    xn = (attn_out - mu) * jax.lax.rsqrt(var + 1e-5)
    xn = xn * gamma[...] + beta[...]

    h1 = jnp.maximum(
        jnp.dot(xn.astype(jnp.bfloat16), w1[...],
                preferred_element_type=jnp.float32) + b1[...], 0.0)
    out_ref[...] = jnp.dot(h1.astype(jnp.bfloat16), w2[...],
                           preferred_element_type=jnp.float32) + b2[...]


# ----------------------------------------------------------------------------
# Host-side weight packing into the compact fused layout
# ----------------------------------------------------------------------------
def pack_params(params, num_heads=4):
    H = params["lstm_layers"][0]["w_hh_f"].shape[1]
    E = 2 * H
    G = 8 * H
    assert E % num_heads == 0
    hd = E // num_heads

    def bf16(a):
        return jnp.asarray(a, jnp.bfloat16)

    layers = []
    for lyr in params["lstm_layers"]:
        K = lyr["w_ih_f"].shape[1]
        wx = jnp.zeros((K, 2 * G), jnp.float32)
        bias = jnp.zeros((1, 2 * G), jnp.float32)
        whh = jnp.zeros((2 * H, G), jnp.float32)
        for d, sfx in enumerate(("f", "b")):                  # d=0 fwd, d=1 bwd
            w_ih = jnp.asarray(lyr[f"w_ih_{sfx}"], jnp.float32)   # (4H, K)
            w_hh = jnp.asarray(lyr[f"w_hh_{sfx}"], jnp.float32)   # (4H, H)
            b = (jnp.asarray(lyr[f"b_ih_{sfx}"], jnp.float32)
                 + jnp.asarray(lyr[f"b_hh_{sfx}"], jnp.float32))  # (4H,)
            for gi in range(4):                                # PyTorch gate order i,f,g,o
                col = gi * 2 * H + d * H                       # lane offset in the G layout
                wx = wx.at[:, d * G + col:d * G + col + H].set(
                    w_ih[gi * H:(gi + 1) * H, :].T)
                bias = bias.at[0, d * G + col:d * G + col + H].set(
                    b[gi * H:(gi + 1) * H])
                whh = whh.at[d * H:(d + 1) * H, col:col + H].set(
                    w_hh[gi * H:(gi + 1) * H, :].T)
        layers.append((bf16(wx), bias, bf16(whh)))

    win = jnp.asarray(params["in_proj_w"], jnp.float32)        # (3E, E); out = x @ W.T + b
    binp = jnp.asarray(params["in_proj_b"], jnp.float32)
    sel = jnp.repeat(jnp.eye(num_heads, dtype=jnp.float32), hd, axis=0)   # (E, nh)

    head = dict(
        wq=bf16(win[0:E].T),
        wkv=bf16(jnp.concatenate([win[E:2 * E].T, win[2 * E:3 * E].T], axis=1)),  # (E, 2E)
        bq=binp[0:E].reshape(1, E),
        bkv=jnp.concatenate([binp[E:2 * E], binp[2 * E:3 * E]]).reshape(1, 2 * E),
        sel=sel,
        selt=sel.T,
        wout=bf16(jnp.asarray(params["out_proj_w"], jnp.float32).T),
        bout=jnp.asarray(params["out_proj_b"], jnp.float32).reshape(1, E),
        gamma=jnp.asarray(params["ln_gamma"], jnp.float32).reshape(1, E),
        beta=jnp.asarray(params["ln_beta"], jnp.float32).reshape(1, E),
        w1=bf16(jnp.asarray(params["fc1_w"], jnp.float32).T),
        b1=jnp.asarray(params["fc1_b"], jnp.float32).reshape(1, -1),
        w2=bf16(jnp.asarray(params["fc2_w"], jnp.float32).T),
        b2=jnp.asarray(params["fc2_b"], jnp.float32).reshape(1, -1),
    )
    meta = dict(num_layers=len(layers), H=H, E=E, nh=num_heads,
                out_dim=params["fc2_w"].shape[0])
    return dict(layers=layers, head=head), meta


# ----------------------------------------------------------------------------
# Full model forward (single fused pallas_call)
# ----------------------------------------------------------------------------
def super_lstm_forward(x_btd, packed, *, meta):
    """x_btd: (B, T, input_dim) -> (B, output_dim)."""
    B, T, Din = x_btd.shape
    H, E, nh = meta["H"], meta["E"], meta["nh"]
    num_layers, O = meta["num_layers"], meta["out_dim"]
    G = 8 * H

    # time-major + pre-flattened so the kernel's hoisted projections are plain 2-D dots
    x_flat = jnp.transpose(x_btd, (1, 0, 2)).reshape(T * B, Din).astype(jnp.float32)

    args = [x_flat]
    for wx, bias, whh in packed["layers"]:
        args += [wx, bias, whh]
    hd_ = packed["head"]
    args += [hd_[k] for k in ("wq", "wkv", "bq", "bkv", "sel", "selt", "wout", "bout",
                              "gamma", "beta", "w1", "b1", "w2", "b2")]

    kernel = functools.partial(_fused_kernel, num_layers=num_layers,
                               T=T, B=B, H=H, E=E, nh=nh)

    # Rough roofline hint for XLA scheduling around the fused call.
    flops = 0
    for wx, _, whh in packed["layers"]:
        flops += 2 * (T * B) * wx.shape[0] * wx.shape[1]      # hoisted input projection
        flops += 2 * T * B * whh.shape[0] * whh.shape[1]      # recurrence h @ Whh
    flops += 2 * B * E * E                                     # q projection
    flops += 2 * (T * B) * E * (2 * E)                         # fused k/v projection
    flops += 2 * (T * B) * E * nh * 2                          # selector matmuls
    flops += 2 * B * E * E + 2 * B * E * H + 2 * B * H * O     # out_proj + MLP
    transcendentals = num_layers * T * B * (10 * H) + T * B * nh
    in_bytes = sum(int(a.size) * a.dtype.itemsize for a in args)
    scratch_bytes = (T * B * G + T * B * 2 * H) * 4
    bytes_accessed = in_bytes + B * O * 4

    return pl.pallas_call(
        kernel,
        out_shape=jax.ShapeDtypeStruct((B, O), jnp.float32),
        in_specs=[pl.BlockSpec(memory_space=pltpu.MemorySpace.VMEM) for _ in args],
        out_specs=pl.BlockSpec(memory_space=pltpu.MemorySpace.VMEM),
        scratch_shapes=[
            pltpu.VMEM((T * B, G), jnp.float32),        # pre-combined per-step gate inputs
            pltpu.VMEM((T * B, 2 * H), jnp.float32),    # bidirectional output sequence
        ],
        compiler_params=pltpu.CompilerParams(
            vmem_limit_bytes=int(max(4 << 20, 4 * (in_bytes + scratch_bytes)))),
        cost_estimate=pl.CostEstimate(flops=int(flops),
                                      transcendentals=int(transcendentals),
                                      bytes_accessed=int(bytes_accessed)),
    )(*args)


# ----------------------------------------------------------------------------
# Deterministic parameter construction (synthetic weights, PyTorch shapes)
# ----------------------------------------------------------------------------
def make_params(key, input_dim, hidden_dim, num_layers, output_dim):
    E = 2 * hidden_dim
    keys = iter(jax.random.split(key, 64))
    nrm = lambda shape: 0.1 * jax.random.normal(next(keys), shape, jnp.float32)

    layers = []
    for layer in range(num_layers):
        in_size = input_dim if layer == 0 else 2 * hidden_dim
        layers.append(dict(
            w_ih_f=nrm((4 * hidden_dim, in_size)),
            w_hh_f=nrm((4 * hidden_dim, hidden_dim)),
            b_ih_f=nrm((4 * hidden_dim,)),
            b_hh_f=nrm((4 * hidden_dim,)),
            w_ih_b=nrm((4 * hidden_dim, in_size)),
            w_hh_b=nrm((4 * hidden_dim, hidden_dim)),
            b_ih_b=nrm((4 * hidden_dim,)),
            b_hh_b=nrm((4 * hidden_dim,)),
        ))

    return dict(
        lstm_layers=layers,
        in_proj_w=nrm((3 * E, E)),
        in_proj_b=nrm((3 * E,)),
        out_proj_w=nrm((E, E)),
        out_proj_b=nrm((E,)),
        ln_gamma=jnp.ones((E,), jnp.float32),
        ln_beta=jnp.zeros((E,), jnp.float32),
        fc1_w=nrm((hidden_dim, E)),
        fc1_b=nrm((hidden_dim,)),
        fc2_w=nrm((output_dim, hidden_dim)),
        fc2_b=nrm((output_dim,)),
    )


if __name__ == "__main__":
    B, T = 2, 8
    input_dim, hidden_dim, num_layers, output_dim = 16, 32, 2, 8

    key = jax.random.PRNGKey(0)
    k_x, k_p = jax.random.split(key)

    params = make_params(k_p, input_dim, hidden_dim, num_layers, output_dim)
    x = jax.random.normal(k_x, (B, T, input_dim), jnp.float32)

    packed, meta = pack_params(params, num_heads=4)
    fwd = jax.jit(functools.partial(super_lstm_forward, meta=meta))
    out = fwd(x, packed)
    jax.block_until_ready(out)
    assert out.shape == (B, output_dim)
    assert bool(jnp.all(jnp.isfinite(out)))
    print("KERNEL_OK")
</pallas_src>

<mosaic_0001>
module attributes {stable_mosaic.version = 11 : i64} {
  func.func @_fused_kernel(%arg0: memref<16x16xf32, #tpu.memory_space<vmem>>, %arg1: memref<16x512xbf16, #tpu.memory_space<vmem>>, %arg2: memref<1x512xf32, #tpu.memory_space<vmem>>, %arg3: memref<64x256xbf16, #tpu.memory_space<vmem>>, %arg4: memref<64x512xbf16, #tpu.memory_space<vmem>>, %arg5: memref<1x512xf32, #tpu.memory_space<vmem>>, %arg6: memref<64x256xbf16, #tpu.memory_space<vmem>>, %arg7: memref<64x64xbf16, #tpu.memory_space<vmem>>, %arg8: memref<64x128xbf16, #tpu.memory_space<vmem>>, %arg9: memref<1x64xf32, #tpu.memory_space<vmem>>, %arg10: memref<1x128xf32, #tpu.memory_space<vmem>>, %arg11: memref<64x4xf32, #tpu.memory_space<vmem>>, %arg12: memref<4x64xf32, #tpu.memory_space<vmem>>, %arg13: memref<64x64xbf16, #tpu.memory_space<vmem>>, %arg14: memref<1x64xf32, #tpu.memory_space<vmem>>, %arg15: memref<1x64xf32, #tpu.memory_space<vmem>>, %arg16: memref<1x64xf32, #tpu.memory_space<vmem>>, %arg17: memref<64x32xbf16, #tpu.memory_space<vmem>>, %arg18: memref<1x32xf32, #tpu.memory_space<vmem>>, %arg19: memref<32x8xbf16, #tpu.memory_space<vmem>>, %arg20: memref<1x8xf32, #tpu.memory_space<vmem>>, %arg21: memref<2x8xf32, #tpu.memory_space<vmem>>, %arg22: memref<16x256xf32, #tpu.memory_space<vmem>>, %arg23: memref<16x64xf32, #tpu.memory_space<vmem>>) attributes {dimension_semantics = [], scalar_prefetch = 0 : i64, scratch_operands = 2 : i64, tpu.core_type = #tpu.core_type<tc>} {
    %c0 = arith.constant 0 : index
    %c0_0 = arith.constant 0 : index
    %0 = vector.load %arg0[%c0, %c0_0] : memref<16x16xf32, #tpu.memory_space<vmem>>, vector<16x16xf32>
    %1 = arith.truncf %0 : vector<16x16xf32> to vector<16x16xbf16>
    %c0_1 = arith.constant 0 : index
    %c0_2 = arith.constant 0 : index
    %2 = vector.load %arg1[%c0_1, %c0_2] : memref<16x512xbf16, #tpu.memory_space<vmem>>, vector<16x512xbf16>
    %cst = arith.constant dense<0.000000e+00> : vector<16x512xf32>
    %3 = tpu.matmul %1, %2, %cst {dimension_numbers = #tpu.dot_dimension_numbers<[1], [0], [0], [1], [0, 0, 1, 1], [], []>} : vector<16x16xbf16>, vector<16x512xbf16>, vector<16x512xf32> -> vector<16x512xf32>
    %c0_3 = arith.constant 0 : index
    %c0_4 = arith.constant 0 : index
    %4 = vector.load %arg2[%c0_3, %c0_4] : memref<1x512xf32, #tpu.memory_space<vmem>>, vector<1x512xf32>
    %5 = vector.broadcast %4 : vector<1x512xf32> to vector<16x512xf32>
    %6 = arith.addf %3, %5 : vector<16x512xf32>
    %7 = vector.extract_strided_slice %6 {offsets = [0, 0], sizes = [2, 256], strides = [1, 1]} : vector<16x512xf32> to vector<2x256xf32>
    %8 = vector.extract_strided_slice %6 {offsets = [14, 256], sizes = [2, 256], strides = [1, 1]} : vector<16x512xf32> to vector<2x256xf32>
    %9 = arith.addf %7, %8 : vector<2x256xf32>
    %c0_5 = arith.constant 0 : index
    %c0_6 = arith.constant 0 : index
    %10 = vector.load %arg22[%c0_5, %c0_6] : memref<16x256xf32, #tpu.memory_space<vmem>>, vector<2x256xf32>
    tpu.vector_store %arg22[%c0_5, %c0_6], %9 {strides = array<i32>} : memref<16x256xf32, #tpu.memory_space<vmem>>, vector<2x256xf32>,
    %11 = vector.extract_strided_slice %6 {offsets = [2, 0], sizes = [2, 256], strides = [1, 1]} : vector<16x512xf32> to vector<2x256xf32>
    %12 = vector.extract_strided_slice %6 {offsets = [12, 256], sizes = [2, 256], strides = [1, 1]} : vector<16x512xf32> to vector<2x256xf32>
    %13 = arith.addf %11, %12 : vector<2x256xf32>
    %c2 = arith.constant 2 : index
    %c0_7 = arith.constant 0 : index
    %14 = vector.load %arg22[%c2, %c0_7] : memref<16x256xf32, #tpu.memory_space<vmem>>, vector<2x256xf32>
    tpu.vector_store %arg22[%c2, %c0_7], %13 {strides = array<i32>} : memref<16x256xf32, #tpu.memory_space<vmem>>, vector<2x256xf32>,
    %15 = vector.extract_strided_slice %6 {offsets = [4, 0], sizes = [2, 256], strides = [1, 1]} : vector<16x512xf32> to vector<2x256xf32>
    %16 = vector.extract_strided_slice %6 {offsets = [10, 256], sizes = [2, 256], strides = [1, 1]} : vector<16x512xf32> to vector<2x256xf32>
    %17 = arith.addf %15, %16 : vector<2x256xf32>
    %c4 = arith.constant 4 : index
    %c0_8 = arith.constant 0 : index
    %18 = vector.load %arg22[%c4, %c0_8] : memref<16x256xf32, #tpu.memory_space<vmem>>, vector<2x256xf32>
    tpu.vector_store %arg22[%c4, %c0_8], %17 {strides = array<i32>} : memref<16x256xf32, #tpu.memory_space<vmem>>, vector<2x256xf32>,
    %19 = vector.extract_strided_slice %6 {offsets = [6, 0], sizes = [2, 256], strides = [1, 1]} : vector<16x512xf32> to vector<2x256xf32>
    %20 = vector.extract_strided_slice %6 {offsets = [8, 256], sizes = [2, 256], strides = [1, 1]} : vector<16x512xf32> to vector<2x256xf32>
    %21 = arith.addf %19, %20 : vector<2x256xf32>
    %c6 = arith.constant 6 : index
    %c0_9 = arith.constant 0 : index
    %22 = vector.load %arg22[%c6, %c0_9] : memref<16x256xf32, #tpu.memory_space<vmem>>, vector<2x256xf32>
    tpu.vector_store %arg22[%c6, %c0_9], %21 {strides = array<i32>} : memref<16x256xf32, #tpu.memory_space<vmem>>, vector<2x256xf32>,
    %23 = vector.extract_strided_slice %6 {offsets = [8, 0], sizes = [2, 256], strides = [1, 1]} : vector<16x512xf32> to vector<2x256xf32>
    %24 = vector.extract_strided_slice %6 {offsets = [6, 256], sizes = [2, 256], strides = [1, 1]} : vector<16x512xf32> to vector<2x256xf32>
    %25 = arith.addf %23, %24 : vector<2x256xf32>
    %c8 = arith.constant 8 : index
    %c0_10 = arith.constant 0 : index
    %26 = vector.load %arg22[%c8, %c0_10] : memref<16x256xf32, #tpu.memory_space<vmem>>, vector<2x256xf32>
    tpu.vector_store %arg22[%c8, %c0_10], %25 {strides = array<i32>} : memref<16x256xf32, #tpu.memory_space<vmem>>, vector<2x256xf32>,
    %27 = vector.extract_strided_slice %6 {offsets = [10, 0], sizes = [2, 256], strides = [1, 1]} : vector<16x512xf32> to vector<2x256xf32>
    %28 = vector.extract_strided_slice %6 {offsets = [4, 256], sizes = [2, 256], strides = [1, 1]} : vector<16x512xf32> to vector<2x256xf32>
    %29 = arith.addf %27, %28 : vector<2x256xf32>
    %c10 = arith.constant 10 : index
    %c0_11 = arith.constant 0 : index
    %30 = vector.load %arg22[%c10, %c0_11] : memref<16x256xf32, #tpu.memory_space<vmem>>, vector<2x256xf32>
    tpu.vector_store %arg22[%c10, %c0_11], %29 {strides = array<i32>} : memref<16x256xf32, #tpu.memory_space<vmem>>, vector<2x256xf32>,
    %31 = vector.extract_strided_slice %6 {offsets = [12, 0], sizes = [2, 256], strides = [1, 1]} : vector<16x512xf32> to vector<2x256xf32>
    %32 = vector.extract_strided_slice %6 {offsets = [2, 256], sizes = [2, 256], strides = [1, 1]} : vector<16x512xf32> to vector<2x256xf32>
    %33 = arith.addf %31, %32 : vector<2x256xf32>
    %c12 = arith.constant 12 : index
    %c0_12 = arith.constant 0 : index
    %34 = vector.load %arg22[%c12, %c0_12] : memref<16x256xf32, #tpu.memory_space<vmem>>, vector<2x256xf32>
    tpu.vector_store %arg22[%c12, %c0_12], %33 {strides = array<i32>} : memref<16x256xf32, #tpu.memory_space<vmem>>, vector<2x256xf32>,
    %35 = vector.extract_strided_slice %6 {offsets = [14, 0], sizes = [2, 256], strides = [1, 1]} : vector<16x512xf32> to vector<2x256xf32>
    %36 = vector.extract_strided_slice %6 {offsets = [0, 256], sizes = [2, 256], strides = [1, 1]} : vector<16x512xf32> to vector<2x256xf32>
    %37 = arith.addf %35, %36 : vector<2x256xf32>
    %c14 = arith.constant 14 : index
    %c0_13 = arith.constant 0 : index
    %38 = vector.load %arg22[%c14, %c0_13] : memref<16x256xf32, #tpu.memory_space<vmem>>, vector<2x256xf32>
    tpu.vector_store %arg22[%c14, %c0_13], %37 {strides = array<i32>} : memref<16x256xf32, #tpu.memory_space<vmem>>, vector<2x256xf32>,
    %c0_14 = arith.constant 0 : index
    %c0_15 = arith.constant 0 : index
    %39 = vector.load %arg3[%c0_14, %c0_15] : memref<64x256xbf16, #tpu.memory_space<vmem>>, vector<64x256xbf16>
    %cst_16 = arith.constant 0.000000e+00 : f32
    %40 = vector.broadcast %cst_16 : f32 to vector<2x64xf32>
    %cst_17 = arith.constant 0.000000e+00 : f32
    %41 = vector.broadcast %cst_17 : f32 to vector<2x64xf32>
    %c0_18 = arith.constant 0 : index
    %c0_19 = arith.constant 0 : index
    %42 = vector.load %arg22[%c0_18, %c0_19] : memref<16x256xf32, #tpu.memory_space<vmem>>, vector<2x256xf32>
    %43 = arith.truncf %40 : vector<2x64xf32> to vector<2x64xbf16>
    %cst_20 = arith.constant dense<0.000000e+00> : vector<2x256xf32>
    %44 = tpu.matmul %43, %39, %cst_20 {dimension_numbers = #tpu.dot_dimension_numbers<[1], [0], [0], [1], [0, 0, 1, 1], [], []>} : vector<2x64xbf16>, vector<64x256xbf16>, vector<2x256xf32> -> vector<2x256xf32>
    %45 = arith.addf %42, %44 : vector<2x256xf32>
    %46 = vector.extract_strided_slice %45 {offsets = [0, 0], sizes = [2, 64], strides = [1, 1]} : vector<2x256xf32> to vector<2x64xf32>
    %47 = arith.negf %46 : vector<2x64xf32>
    %48 = math.exp %47 : vector<2x64xf32>
    %cst_21 = arith.constant 1.000000e+00 : f32
    %49 = vector.broadcast %cst_21 : f32 to vector<2x64xf32>
    %50 = arith.addf %49, %48 : vector<2x64xf32>
    %51 = arith.divf %49, %50 : vector<2x64xf32>
    %52 = vector.extract_strided_slice %45 {offsets = [0, 64], sizes = [2, 64], strides = [1, 1]} : vector<2x256xf32> to vector<2x64xf32>
    %53 = arith.negf %52 : vector<2x64xf32>
    %54 = math.exp %53 : vector<2x64xf32>
    %cst_22 = arith.constant 1.000000e+00 : f32
    %55 = vector.broadcast %cst_22 : f32 to vector<2x64xf32>
    %56 = arith.addf %55, %54 : vector<2x64xf32>
    %57 = arith.divf %55, %56 : vector<2x64xf32>
    %58 = vector.extract_strided_slice %45 {offsets = [0, 128], sizes = [2, 64], strides = [1, 1]} : vector<2x256xf32> to vector<2x64xf32>
    %59 = math.tanh %58 : vector<2x64xf32>
    %60 = vector.extract_strided_slice %45 {offsets = [0, 192], sizes = [2, 64], strides = [1, 1]} : vector<2x256xf32> to vector<2x64xf32>
    %61 = arith.negf %60 : vector<2x64xf32>
    %62 = math.exp %61 : vector<2x64xf32>
    %cst_23 = arith.constant 1.000000e+00 : f32
    %63 = vector.broadcast %cst_23 : f32 to vector<2x64xf32>
    %64 = arith.addf %63, %62 : vector<2x64xf32>
    %65 = arith.divf %63, %64 : vector<2x64xf32>
    %66 = arith.mulf %57, %41 : vector<2x64xf32>
    %67 = arith.mulf %51, %59 : vector<2x64xf32>
    %68 = arith.addf %66, %67 : vector<2x64xf32>
    %69 = math.tanh %68 : vector<2x64xf32>
    %70 = arith.mulf %65, %69 : vector<2x64xf32>
    %71 = vector.extract_strided_slice %70 {offsets = [0, 0], sizes = [2, 32], strides = [1, 1]} : vector<2x64xf32> to vector<2x32xf32>
    %c0_24 = arith.constant 0 : index
    %c0_25 = arith.constant 0 : index
    %72 = vector.load %arg23[%c0_24, %c0_25] : memref<16x64xf32, #tpu.memory_space<vmem>>, vector<2x32xf32>
    tpu.vector_store %arg23[%c0_24, %c0_25], %71 {strides = array<i32>} : memref<16x64xf32, #tpu.memory_space<vmem>>, vector<2x32xf32>,
    %73 = vector.extract_strided_slice %70 {offsets = [0, 32], sizes = [2, 32], strides = [1, 1]} : vector<2x64xf32> to vector<2x32xf32>
    %c14_26 = arith.constant 14 : index
    %c32 = arith.constant 32 : index
    %74 = vector.load %arg23[%c14_26, %c32] : memref<16x64xf32, #tpu.memory_space<vmem>>, vector<2x32xf32>
    tpu.vector_store %arg23[%c14_26, %c32], %73 {strides = array<i32>} : memref<16x64xf32, #tpu.memory_space<vmem>>, vector<2x32xf32>,
    %c2_27 = arith.constant 2 : index
    %c0_28 = arith.constant 0 : index
    %75 = vector.load %arg22[%c2_27, %c0_28] : memref<16x256xf32, #tpu.memory_space<vmem>>, vector<2x256xf32>
    %76 = arith.truncf %70 : vector<2x64xf32> to vector<2x64xbf16>
    %cst_29 = arith.constant dense<0.000000e+00> : vector<2x256xf32>
    %77 = tpu.matmul %76, %39, %cst_29 {dimension_numbers = #tpu.dot_dimension_numbers<[1], [0], [0], [1], [0, 0, 1, 1], [], []>} : vector<2x64xbf16>, vector<64x256xbf16>, vector<2x256xf32> -> vector<2x256xf32>
    %78 = arith.addf %75, %77 : vector<2x256xf32>
    %79 = vector.extract_strided_slice %78 {offsets = [0, 0], sizes = [2, 64], strides = [1, 1]} : vector<2x256xf32> to vector<2x64xf32>
    %80 = arith.negf %79 : vector<2x64xf32>
    %81 = math.exp %80 : vector<2x64xf32>
    %cst_30 = arith.constant 1.000000e+00 : f32
    %82 = vector.broadcast %cst_30 : f32 to vector<2x64xf32>
    %83 = arith.addf %82, %81 : vector<2x64xf32>
    %84 = arith.divf %82, %83 : vector<2x64xf32>
    %85 = vector.extract_strided_slice %78 {offsets = [0, 64], sizes = [2, 64], strides = [1, 1]} : vector<2x256xf32> to vector<2x64xf32>
    %86 = arith.negf %85 : vector<2x64xf32>
    %87 = math.exp %86 : vector<2x64xf32>
    %cst_31 = arith.constant 1.000000e+00 : f32
    %88 = vector.broadcast %cst_31 : f32 to vector<2x64xf32>
    %89 = arith.addf %88, %87 : vector<2x64xf32>
    %90 = arith.divf %88, %89 : vector<2x64xf32>
    %91 = vector.extract_strided_slice %78 {offsets = [0, 128], sizes = [2, 64], strides = [1, 1]} : vector<2x256xf32> to vector<2x64xf32>
    %92 = math.tanh %91 : vector<2x64xf32>
    %93 = vector.extract_strided_slice %78 {offsets = [0, 192], sizes = [2, 64], strides = [1, 1]} : vector<2x256xf32> to vector<2x64xf32>
    %94 = arith.negf %93 : vector<2x64xf32>
    %95 = math.exp %94 : vector<2x64xf32>
    %cst_32 = arith.constant 1.000000e+00 : f32
    %96 = vector.broadcast %cst_32 : f32 to vector<2x64xf32>
    %97 = arith.addf %96, %95 : vector<2x64xf32>
    %98 = arith.divf %96, %97 : vector<2x64xf32>
    %99 = arith.mulf %90, %68 : vector<2x64xf32>
    %100 = arith.mulf %84, %92 : vector<2x64xf32>
    %101 = arith.addf %99, %100 : vector<2x64xf32>
    %102 = math.tanh %101 : vector<2x64xf32>
    %103 = arith.mulf %98, %102 : vector<2x64xf32>
    %104 = vector.extract_strided_slice %103 {offsets = [0, 0], sizes = [2, 32], strides = [1, 1]} : vector<2x64xf32> to vector<2x32xf32>
    %c2_33 = arith.constant 2 : index
    %c0_34 = arith.constant 0 : index
    %105 = vector.load %arg23[%c2_33, %c0_34] : memref<16x64xf32, #tpu.memory_space<vmem>>, vector<2x32xf32>
    tpu.vector_store %arg23[%c2_33, %c0_34], %104 {strides = array<i32>} : memref<16x64xf32, #tpu.memory_space<vmem>>, vector<2x32xf32>,
    %106 = vector.extract_strided_slice %103 {offsets = [0, 32], sizes = [2, 32], strides = [1, 1]} : vector<2x64xf32> to vector<2x32xf32>
    %c12_35 = arith.constant 12 : index
    %c32_36 = arith.constant 32 : index
    %107 = vector.load %arg23[%c12_35, %c32_36] : memref<16x64xf32, #tpu.memory_space<vmem>>, vector<2x32xf32>
    tpu.vector_store %arg23[%c12_35, %c32_36], %106 {strides = array<i32>} : memref<16x64xf32, #tpu.memory_space<vmem>>, vector<2x32xf32>,
    %c4_37 = arith.constant 4 : index
    %c0_38 = arith.constant 0 : index
    %108 = vector.load %arg22[%c4_37, %c0_38] : memref<16x256xf32, #tpu.memory_space<vmem>>, vector<2x256xf32>
    %109 = arith.truncf %103 : vector<2x64xf32> to vector<2x64xbf16>
    %cst_39 = arith.constant dense<0.000000e+00> : vector<2x256xf32>
    %110 = tpu.matmul %109, %39, %cst_39 {dimension_numbers = #tpu.dot_dimension_numbers<[1], [0], [0], [1], [0, 0, 1, 1], [], []>} : vector<2x64xbf16>, vector<64x256xbf16>, vector<2x256xf32> -> vector<2x256xf32>
    %111 = arith.addf %108, %110 : vector<2x256xf32>
    %112 = vector.extract_strided_slice %111 {offsets = [0, 0], sizes = [2, 64], strides = [1, 1]} : vector<2x256xf32> to vector<2x64xf32>
    %113 = arith.negf %112 : vector<2x64xf32>
    %114 = math.exp %113 : vector<2x64xf32>
    %cst_40 = arith.constant 1.000000e+00 : f32
    %115 = vector.broadcast %cst_40 : f32 to vector<2x64xf32>
    %116 = arith.addf %115, %114 : vector<2x64xf32>
    %117 = arith.divf %115, %116 : vector<2x64xf32>
    %118 = vector.extract_strided_slice %111 {offsets = [0, 64], sizes = [2, 64], strides = [1, 1]} : vector<2x256xf32> to vector<2x64xf32>
    %119 = arith.negf %118 : vector<2x64xf32>
    %120 = math.exp %119 : vector<2x64xf32>
    %cst_41 = arith.constant 1.000000e+00 : f32
    %121 = vector.broadcast %cst_41 : f32 to vector<2x64xf32>
    %122 = arith.addf %121, %120 : vector<2x64xf32>
    %123 = arith.divf %121, %122 : vector<2x64xf32>
    %124 = vector.extract_strided_slice %111 {offsets = [0, 128], sizes = [2, 64], strides = [1, 1]} : vector<2x256xf32> to vector<2x64xf32>
    %125 = math.tanh %124 : vector<2x64xf32>
    %126 = vector.extract_strided_slice %111 {offsets = [0, 192], sizes = [2, 64], strides = [1, 1]} : vector<2x256xf32> to vector<2x64xf32>
    %127 = arith.negf %126 : vector<2x64xf32>
    %128 = math.exp %127 : vector<2x64xf32>
    %cst_42 = arith.constant 1.000000e+00 : f32
    %129 = vector.broadcast %cst_42 : f32 to vector<2x64xf32>
    %130 = arith.addf %129, %128 : vector<2x64xf32>
    %131 = arith.divf %129, %130 : vector<2x64xf32>
    %132 = arith.mulf %123, %101 : vector<2x64xf32>
    %133 = arith.mulf %117, %125 : vector<2x64xf32>
    %134 = arith.addf %132, %133 : vector<2x64xf32>
    %135 = math.tanh %134 : vector<2x64xf32>
    %136 = arith.mulf %131, %135 : vector<2x64xf32>
    %137 = vector.extract_strided_slice %136 {offsets = [0, 0], sizes = [2, 32], strides = [1, 1]} : vector<2x64xf32> to vector<2x32xf32>
    %c4_43 = arith.constant 4 : index
    %c0_44 = arith.constant 0 : index
    %138 = vector.load %arg23[%c4_43, %c0_44] : memref<16x64xf32, #tpu.memory_space<vmem>>, vector<2x32xf32>
    tpu.vector_store %arg23[%c4_43, %c0_44], %137 {strides = array<i32>} : memref<16x64xf32, #tpu.memory_space<vmem>>, vector<2x32xf32>,
    %139 = vector.extract_strided_slice %136 {offsets = [0, 32], sizes = [2, 32], strides = [1, 1]} : vector<2x64xf32> to vector<2x32xf32>
    %c10_45 = arith.constant 10 : index
    %c32_46 = arith.constant 32 : index
    %140 = vector.load %arg23[%c10_45, %c32_46] : memref<16x64xf32, #tpu.memory_space<vmem>>, vector<2x32xf32>
    tpu.vector_store %arg23[%c10_45, %c32_46], %139 {strides = array<i32>} : memref<16x64xf32, #tpu.memory_space<vmem>>, vector<2x32xf32>,
    %c6_47 = arith.constant 6 : index
    %c0_48 = arith.constant 0 : index
    %141 = vector.load %arg22[%c6_47, %c0_48] : memref<16x256xf32, #tpu.memory_space<vmem>>, vector<2x256xf32>
    %142 = arith.truncf %136 : vector<2x64xf32> to vector<2x64xbf16>
    %cst_49 = arith.constant dense<0.000000e+00> : vector<2x256xf32>
    %143 = tpu.matmul %142, %39, %cst_49 {dimension_numbers = #tpu.dot_dimension_numbers<[1], [0], [0], [1], [0, 0, 1, 1], [], []>} : vector<2x64xbf16>, vector<64x256xbf16>, vector<2x256xf32> -> vector<2x256xf32>
    %144 = arith.addf %141, %143 : vector<2x256xf32>
    %145 = vector.extract_strided_slice %144 {offsets = [0, 0], sizes = [2, 64], strides = [1, 1]} : vector<2x256xf32> to vector<2x64xf32>
    %146 = arith.negf %145 : vector<2x64xf32>
    %147 = math.exp %146 : vector<2x64xf32>
    %cst_50 = arith.constant 1.000000e+00 : f32
    %148 = vector.broadcast %cst_50 : f32 to vector<2x64xf32>
    %149 = arith.addf %148, %147 : vector<2x64xf32>
    %150 = arith.divf %148, %149 : vector<2x64xf32>
    %151 = vector.extract_strided_slice %144 {offsets = [0, 64], sizes = [2, 64], strides = [1, 1]} : vector<2x256xf32> to vector<2x64xf32>
    %152 = arith.negf %151 : vector<2x64xf32>
    %153 = math.exp %152 : vector<2x64xf32>
    %cst_51 = arith.constant 1.000000e+00 : f32
    %154 = vector.broadcast %cst_51 : f32 to vector<2x64xf32>
    %155 = arith.addf %154, %153 : vector<2x64xf32>
    %156 = arith.divf %154, %155 : vector<2x64xf32>
    %157 = vector.extract_strided_slice %144 {offsets = [0, 128], sizes = [2, 64], strides = [1, 1]} : vector<2x256xf32> to vector<2x64xf32>
    %158 = math.tanh %157 : vector<2x64xf32>
    %159 = vector.extract_strided_slice %144 {offsets = [0, 192], sizes = [2, 64], strides = [1, 1]} : vector<2x256xf32> to vector<2x64xf32>
    %160 = arith.negf %159 : vector<2x64xf32>
    %161 = math.exp %160 : vector<2x64xf32>
    %cst_52 = arith.constant 1.000000e+00 : f32
    %162 = vector.broadcast %cst_52 : f32 to vector<2x64xf32>
    %163 = arith.addf %162, %161 : vector<2x64xf32>
    %164 = arith.divf %162, %163 : vector<2x64xf32>
    %165 = arith.mulf %156, %134 : vector<2x64xf32>
    %166 = arith.mulf %150, %158 : vector<2x64xf32>
    %167 = arith.addf %165, %166 : vector<2x64xf32>
    %168 = math.tanh %167 : vector<2x64xf32>
    %169 = arith.mulf %164, %168 : vector<2x64xf32>
    %170 = vector.extract_strided_slice %169 {offsets = [0, 0], sizes = [2, 32], strides = [1, 1]} : vector<2x64xf32> to vector<2x32xf32>
    %c6_53 = arith.constant 6 : index
    %c0_54 = arith.constant 0 : index
    %171 = vector.load %arg23[%c6_53, %c0_54] : memref<16x64xf32, #tpu.memory_space<vmem>>, vector<2x32xf32>
    tpu.vector_store %arg23[%c6_53, %c0_54], %170 {strides = array<i32>} : memref<16x64xf32, #tpu.memory_space<vmem>>, vector<2x32xf32>,
    %172 = vector.extract_strided_slice %169 {offsets = [0, 32], sizes = [2, 32], strides = [1, 1]} : vector<2x64xf32> to vector<2x32xf32>
    %c8_55 = arith.constant 8 : index
    %c32_56 = arith.constant 32 : index
    %173 = vector.load %arg23[%c8_55, %c32_56] : memref<16x64xf32, #tpu.memory_space<vmem>>, vector<2x32xf32>
    tpu.vector_store %arg23[%c8_55, %c32_56], %172 {strides = array<i32>} : memref<16x64xf32, #tpu.memory_space<vmem>>, vector<2x32xf32>,
    %c8_57 = arith.constant 8 : index
    %c0_58 = arith.constant 0 : index
    %174 = vector.load %arg22[%c8_57, %c0_58] : memref<16x256xf32, #tpu.memory_space<vmem>>, vector<2x256xf32>
    %175 = arith.truncf %169 : vector<2x64xf32> to vector<2x64xbf16>
    %cst_59 = arith.constant dense<0.000000e+00> : vector<2x256xf32>
    %176 = tpu.matmul %175, %39, %cst_59 {dimension_numbers = #tpu.dot_dimension_numbers<[1], [0], [0], [1], [0, 0, 1, 1], [], []>} : vector<2x64xbf16>, vector<64x256xbf16>, vector<2x256xf32> -> vector<2x256xf32>
    %177 = arith.addf %174, %176 : vector<2x256xf32>
    %178 = vector.extract_strided_slice %177 {offsets = [0, 0], sizes = [2, 64], strides = [1, 1]} : vector<2x256xf32> to vector<2x64xf32>
    %179 = arith.negf %178 : vector<2x64xf32>
    %180 = math.exp %179 : vector<2x64xf32>
    %cst_60 = arith.constant 1.000000e+00 : f32
    %181 = vector.broadcast %cst_60 : f32 to vector<2x64xf32>
    %182 = arith.addf %181, %180 : vector<2x64xf32>
    %183 = arith.divf %181, %182 : vector<2x64xf32>
    %184 = vector.extract_strided_slice %177 {offsets = [0, 64], sizes = [2, 64], strides = [1, 1]} : vector<2x256xf32> to vector<2x64xf32>
    %185 = arith.negf %184 : vector<2x64xf32>
    %186 = math.exp %185 : vector<2x64xf32>
    %cst_61 = arith.constant 1.000000e+00 : f32
    %187 = vector.broadcast %cst_61 : f32 to vector<2x64xf32>
    %188 = arith.addf %187, %186 : vector<2x64xf32>
    %189 = arith.divf %187, %188 : vector<2x64xf32>
    %190 = vector.extract_strided_slice %177 {offsets = [0, 128], sizes = [2, 64], strides = [1, 1]} : vector<2x256xf32> to vector<2x64xf32>
    %191 = math.tanh %190 : vector<2x64xf32>
    %192 = vector.extract_strided_slice %177 {offsets = [0, 192], sizes = [2, 64], strides = [1, 1]} : vector<2x256xf32> to vector<2x64xf32>
    %193 = arith.negf %192 : vector<2x64xf32>
    %194 = math.exp %193 : vector<2x64xf32>
    %cst_62 = arith.constant 1.000000e+00 : f32
    %195 = vector.broadcast %cst_62 : f32 to vector<2x64xf32>
    %196 = arith.addf %195, %194 : vector<2x64xf32>
    %197 = arith.divf %195, %196 : vector<2x64xf32>
    %198 = arith.mulf %189, %167 : vector<2x64xf32>
    %199 = arith.mulf %183, %191 : vector<2x64xf32>
    %200 = arith.addf %198, %199 : vector<2x64xf32>
    %201 = math.tanh %200 : vector<2x64xf32>
    %202 = arith.mulf %197, %201 : vector<2x64xf32>
    %203 = vector.extract_strided_slice %202 {offsets = [0, 0], sizes = [2, 32], strides = [1, 1]} : vector<2x64xf32> to vector<2x32xf32>
    %c8_63 = arith.constant 8 : index
    %c0_64 = arith.constant 0 : index
    %204 = vector.load %arg23[%c8_63, %c0_64] : memref<16x64xf32, #tpu.memory_space<vmem>>, vector<2x32xf32>
    tpu.vector_store %arg23[%c8_63, %c0_64], %203 {strides = array<i32>} : memref<16x64xf32, #tpu.memory_space<vmem>>, vector<2x32xf32>,
    %205 = vector.extract_strided_slice %202 {offsets = [0, 32], sizes = [2, 32], strides = [1, 1]} : vector<2x64xf32> to vector<2x32xf32>
    %c6_65 = arith.constant 6 : index
    %c32_66 = arith.constant 32 : index
    %206 = vector.load %arg23[%c6_65, %c32_66] : memref<16x64xf32, #tpu.memory_space<vmem>>, vector<2x32xf32>
    tpu.vector_store %arg23[%c6_65, %c32_66], %205 {strides = array<i32>} : memref<16x64xf32, #tpu.memory_space<vmem>>, vector<2x32xf32>,
    %c10_67 = arith.constant 10 : index
    %c0_68 = arith.constant 0 : index
    %207 = vector.load %arg22[%c10_67, %c0_68] : memref<16x256xf32, #tpu.memory_space<vmem>>, vector<2x256xf32>
    %208 = arith.truncf %202 : vector<2x64xf32> to vector<2x64xbf16>
    %cst_69 = arith.constant dense<0.000000e+00> : vector<2x256xf32>
    %209 = tpu.matmul %208, %39, %cst_69 {dimension_numbers = #tpu.dot_dimension_numbers<[1], [0], [0], [1], [0, 0, 1, 1], [], []>} : vector<2x64xbf16>, vector<64x256xbf16>, vector<2x256xf32> -> vector<2x256xf32>
    %210 = arith.addf %207, %209 : vector<2x256xf32>
    %211 = vector.extract_strided_slice %210 {offsets = [0, 0], sizes = [2, 64], strides = [1, 1]} : vector<2x256xf32> to vector<2x64xf32>
    %212 = arith.negf %211 : vector<2x64xf32>
    %213 = math.exp %212 : vector<2x64xf32>
    %cst_70 = arith.constant 1.000000e+00 : f32
    %214 = vector.broadcast %cst_70 : f32 to vector<2x64xf32>
    %215 = arith.addf %214, %213 : vector<2x64xf32>
    %216 = arith.divf %214, %215 : vector<2x64xf32>
    %217 = vector.extract_strided_slice %210 {offsets = [0, 64], sizes = [2, 64], strides = [1, 1]} : vector<2x256xf32> to vector<2x64xf32>
    %218 = arith.negf %217 : vector<2x64xf32>
    %219 = math.exp %218 : vector<2x64xf32>
    %cst_71 = arith.constant 1.000000e+00 : f32
    %220 = vector.broadcast %cst_71 : f32 to vector<2x64xf32>
    %221 = arith.addf %220, %219 : vector<2x64xf32>
    %222 = arith.divf %220, %221 : vector<2x64xf32>
    %223 = vector.extract_strided_slice %210 {offsets = [0, 128], sizes = [2, 64], strides = [1, 1]} : vector<2x256xf32> to vector<2x64xf32>
    %224 = math.tanh %223 : vector<2x64xf32>
    %225 = vector.extract_strided_slice %210 {offsets = [0, 192], sizes = [2, 64], strides = [1, 1]} : vector<2x256xf32> to vector<2x64xf32>
    %226 = arith.negf %225 : vector<2x64xf32>
    %227 = math.exp %226 : vector<2x64xf32>
    %cst_72 = arith.constant 1.000000e+00 : f32
    %228 = vector.broadcast %cst_72 : f32 to vector<2x64xf32>
    %229 = arith.addf %228, %227 : vector<2x64xf32>
    %230 = arith.divf %228, %229 : vector<2x64xf32>
    %231 = arith.mulf %222, %200 : vector<2x64xf32>
    %232 = arith.mulf %216, %224 : vector<2x64xf32>
    %233 = arith.addf %231, %232 : vector<2x64xf32>
    %234 = math.tanh %233 : vector<2x64xf32>
    %235 = arith.mulf %230, %234 : vector<2x64xf32>
    %236 = vector.extract_strided_slice %235 {offsets = [0, 0], sizes = [2, 32], strides = [1, 1]} : vector<2x64xf32> to vector<2x32xf32>
    %c10_73 = arith.constant 10 : index
    %c0_74 = arith.constant 0 : index
    %237 = vector.load %arg23[%c10_73, %c0_74] : memref<16x64xf32, #tpu.memory_space<vmem>>, vector<2x32xf32>
    tpu.vector_store %arg23[%c10_73, %c0_74], %236 {strides = array<i32>} : memref<16x64xf32, #tpu.memory_space<vmem>>, vector<2x32xf32>,
    %238 = vector.extract_strided_slice %235 {offsets = [0, 32], sizes = [2, 32], strides = [1, 1]} : vector<2x64xf32> to vector<2x32xf32>
    %c4_75 = arith.constant 4 : index
    %c32_76 = arith.constant 32 : index
    %239 = vector.load %arg23[%c4_75, %c32_76] : memref<16x64xf32, #tpu.memory_space<vmem>>, vector<2x32xf32>
    tpu.vector_store %arg23[%c4_75, %c32_76], %238 {strides = array<i32>} : memref<16x64xf32, #tpu.memory_space<vmem>>, vector<2x32xf32>,
    %c12_77 = arith.constant 12 : index
    %c0_78 = arith.constant 0 : index
    %240 = vector.load %arg22[%c12_77, %c0_78] : memref<16x256xf32, #tpu.memory_space<vmem>>, vector<2x256xf32>
    %241 = arith.truncf %235 : vector<2x64xf32> to vector<2x64xbf16>
    %cst_79 = arith.constant dense<0.000000e+00> : vector<2x256xf32>
    %242 = tpu.matmul %241, %39, %cst_79 {dimension_numbers = #tpu.dot_dimension_numbers<[1], [0], [0], [1], [0, 0, 1, 1], [], []>} : vector<2x64xbf16>, vector<64x256xbf16>, vector<2x256xf32> -> vector<2x256xf32>
    %243 = arith.addf %240, %242 : vector<2x256xf32>
    %244 = vector.extract_strided_slice %243 {offsets = [0, 0], sizes = [2, 64], strides = [1, 1]} : vector<2x256xf32> to vector<2x64xf32>
    %245 = arith.negf %244 : vector<2x64xf32>
    %246 = math.exp %245 : vector<2x64xf32>
    %cst_80 = arith.constant 1.000000e+00 : f32
    %247 = vector.broadcast %cst_80 : f32 to vector<2x64xf32>
    %248 = arith.addf %247, %246 : vector<2x64xf32>
    %249 = arith.divf %247, %248 : vector<2x64xf32>
    %250 = vector.extract_strided_slice %243 {offsets = [0, 64], sizes = [2, 64], strides = [1, 1]} : vector<2x256xf32> to vector<2x64xf32>
    %251 = arith.negf %250 : vector<2x64xf32>
    %252 = math.exp %251 : vector<2x64xf32>
    %cst_81 = arith.constant 1.000000e+00 : f32
    %253 = vector.broadcast %cst_81 : f32 to vector<2x64xf32>
    %254 = arith.addf %253, %252 : vector<2x64xf32>
    %255 = arith.divf %253, %254 : vector<2x64xf32>
    %256 = vector.extract_strided_slice %243 {offsets = [0, 128], sizes = [2, 64], strides = [1, 1]} : vector<2x256xf32> to vector<2x64xf32>
    %257 = math.tanh %256 : vector<2x64xf32>
    %258 = vector.extract_strided_slice %243 {offsets = [0, 192], sizes = [2, 64], strides = [1, 1]} : vector<2x256xf32> to vector<2x64xf32>
    %259 = arith.negf %258 : vector<2x64xf32>
    %260 = math.exp %259 : vector<2x64xf32>
    %cst_82 = arith.constant 1.000000e+00 : f32
    %261 = vector.broadcast %cst_82 : f32 to vector<2x64xf32>
    %262 = arith.addf %261, %260 : vector<2x64xf32>
    %263 = arith.divf %261, %262 : vector<2x64xf32>
    %264 = arith.mulf %255, %233 : vector<2x64xf32>
    %265 = arith.mulf %249, %257 : vector<2x64xf32>
    %266 = arith.addf %264, %265 : vector<2x64xf32>
    %267 = math.tanh %266 : vector<2x64xf32>
    %268 = arith.mulf %263, %267 : vector<2x64xf32>
    %269 = vector.extract_strided_slice %268 {offsets = [0, 0], sizes = [2, 32], strides = [1, 1]} : vector<2x64xf32> to vector<2x32xf32>
    %c12_83 = arith.constant 12 : index
    %c0_84 = arith.constant 0 : index
    %270 = vector.load %arg23[%c12_83, %c0_84] : memref<16x64xf32, #tpu.memory_space<vmem>>, vector<2x32xf32>
    tpu.vector_store %arg23[%c12_83, %c0_84], %269 {strides = array<i32>} : memref<16x64xf32, #tpu.memory_space<vmem>>, vector<2x32xf32>,
    %271 = vector.extract_strided_slice %268 {offsets = [0, 32], sizes = [2, 32], strides = [1, 1]} : vector<2x64xf32> to vector<2x32xf32>
    %c2_85 = arith.constant 2 : index
    %c32_86 = arith.constant 32 : index
    %272 = vector.load %arg23[%c2_85, %c32_86] : memref<16x64xf32, #tpu.memory_space<vmem>>, vector<2x32xf32>
    tpu.vector_store %arg23[%c2_85, %c32_86], %271 {strides = array<i32>} : memref<16x64xf32, #tpu.memory_space<vmem>>, vector<2x32xf32>,
    %c14_87 = arith.constant 14 : index
    %c0_88 = arith.constant 0 : index
    %273 = vector.load %arg22[%c14_87, %c0_88] : memref<16x256xf32, #tpu.memory_space<vmem>>, vector<2x256xf32>
    %274 = arith.truncf %268 : vector<2x64xf32> to vector<2x64xbf16>
    %cst_89 = arith.constant dense<0.000000e+00> : vector<2x256xf32>
    %275 = tpu.matmul %274, %39, %cst_89 {dimension_numbers = #tpu.dot_dimension_numbers<[1], [0], [0], [1], [0, 0, 1, 1], [], []>} : vector<2x64xbf16>, vector<64x256xbf16>, vector<2x256xf32> -> vector<2x256xf32>
    %276 = arith.addf %273, %275 : vector<2x256xf32>
    %277 = vector.extract_strided_slice %276 {offsets = [0, 0], sizes = [2, 64], strides = [1, 1]} : vector<2x256xf32> to vector<2x64xf32>
    %278 = arith.negf %277 : vector<2x64xf32>
    %279 = math.exp %278 : vector<2x64xf32>
    %cst_90 = arith.constant 1.000000e+00 : f32
    %280 = vector.broadcast %cst_90 : f32 to vector<2x64xf32>
    %281 = arith.addf %280, %279 : vector<2x64xf32>
    %282 = arith.divf %280, %281 : vector<2x64xf32>
    %283 = vector.extract_strided_slice %276 {offsets = [0, 64], sizes = [2, 64], strides = [1, 1]} : vector<2x256xf32> to vector<2x64xf32>
    %284 = arith.negf %283 : vector<2x64xf32>
    %285 = math.exp %284 : vector<2x64xf32>
    %cst_91 = arith.constant 1.000000e+00 : f32
    %286 = vector.broadcast %cst_91 : f32 to vector<2x64xf32>
    %287 = arith.addf %286, %285 : vector<2x64xf32>
    %288 = arith.divf %286, %287 : vector<2x64xf32>
    %289 = vector.extract_strided_slice %276 {offsets = [0, 128], sizes = [2, 64], strides = [1, 1]} : vector<2x256xf32> to vector<2x64xf32>
    %290 = math.tanh %289 : vector<2x64xf32>
    %291 = vector.extract_strided_slice %276 {offsets = [0, 192], sizes = [2, 64], strides = [1, 1]} : vector<2x256xf32> to vector<2x64xf32>
    %292 = arith.negf %291 : vector<2x64xf32>
    %293 = math.exp %292 : vector<2x64xf32>
    %cst_92 = arith.constant 1.000000e+00 : f32
    %294 = vector.broadcast %cst_92 : f32 to vector<2x64xf32>
    %295 = arith.addf %294, %293 : vector<2x64xf32>
    %296 = arith.divf %294, %295 : vector<2x64xf32>
    %297 = arith.mulf %288, %266 : vector<2x64xf32>
    %298 = arith.mulf %282, %290 : vector<2x64xf32>
    %299 = arith.addf %297, %298 : vector<2x64xf32>
    %300 = math.tanh %299 : vector<2x64xf32>
    %301 = arith.mulf %296, %300 : vector<2x64xf32>
    %302 = vector.extract_strided_slice %301 {offsets = [0, 0], sizes = [2, 32], strides = [1, 1]} : vector<2x64xf32> to vector<2x32xf32>
    %c14_93 = arith.constant 14 : index
    %c0_94 = arith.constant 0 : index
    %303 = vector.load %arg23[%c14_93, %c0_94] : memref<16x64xf32, #tpu.memory_space<vmem>>, vector<2x32xf32>
    tpu.vector_store %arg23[%c14_93, %c0_94], %302 {strides = array<i32>} : memref<16x64xf32, #tpu.memory_space<vmem>>, vector<2x32xf32>,
    %304 = vector.extract_strided_slice %301 {offsets = [0, 32], sizes = [2, 32], strides = [1, 1]} : vector<2x64xf32> to vector<2x32xf32>
    %c0_95 = arith.constant 0 : index
    %c32_96 = arith.constant 32 : index
    %305 = vector.load %arg23[%c0_95, %c32_96] : memref<16x64xf32, #tpu.memory_space<vmem>>, vector<2x32xf32>
    tpu.vector_store %arg23[%c0_95, %c32_96], %304 {strides = array<i32>} : memref<16x64xf32, #tpu.memory_space<vmem>>, vector<2x32xf32>,
    %c0_97 = arith.constant 0 : index
    %c0_98 = arith.constant 0 : index
    %306 = vector.load %arg23[%c0_97, %c0_98] : memref<16x64xf32, #tpu.memory_space<vmem>>, vector<16x64xf32>
    %307 = arith.truncf %306 : vector<16x64xf32> to vector<16x64xbf16>
    %c0_99 = arith.constant 0 : index
    %c0_100 = arith.constant 0 : index
    %308 = vector.load %arg4[%c0_99, %c0_100] : memref<64x512xbf16, #tpu.memory_space<vmem>>, vector<64x512xbf16>
    %cst_101 = arith.constant dense<0.000000e+00> : vector<16x512xf32>
    %309 = tpu.matmul %307, %308, %cst_101 {dimension_numbers = #tpu.dot_dimension_numbers<[1], [0], [0], [1], [0, 0, 1, 1], [], []>} : vector<16x64xbf16>, vector<64x512xbf16>, vector<16x512xf32> -> vector<16x512xf32>
    %c0_102 = arith.constant 0 : index
    %c0_103 = arith.constant 0 : index
    %310 = vector.load %arg5[%c0_102, %c0_103] : memref<1x512xf32, #tpu.memory_space<vmem>>, vector<1x512xf32>
    %311 = vector.broadcast %310 : vector<1x512xf32> to vector<16x512xf32>
    %312 = arith.addf %309, %311 : vector<16x512xf32>
    %313 = vector.extract_strided_slice %312 {offsets = [0, 0], sizes = [2, 256], strides = [1, 1]} : vector<16x512xf32> to vector<2x256xf32>
    %314 = vector.extract_strided_slice %312 {offsets = [14, 256], sizes = [2, 256], strides = [1, 1]} : vector<16x512xf32> to vector<2x256xf32>
    %315 = arith.addf %313, %314 : vector<2x256xf32>
    %c0_104 = arith.constant 0 : index
    %c0_105 = arith.constant 0 : index
    %316 = vector.load %arg22[%c0_104, %c0_105] : memref<16x256xf32, #tpu.memory_space<vmem>>, vector<2x256xf32>
    tpu.vector_store %arg22[%c0_104, %c0_105], %315 {strides = array<i32>} : memref<16x256xf32, #tpu.memory_space<vmem>>, vector<2x256xf32>,
    %317 = vector.extract_strided_slice %312 {offsets = [2, 0], sizes = [2, 256], strides = [1, 1]} : vector<16x512xf32> to vector<2x256xf32>
    %318 = vector.extract_strided_slice %312 {offsets = [12, 256], sizes = [2, 256], strides = [1, 1]} : vector<16x512xf32> to vector<2x256xf32>
    %319 = arith.addf %317, %318 : vector<2x256xf32>
    %c2_106 = arith.constant 2 : index
    %c0_107 = arith.constant 0 : index
    %320 = vector.load %arg22[%c2_106, %c0_107] : memref<16x256xf32, #tpu.memory_space<vmem>>, vector<2x256xf32>
    tpu.vector_store %arg22[%c2_106, %c0_107], %319 {strides = array<i32>} : memref<16x256xf32, #tpu.memory_space<vmem>>, vector<2x256xf32>,
    %321 = vector.extract_strided_slice %312 {offsets = [4, 0], sizes = [2, 256], strides = [1, 1]} : vector<16x512xf32> to vector<2x256xf32>
    %322 = vector.extract_strided_slice %312 {offsets = [10, 256], sizes = [2, 256], strides = [1, 1]} : vector<16x512xf32> to vector<2x256xf32>
    %323 = arith.addf %321, %322 : vector<2x256xf32>
    %c4_108 = arith.constant 4 : index
    %c0_109 = arith.constant 0 : index
    %324 = vector.load %arg22[%c4_108, %c0_109] : memref<16x256xf32, #tpu.memory_space<vmem>>, vector<2x256xf32>
    tpu.vector_store %arg22[%c4_108, %c0_109], %323 {strides = array<i32>} : memref<16x256xf32, #tpu.memory_space<vmem>>, vector<2x256xf32>,
    %325 = vector.extract_strided_slice %312 {offsets = [6, 0], sizes = [2, 256], strides = [1, 1]} : vector<16x512xf32> to vector<2x256xf32>
    %326 = vector.extract_strided_slice %312 {offsets = [8, 256], sizes = [2, 256], strides = [1, 1]} : vector<16x512xf32> to vector<2x256xf32>
    %327 = arith.addf %325, %326 : vector<2x256xf32>
    %c6_110 = arith.constant 6 : index
    %c0_111 = arith.constant 0 : index
    %328 = vector.load %arg22[%c6_110, %c0_111] : memref<16x256xf32, #tpu.memory_space<vmem>>, vector<2x256xf32>
    tpu.vector_store %arg22[%c6_110, %c0_111], %327 {strides = array<i32>} : memref<16x256xf32, #tpu.memory_space<vmem>>, vector<2x256xf32>,
    %329 = vector.extract_strided_slice %312 {offsets = [8, 0], sizes = [2, 256], strides = [1, 1]} : vector<16x512xf32> to vector<2x256xf32>
    %330 = vector.extract_strided_slice %312 {offsets = [6, 256], sizes = [2, 256], strides = [1, 1]} : vector<16x512xf32> to vector<2x256xf32>
    %331 = arith.addf %329, %330 : vector<2x256xf32>
    %c8_112 = arith.constant 8 : index
    %c0_113 = arith.constant 0 : index
    %332 = vector.load %arg22[%c8_112, %c0_113] : memref<16x256xf32, #tpu.memory_space<vmem>>, vector<2x256xf32>
    tpu.vector_store %arg22[%c8_112, %c0_113], %331 {strides = array<i32>} : memref<16x256xf32, #tpu.memory_space<vmem>>, vector<2x256xf32>,
    %333 = vector.extract_strided_slice %312 {offsets = [10, 0], sizes = [2, 256], strides = [1, 1]} : vector<16x512xf32> to vector<2x256xf32>
    %334 = vector.extract_strided_slice %312 {offsets = [4, 256], sizes = [2, 256], strides = [1, 1]} : vector<16x512xf32> to vector<2x256xf32>
    %335 = arith.addf %333, %334 : vector<2x256xf32>
    %c10_114 = arith.constant 10 : index
    %c0_115 = arith.constant 0 : index
    %336 = vector.load %arg22[%c10_114, %c0_115] : memref<16x256xf32, #tpu.memory_space<vmem>>, vector<2x256xf32>
    tpu.vector_store %arg22[%c10_114, %c0_115], %335 {strides = array<i32>} : memref<16x256xf32, #tpu.memory_space<vmem>>, vector<2x256xf32>,
    %337 = vector.extract_strided_slice %312 {offsets = [12, 0], sizes = [2, 256], strides = [1, 1]} : vector<16x512xf32> to vector<2x256xf32>
    %338 = vector.extract_strided_slice %312 {offsets = [2, 256], sizes = [2, 256], strides = [1, 1]} : vector<16x512xf32> to vector<2x256xf32>
    %339 = arith.addf %337, %338 : vector<2x256xf32>
    %c12_116 = arith.constant 12 : index
    %c0_117 = arith.constant 0 : index
    %340 = vector.load %arg22[%c12_116, %c0_117] : memref<16x256xf32, #tpu.memory_space<vmem>>, vector<2x256xf32>
    tpu.vector_store %arg22[%c12_116, %c0_117], %339 {strides = array<i32>} : memref<16x256xf32, #tpu.memory_space<vmem>>, vector<2x256xf32>,
    %341 = vector.extract_strided_slice %312 {offsets = [14, 0], sizes = [2, 256], strides = [1, 1]} : vector<16x512xf32> to vector<2x256xf32>
    %342 = vector.extract_strided_slice %312 {offsets = [0, 256], sizes = [2, 256], strides = [1, 1]} : vector<16x512xf32> to vector<2x256xf32>
    %343 = arith.addf %341, %342 : vector<2x256xf32>
    %c14_118 = arith.constant 14 : index
    %c0_119 = arith.constant 0 : index
    %344 = vector.load %arg22[%c14_118, %c0_119] : memref<16x256xf32, #tpu.memory_space<vmem>>, vector<2x256xf32>
    tpu.vector_store %arg22[%c14_118, %c0_119], %343 {strides = array<i32>} : memref<16x256xf32, #tpu.memory_space<vmem>>, vector<2x256xf32>,
    %c0_120 = arith.constant 0 : index
    %c0_121 = arith.constant 0 : index
    %345 = vector.load %arg6[%c0_120, %c0_121] : memref<64x256xbf16, #tpu.memory_space<vmem>>, vector<64x256xbf16>
    %cst_122 = arith.constant 0.000000e+00 : f32
    %346 = vector.broadcast %cst_122 : f32 to vector<2x64xf32>
    %cst_123 = arith.constant 0.000000e+00 : f32
    %347 = vector.broadcast %cst_123 : f32 to vector<2x64xf32>
    %c0_124 = arith.constant 0 : index
    %c0_125 = arith.constant 0 : index
    %348 = vector.load %arg22[%c0_124, %c0_125] : memref<16x256xf32, #tpu.memory_space<vmem>>, vector<2x256xf32>
    %349 = arith.truncf %346 : vector<2x64xf32> to vector<2x64xbf16>
    %cst_126 = arith.constant dense<0.000000e+00> : vector<2x256xf32>
    %350 = tpu.matmul %349, %345, %cst_126 {dimension_numbers = #tpu.dot_dimension_numbers<[1], [0], [0], [1], [0, 0, 1, 1], [], []>} : vector<2x64xbf16>, vector<64x256xbf16>, vector<2x256xf32> -> vector<2x256xf32>
    %351 = arith.addf %348, %350 : vector<2x256xf32>
    %352 = vector.extract_strided_slice %351 {offsets = [0, 0], sizes = [2, 64], strides = [1, 1]} : vector<2x256xf32> to vector<2x64xf32>
    %353 = arith.negf %352 : vector<2x64xf32>
    %354 = math.exp %353 : vector<2x64xf32>
    %cst_127 = arith.constant 1.000000e+00 : f32
    %355 = vector.broadcast %cst_127 : f32 to vector<2x64xf32>
    %356 = arith.addf %355, %354 : vector<2x64xf32>
    %357 = arith.divf %355, %356 : vector<2x64xf32>
    %358 = vector.extract_strided_slice %351 {offsets = [0, 64], sizes = [2, 64], strides = [1, 1]} : vector<2x256xf32> to vector<2x64xf32>
    %359 = arith.negf %358 : vector<2x64xf32>
    %360 = math.exp %359 : vector<2x64xf32>
    %cst_128 = arith.constant 1.000000e+00 : f32
    %361 = vector.broadcast %cst_128 : f32 to vector<2x64xf32>
    %362 = arith.addf %361, %360 : vector<2x64xf32>
    %363 = arith.divf %361, %362 : vector<2x64xf32>
    %364 = vector.extract_strided_slice %351 {offsets = [0, 128], sizes = [2, 64], strides = [1, 1]} : vector<2x256xf32> to vector<2x64xf32>
    %365 = math.tanh %364 : vector<2x64xf32>
    %366 = vector.extract_strided_slice %351 {offsets = [0, 192], sizes = [2, 64], strides = [1, 1]} : vector<2x256xf32> to vector<2x64xf32>
    %367 = arith.negf %366 : vector<2x64xf32>
    %368 = math.exp %367 : vector<2x64xf32>
    %cst_129 = arith.constant 1.000000e+00 : f32
    %369 = vector.broadcast %cst_129 : f32 to vector<2x64xf32>
    %370 = arith.addf %369, %368 : vector<2x64xf32>
    %371 = arith.divf %369, %370 : vector<2x64xf32>
    %372 = arith.mulf %363, %347 : vector<2x64xf32>
    %373 = arith.mulf %357, %365 : vector<2x64xf32>
    %374 = arith.addf %372, %373 : vector<2x64xf32>
    %375 = math.tanh %374 : vector<2x64xf32>
    %376 = arith.mulf %371, %375 : vector<2x64xf32>
    %377 = vector.extract_strided_slice %376 {offsets = [0, 0], sizes = [2, 32], strides = [1, 1]} : vector<2x64xf32> to vector<2x32xf32>
    %c0_130 = arith.constant 0 : index
    %c0_131 = arith.constant 0 : index
    %378 = vector.load %arg23[%c0_130, %c0_131] : memref<16x64xf32, #tpu.memory_space<vmem>>, vector<2x32xf32>
    tpu.vector_store %arg23[%c0_130, %c0_131], %377 {strides = array<i32>} : memref<16x64xf32, #tpu.memory_space<vmem>>, vector<2x32xf32>,
    %379 = vector.extract_strided_slice %376 {offsets = [0, 32], sizes = [2, 32], strides = [1, 1]} : vector<2x64xf32> to vector<2x32xf32>
    %c14_132 = arith.constant 14 : index
    %c32_133 = arith.constant 32 : index
    %380 = vector.load %arg23[%c14_132, %c32_133] : memref<16x64xf32, #tpu.memory_space<vmem>>, vector<2x32xf32>
    tpu.vector_store %arg23[%c14_132, %c32_133], %379 {strides = array<i32>} : memref<16x64xf32, #tpu.memory_space<vmem>>, vector<2x32xf32>,
    %c2_134 = arith.constant 2 : index
    %c0_135 = arith.constant 0 : index
    %381 = vector.load %arg22[%c2_134, %c0_135] : memref<16x256xf32, #tpu.memory_space<vmem>>, vector<2x256xf32>
    %382 = arith.truncf %376 : vector<2x64xf32> to vector<2x64xbf16>
    %cst_136 = arith.constant dense<0.000000e+00> : vector<2x256xf32>
    %383 = tpu.matmul %382, %345, %cst_136 {dimension_numbers = #tpu.dot_dimension_numbers<[1], [0], [0], [1], [0, 0, 1, 1], [], []>} : vector<2x64xbf16>, vector<64x256xbf16>, vector<2x256xf32> -> vector<2x256xf32>
    %384 = arith.addf %381, %383 : vector<2x256xf32>
    %385 = vector.extract_strided_slice %384 {offsets = [0, 0], sizes = [2, 64], strides = [1, 1]} : vector<2x256xf32> to vector<2x64xf32>
    %386 = arith.negf %385 : vector<2x64xf32>
    %387 = math.exp %386 : vector<2x64xf32>
    %cst_137 = arith.constant 1.000000e+00 : f32
    %388 = vector.broadcast %cst_137 : f32 to vector<2x64xf32>
    %389 = arith.addf %388, %387 : vector<2x64xf32>
    %390 = arith.divf %388, %389 : vector<2x64xf32>
    %391 = vector.extract_strided_slice %384 {offsets = [0, 64], sizes = [2, 64], strides = [1, 1]} : vector<2x256xf32> to vector<2x64xf32>
    %392 = arith.negf %391 : vector<2x64xf32>
    %393 = math.exp %392 : vector<2x64xf32>
    %cst_138 = arith.constant 1.000000e+00 : f32
    %394 = vector.broadcast %cst_138 : f32 to vector<2x64xf32>
    %395 = arith.addf %394, %393 : vector<2x64xf32>
    %396 = arith.divf %394, %395 : vector<2x64xf32>
    %397 = vector.extract_strided_slice %384 {offsets = [0, 128], sizes = [2, 64], strides = [1, 1]} : vector<2x256xf32> to vector<2x64xf32>
    %398 = math.tanh %397 : vector<2x64xf32>
    %399 = vector.extract_strided_slice %384 {offsets = [0, 192], sizes = [2, 64], strides = [1, 1]} : vector<2x256xf32> to vector<2x64xf32>
    %400 = arith.negf %399 : vector<2x64xf32>
    %401 = math.exp %400 : vector<2x64xf32>
    %cst_139 = arith.constant 1.000000e+00 : f32
    %402 = vector.broadcast %cst_139 : f32 to vector<2x64xf32>
    %403 = arith.addf %402, %401 : vector<2x64xf32>
    %404 = arith.divf %402, %403 : vector<2x64xf32>
    %405 = arith.mulf %396, %374 : vector<2x64xf32>
    %406 = arith.mulf %390, %398 : vector<2x64xf32>
    %407 = arith.addf %405, %406 : vector<2x64xf32>
    %408 = math.tanh %407 : vector<2x64xf32>
    %409 = arith.mulf %404, %408 : vector<2x64xf32>
    %410 = vector.extract_strided_slice %409 {offsets = [0, 0], sizes = [2, 32], strides = [1, 1]} : vector<2x64xf32> to vector<2x32xf32>
    %c2_140 = arith.constant 2 : index
    %c0_141 = arith.constant 0 : index
    %411 = vector.load %arg23[%c2_140, %c0_141] : memref<16x64xf32, #tpu.memory_space<vmem>>, vector<2x32xf32>
    tpu.vector_store %arg23[%c2_140, %c0_141], %410 {strides = array<i32>} : memref<16x64xf32, #tpu.memory_space<vmem>>, vector<2x32xf32>,
    %412 = vector.extract_strided_slice %409 {offsets = [0, 32], sizes = [2, 32], strides = [1, 1]} : vector<2x64xf32> to vector<2x32xf32>
    %c12_142 = arith.constant 12 : index
    %c32_143 = arith.constant 32 : index
    %413 = vector.load %arg23[%c12_142, %c32_143] : memref<16x64xf32, #tpu.memory_space<vmem>>, vector<2x32xf32>
    tpu.vector_store %arg23[%c12_142, %c32_143], %412 {strides = array<i32>} : memref<16x64xf32, #tpu.memory_space<vmem>>, vector<2x32xf32>,
    %c4_144 = arith.constant 4 : index
    %c0_145 = arith.constant 0 : index
    %414 = vector.load %arg22[%c4_144, %c0_145] : memref<16x256xf32, #tpu.memory_space<vmem>>, vector<2x256xf32>
    %415 = arith.truncf %409 : vector<2x64xf32> to vector<2x64xbf16>
    %cst_146 = arith.constant dense<0.000000e+00> : vector<2x256xf32>
    %416 = tpu.matmul %415, %345, %cst_146 {dimension_numbers = #tpu.dot_dimension_numbers<[1], [0], [0], [1], [0, 0, 1, 1], [], []>} : vector<2x64xbf16>, vector<64x256xbf16>, vector<2x256xf32> -> vector<2x256xf32>
    %417 = arith.addf %414, %416 : vector<2x256xf32>
    %418 = vector.extract_strided_slice %417 {offsets = [0, 0], sizes = [2, 64], strides = [1, 1]} : vector<2x256xf32> to vector<2x64xf32>
    %419 = arith.negf %418 : vector<2x64xf32>
    %420 = math.exp %419 : vector<2x64xf32>
    %cst_147 = arith.constant 1.000000e+00 : f32
    %421 = vector.broadcast %cst_147 : f32 to vector<2x64xf32>
    %422 = arith.addf %421, %420 : vector<2x64xf32>
    %423 = arith.divf %421, %422 : vector<2x64xf32>
    %424 = vector.extract_strided_slice %417 {offsets = [0, 64], sizes = [2, 64], strides = [1, 1]} : vector<2x256xf32> to vector<2x64xf32>
    %425 = arith.negf %424 : vector<2x64xf32>
    %426 = math.exp %425 : vector<2x64xf32>
    %cst_148 = arith.constant 1.000000e+00 : f32
    %427 = vector.broadcast %cst_148 : f32 to vector<2x64xf32>
    %428 = arith.addf %427, %426 : vector<2x64xf32>
    %429 = arith.divf %427, %428 : vector<2x64xf32>
    %430 = vector.extract_strided_slice %417 {offsets = [0, 128], sizes = [2, 64], strides = [1, 1]} : vector<2x256xf32> to vector<2x64xf32>
    %431 = math.tanh %430 : vector<2x64xf32>
    %432 = vector.extract_strided_slice %417 {offsets = [0, 192], sizes = [2, 64], strides = [1, 1]} : vector<2x256xf32> to vector<2x64xf32>
    %433 = arith.negf %432 : vector<2x64xf32>
    %434 = math.exp %433 : vector<2x64xf32>
    %cst_149 = arith.constant 1.000000e+00 : f32
    %435 = vector.broadcast %cst_149 : f32 to vector<2x64xf32>
    %436 = arith.addf %435, %434 : vector<2x64xf32>
    %437 = arith.divf %435, %436 : vector<2x64xf32>
    %438 = arith.mulf %429, %407 : vector<2x64xf32>
    %439 = arith.mulf %423, %431 : vector<2x64xf32>
    %440 = arith.addf %438, %439 : vector<2x64xf32>
    %441 = math.tanh %440 : vector<2x64xf32>
    %442 = arith.mulf %437, %441 : vector<2x64xf32>
    %443 = vector.extract_strided_slice %442 {offsets = [0, 0], sizes = [2, 32], strides = [1, 1]} : vector<2x64xf32> to vector<2x32xf32>
    %c4_150 = arith.constant 4 : index
    %c0_151 = arith.constant 0 : index
    %444 = vector.load %arg23[%c4_150, %c0_151] : memref<16x64xf32, #tpu.memory_space<vmem>>, vector<2x32xf32>
    tpu.vector_store %arg23[%c4_150, %c0_151], %443 {strides = array<i32>} : memref<16x64xf32, #tpu.memory_space<vmem>>, vector<2x32xf32>,
    %445 = vector.extract_strided_slice %442 {offsets = [0, 32], sizes = [2, 32], strides = [1, 1]} : vector<2x64xf32> to vector<2x32xf32>
    %c10_152 = arith.constant 10 : index
    %c32_153 = arith.constant 32 : index
    %446 = vector.load %arg23[%c10_152, %c32_153] : memref<16x64xf32, #tpu.memory_space<vmem>>, vector<2x32xf32>
    tpu.vector_store %arg23[%c10_152, %c32_153], %445 {strides = array<i32>} : memref<16x64xf32, #tpu.memory_space<vmem>>, vector<2x32xf32>,
    %c6_154 = arith.constant 6 : index
    %c0_155 = arith.constant 0 : index
    %447 = vector.load %arg22[%c6_154, %c0_155] : memref<16x256xf32, #tpu.memory_space<vmem>>, vector<2x256xf32>
    %448 = arith.truncf %442 : vector<2x64xf32> to vector<2x64xbf16>
    %cst_156 = arith.constant dense<0.000000e+00> : vector<2x256xf32>
    %449 = tpu.matmul %448, %345, %cst_156 {dimension_numbers = #tpu.dot_dimension_numbers<[1], [0], [0], [1], [0, 0, 1, 1], [], []>} : vector<2x64xbf16>, vector<64x256xbf16>, vector<2x256xf32> -> vector<2x256xf32>
    %450 = arith.addf %447, %449 : vector<2x256xf32>
    %451 = vector.extract_strided_slice %450 {offsets = [0, 0], sizes = [2, 64], strides = [1, 1]} : vector<2x256xf32> to vector<2x64xf32>
    %452 = arith.negf %451 : vector<2x64xf32>
    %453 = math.exp %452 : vector<2x64xf32>
    %cst_157 = arith.constant 1.000000e+00 : f32
    %454 = vector.broadcast %cst_157 : f32 to vector<2x64xf32>
    %455 = arith.addf %454, %453 : vector<2x64xf32>
    %456 = arith.divf %454, %455 : vector<2x64xf32>
    %457 = vector.extract_strided_slice %450 {offsets = [0, 64], sizes = [2, 64], strides = [1, 1]} : vector<2x256xf32> to vector<2x64xf32>
    %458 = arith.negf %457 : vector<2x64xf32>
    %459 = math.exp %458 : vector<2x64xf32>
    %cst_158 = arith.constant 1.000000e+00 : f32
    %460 = vector.broadcast %cst_158 : f32 to vector<2x64xf32>
    %461 = arith.addf %460, %459 : vector<2x64xf32>
    %462 = arith.divf %460, %461 : vector<2x64xf32>
    %463 = vector.extract_strided_slice %450 {offsets = [0, 128], sizes = [2, 64], strides = [1, 1]} : vector<2x256xf32> to vector<2x64xf32>
    %464 = math.tanh %463 : vector<2x64xf32>
    %465 = vector.extract_strided_slice %450 {offsets = [0, 192], sizes = [2, 64], strides = [1, 1]} : vector<2x256xf32> to vector<2x64xf32>
    %466 = arith.negf %465 : vector<2x64xf32>
    %467 = math.exp %466 : vector<2x64xf32>
    %cst_159 = arith.constant 1.000000e+00 : f32
    %468 = vector.broadcast %cst_159 : f32 to vector<2x64xf32>
    %469 = arith.addf %468, %467 : vector<2x64xf32>
    %470 = arith.divf %468, %469 : vector<2x64xf32>
    %471 = arith.mulf %462, %440 : vector<2x64xf32>
    %472 = arith.mulf %456, %464 : vector<2x64xf32>
    %473 = arith.addf %471, %472 : vector<2x64xf32>
    %474 = math.tanh %473 : vector<2x64xf32>
    %475 = arith.mulf %470, %474 : vector<2x64xf32>
    %476 = vector.extract_strided_slice %475 {offsets = [0, 0], sizes = [2, 32], strides = [1, 1]} : vector<2x64xf32> to vector<2x32xf32>
    %c6_160 = arith.constant 6 : index
    %c0_161 = arith.constant 0 : index
    %477 = vector.load %arg23[%c6_160, %c0_161] : memref<16x64xf32, #tpu.memory_space<vmem>>, vector<2x32xf32>
    tpu.vector_store %arg23[%c6_160, %c0_161], %476 {strides = array<i32>} : memref<16x64xf32, #tpu.memory_space<vmem>>, vector<2x32xf32>,
    %478 = vector.extract_strided_slice %475 {offsets = [0, 32], sizes = [2, 32], strides = [1, 1]} : vector<2x64xf32> to vector<2x32xf32>
    %c8_162 = arith.constant 8 : index
    %c32_163 = arith.constant 32 : index
    %479 = vector.load %arg23[%c8_162, %c32_163] : memref<16x64xf32, #tpu.memory_space<vmem>>, vector<2x32xf32>
    tpu.vector_store %arg23[%c8_162, %c32_163], %478 {strides = array<i32>} : memref<16x64xf32, #tpu.memory_space<vmem>>, vector<2x32xf32>,
    %c8_164 = arith.constant 8 : index
    %c0_165 = arith.constant 0 : index
    %480 = vector.load %arg22[%c8_164, %c0_165] : memref<16x256xf32, #tpu.memory_space<vmem>>, vector<2x256xf32>
    %481 = arith.truncf %475 : vector<2x64xf32> to vector<2x64xbf16>
    %cst_166 = arith.constant dense<0.000000e+00> : vector<2x256xf32>
    %482 = tpu.matmul %481, %345, %cst_166 {dimension_numbers = #tpu.dot_dimension_numbers<[1], [0], [0], [1], [0, 0, 1, 1], [], []>} : vector<2x64xbf16>, vector<64x256xbf16>, vector<2x256xf32> -> vector<2x256xf32>
    %483 = arith.addf %480, %482 : vector<2x256xf32>
    %484 = vector.extract_strided_slice %483 {offsets = [0, 0], sizes = [2, 64], strides = [1, 1]} : vector<2x256xf32> to vector<2x64xf32>
    %485 = arith.negf %484 : vector<2x64xf32>
    %486 = math.exp %485 : vector<2x64xf32>
    %cst_167 = arith.constant 1.000000e+00 : f32
    %487 = vector.broadcast %cst_167 : f32 to vector<2x64xf32>
    %488 = arith.addf %487, %486 : vector<2x64xf32>
    %489 = arith.divf %487, %488 : vector<2x64xf32>
    %490 = vector.extract_strided_slice %483 {offsets = [0, 64], sizes = [2, 64], strides = [1, 1]} : vector<2x256xf32> to vector<2x64xf32>
    %491 = arith.negf %490 : vector<2x64xf32>
    %492 = math.exp %491 : vector<2x64xf32>
    %cst_168 = arith.constant 1.000000e+00 : f32
    %493 = vector.broadcast %cst_168 : f32 to vector<2x64xf32>
    %494 = arith.addf %493, %492 : vector<2x64xf32>
    %495 = arith.divf %493, %494 : vector<2x64xf32>
    %496 = vector.extract_strided_slice %483 {offsets = [0, 128], sizes = [2, 64], strides = [1, 1]} : vector<2x256xf32> to vector<2x64xf32>
    %497 = math.tanh %496 : vector<2x64xf32>
    %498 = vector.extract_strided_slice %483 {offsets = [0, 192], sizes = [2, 64], strides = [1, 1]} : vector<2x256xf32> to vector<2x64xf32>
    %499 = arith.negf %498 : vector<2x64xf32>
    %500 = math.exp %499 : vector<2x64xf32>
    %cst_169 = arith.constant 1.000000e+00 : f32
    %501 = vector.broadcast %cst_169 : f32 to vector<2x64xf32>
    %502 = arith.addf %501, %500 : vector<2x64xf32>
    %503 = arith.divf %501, %502 : vector<2x64xf32>
    %504 = arith.mulf %495, %473 : vector<2x64xf32>
    %505 = arith.mulf %489, %497 : vector<2x64xf32>
    %506 = arith.addf %504, %505 : vector<2x64xf32>
    %507 = math.tanh %506 : vector<2x64xf32>
    %508 = arith.mulf %503, %507 : vector<2x64xf32>
    %509 = vector.extract_strided_slice %508 {offsets = [0, 0], sizes = [2, 32], strides = [1, 1]} : vector<2x64xf32> to vector<2x32xf32>
    %c8_170 = arith.constant 8 : index
    %c0_171 = arith.constant 0 : index
    %510 = vector.load %arg23[%c8_170, %c0_171] : memref<16x64xf32, #tpu.memory_space<vmem>>, vector<2x32xf32>
    tpu.vector_store %arg23[%c8_170, %c0_171], %509 {strides = array<i32>} : memref<16x64xf32, #tpu.memory_space<vmem>>, vector<2x32xf32>,
    %511 = vector.extract_strided_slice %508 {offsets = [0, 32], sizes = [2, 32], strides = [1, 1]} : vector<2x64xf32> to vector<2x32xf32>
    %c6_172 = arith.constant 6 : index
    %c32_173 = arith.constant 32 : index
    %512 = vector.load %arg23[%c6_172, %c32_173] : memref<16x64xf32, #tpu.memory_space<vmem>>, vector<2x32xf32>
    tpu.vector_store %arg23[%c6_172, %c32_173], %511 {strides = array<i32>} : memref<16x64xf32, #tpu.memory_space<vmem>>, vector<2x32xf32>,
    %c10_174 = arith.constant 10 : index
    %c0_175 = arith.constant 0 : index
    %513 = vector.load %arg22[%c10_174, %c0_175] : memref<16x256xf32, #tpu.memory_space<vmem>>, vector<2x256xf32>
    %514 = arith.truncf %508 : vector<2x64xf32> to vector<2x64xbf16>
    %cst_176 = arith.constant dense<0.000000e+00> : vector<2x256xf32>
    %515 = tpu.matmul %514, %345, %cst_176 {dimension_numbers = #tpu.dot_dimension_numbers<[1], [0], [0], [1], [0, 0, 1, 1], [], []>} : vector<2x64xbf16>, vector<64x256xbf16>, vector<2x256xf32> -> vector<2x256xf32>
    %516 = arith.addf %513, %515 : vector<2x256xf32>
    %517 = vector.extract_strided_slice %516 {offsets = [0, 0], sizes = [2, 64], strides = [1, 1]} : vector<2x256xf32> to vector<2x64xf32>
    %518 = arith.negf %517 : vector<2x64xf32>
    %519 = math.exp %518 : vector<2x64xf32>
    %cst_177 = arith.constant 1.000000e+00 : f32
    %520 = vector.broadcast %cst_177 : f32 to vector<2x64xf32>
    %521 = arith.addf %520, %519 : vector<2x64xf32>
    %522 = arith.divf %520, %521 : vector<2x64xf32>
    %523 = vector.extract_strided_slice %516 {offsets = [0, 64], sizes = [2, 64], strides = [1, 1]} : vector<2x256xf32> to vector<2x64xf32>
    %524 = arith.negf %523 : vector<2x64xf32>
    %525 = math.exp %524 : vector<2x64xf32>
    %cst_178 = arith.constant 1.000000e+00 : f32
    %526 = vector.broadcast %cst_178 : f32 to vector<2x64xf32>
    %527 = arith.addf %526, %525 : vector<2x64xf32>
    %528 = arith.divf %526, %527 : vector<2x64xf32>
    %529 = vector.extract_strided_slice %516 {offsets = [0, 128], sizes = [2, 64], strides = [1, 1]} : vector<2x256xf32> to vector<2x64xf32>
    %530 = math.tanh %529 : vector<2x64xf32>
    %531 = vector.extract_strided_slice %516 {offsets = [0, 192], sizes = [2, 64], strides = [1, 1]} : vector<2x256xf32> to vector<2x64xf32>
    %532 = arith.negf %531 : vector<2x64xf32>
    %533 = math.exp %532 : vector<2x64xf32>
    %cst_179 = arith.constant 1.000000e+00 : f32
    %534 = vector.broadcast %cst_179 : f32 to vector<2x64xf32>
    %535 = arith.addf %534, %533 : vector<2x64xf32>
    %536 = arith.divf %534, %535 : vector<2x64xf32>
    %537 = arith.mulf %528, %506 : vector<2x64xf32>
    %538 = arith.mulf %522, %530 : vector<2x64xf32>
    %539 = arith.addf %537, %538 : vector<2x64xf32>
    %540 = math.tanh %539 : vector<2x64xf32>
    %541 = arith.mulf %536, %540 : vector<2x64xf32>
    %542 = vector.extract_strided_slice %541 {offsets = [0, 0], sizes = [2, 32], strides = [1, 1]} : vector<2x64xf32> to vector<2x32xf32>
    %c10_180 = arith.constant 10 : index
    %c0_181 = arith.constant 0 : index
    %543 = vector.load %arg23[%c10_180, %c0_181] : memref<16x64xf32, #tpu.memory_space<vmem>>, vector<2x32xf32>
    tpu.vector_store %arg23[%c10_180, %c0_181], %542 {strides = array<i32>} : memref<16x64xf32, #tpu.memory_space<vmem>>, vector<2x32xf32>,
    %544 = vector.extract_strided_slice %541 {offsets = [0, 32], sizes = [2, 32], strides = [1, 1]} : vector<2x64xf32> to vector<2x32xf32>
    %c4_182 = arith.constant 4 : index
    %c32_183 = arith.constant 32 : index
    %545 = vector.load %arg23[%c4_182, %c32_183] : memref<16x64xf32, #tpu.memory_space<vmem>>, vector<2x32xf32>
    tpu.vector_store %arg23[%c4_182, %c32_183], %544 {strides = array<i32>} : memref<16x64xf32, #tpu.memory_space<vmem>>, vector<2x32xf32>,
    %c12_184 = arith.constant 12 : index
    %c0_185 = arith.constant 0 : index
    %546 = vector.load %arg22[%c12_184, %c0_185] : memref<16x256xf32, #tpu.memory_space<vmem>>, vector<2x256xf32>
    %547 = arith.truncf %541 : vector<2x64xf32> to vector<2x64xbf16>
    %cst_186 = arith.constant dense<0.000000e+00> : vector<2x256xf32>
    %548 = tpu.matmul %547, %345, %cst_186 {dimension_numbers = #tpu.dot_dimension_numbers<[1], [0], [0], [1], [0, 0, 1, 1], [], []>} : vector<2x64xbf16>, vector<64x256xbf16>, vector<2x256xf32> -> vector<2x256xf32>
    %549 = arith.addf %546, %548 : vector<2x256xf32>
    %550 = vector.extract_strided_slice %549 {offsets = [0, 0], sizes = [2, 64], strides = [1, 1]} : vector<2x256xf32> to vector<2x64xf32>
    %551 = arith.negf %550 : vector<2x64xf32>
    %552 = math.exp %551 : vector<2x64xf32>
    %cst_187 = arith.constant 1.000000e+00 : f32
    %553 = vector.broadcast %cst_187 : f32 to vector<2x64xf32>
    %554 = arith.addf %553, %552 : vector<2x64xf32>
    %555 = arith.divf %553, %554 : vector<2x64xf32>
    %556 = vector.extract_strided_slice %549 {offsets = [0, 64], sizes = [2, 64], strides = [1, 1]} : vector<2x256xf32> to vector<2x64xf32>
    %557 = arith.negf %556 : vector<2x64xf32>
    %558 = math.exp %557 : vector<2x64xf32>
    %cst_188 = arith.constant 1.000000e+00 : f32
    %559 = vector.broadcast %cst_188 : f32 to vector<2x64xf32>
    %560 = arith.addf %559, %558 : vector<2x64xf32>
    %561 = arith.divf %559, %560 : vector<2x64xf32>
    %562 = vector.extract_strided_slice %549 {offsets = [0, 128], sizes = [2, 64], strides = [1, 1]} : vector<2x256xf32> to vector<2x64xf32>
    %563 = math.tanh %562 : vector<2x64xf32>
    %564 = vector.extract_strided_slice %549 {offsets = [0, 192], sizes = [2, 64], strides = [1, 1]} : vector<2x256xf32> to vector<2x64xf32>
    %565 = arith.negf %564 : vector<2x64xf32>
    %566 = math.exp %565 : vector<2x64xf32>
    %cst_189 = arith.constant 1.000000e+00 : f32
    %567 = vector.broadcast %cst_189 : f32 to vector<2x64xf32>
    %568 = arith.addf %567, %566 : vector<2x64xf32>
    %569 = arith.divf %567, %568 : vector<2x64xf32>
    %570 = arith.mulf %561, %539 : vector<2x64xf32>
    %571 = arith.mulf %555, %563 : vector<2x64xf32>
    %572 = arith.addf %570, %571 : vector<2x64xf32>
    %573 = math.tanh %572 : vector<2x64xf32>
    %574 = arith.mulf %569, %573 : vector<2x64xf32>
    %575 = vector.extract_strided_slice %574 {offsets = [0, 0], sizes = [2, 32], strides = [1, 1]} : vector<2x64xf32> to vector<2x32xf32>
    %c12_190 = arith.constant 12 : index
    %c0_191 = arith.constant 0 : index
    %576 = vector.load %arg23[%c12_190, %c0_191] : memref<16x64xf32, #tpu.memory_space<vmem>>, vector<2x32xf32>
    tpu.vector_store %arg23[%c12_190, %c0_191], %575 {strides = array<i32>} : memref<16x64xf32, #tpu.memory_space<vmem>>, vector<2x32xf32>,
    %577 = vector.extract_strided_slice %574 {offsets = [0, 32], sizes = [2, 32], strides = [1, 1]} : vector<2x64xf32> to vector<2x32xf32>
    %c2_192 = arith.constant 2 : index
    %c32_193 = arith.constant 32 : index
    %578 = vector.load %arg23[%c2_192, %c32_193] : memref<16x64xf32, #tpu.memory_space<vmem>>, vector<2x32xf32>
    tpu.vector_store %arg23[%c2_192, %c32_193], %577 {strides = array<i32>} : memref<16x64xf32, #tpu.memory_space<vmem>>, vector<2x32xf32>,
    %c14_194 = arith.constant 14 : index
    %c0_195 = arith.constant 0 : index
    %579 = vector.load %arg22[%c14_194, %c0_195] : memref<16x256xf32, #tpu.memory_space<vmem>>, vector<2x256xf32>
    %580 = arith.truncf %574 : vector<2x64xf32> to vector<2x64xbf16>
    %cst_196 = arith.constant dense<0.000000e+00> : vector<2x256xf32>
    %581 = tpu.matmul %580, %345, %cst_196 {dimension_numbers = #tpu.dot_dimension_numbers<[1], [0], [0], [1], [0, 0, 1, 1], [], []>} : vector<2x64xbf16>, vector<64x256xbf16>, vector<2x256xf32> -> vector<2x256xf32>
    %582 = arith.addf %579, %581 : vector<2x256xf32>
    %583 = vector.extract_strided_slice %582 {offsets = [0, 0], sizes = [2, 64], strides = [1, 1]} : vector<2x256xf32> to vector<2x64xf32>
    %584 = arith.negf %583 : vector<2x64xf32>
    %585 = math.exp %584 : vector<2x64xf32>
    %cst_197 = arith.constant 1.000000e+00 : f32
    %586 = vector.broadcast %cst_197 : f32 to vector<2x64xf32>
    %587 = arith.addf %586, %585 : vector<2x64xf32>
    %588 = arith.divf %586, %587 : vector<2x64xf32>
    %589 = vector.extract_strided_slice %582 {offsets = [0, 64], sizes = [2, 64], strides = [1, 1]} : vector<2x256xf32> to vector<2x64xf32>
    %590 = arith.negf %589 : vector<2x64xf32>
    %591 = math.exp %590 : vector<2x64xf32>
    %cst_198 = arith.constant 1.000000e+00 : f32
    %592 = vector.broadcast %cst_198 : f32 to vector<2x64xf32>
    %593 = arith.addf %592, %591 : vector<2x64xf32>
    %594 = arith.divf %592, %593 : vector<2x64xf32>
    %595 = vector.extract_strided_slice %582 {offsets = [0, 128], sizes = [2, 64], strides = [1, 1]} : vector<2x256xf32> to vector<2x64xf32>
    %596 = math.tanh %595 : vector<2x64xf32>
    %597 = vector.extract_strided_slice %582 {offsets = [0, 192], sizes = [2, 64], strides = [1, 1]} : vector<2x256xf32> to vector<2x64xf32>
    %598 = arith.negf %597 : vector<2x64xf32>
    %599 = math.exp %598 : vector<2x64xf32>
    %cst_199 = arith.constant 1.000000e+00 : f32
    %600 = vector.broadcast %cst_199 : f32 to vector<2x64xf32>
    %601 = arith.addf %600, %599 : vector<2x64xf32>
    %602 = arith.divf %600, %601 : vector<2x64xf32>
    %603 = arith.mulf %594, %572 : vector<2x64xf32>
    %604 = arith.mulf %588, %596 : vector<2x64xf32>
    %605 = arith.addf %603, %604 : vector<2x64xf32>
    %606 = math.tanh %605 : vector<2x64xf32>
    %607 = arith.mulf %602, %606 : vector<2x64xf32>
    %608 = vector.extract_strided_slice %607 {offsets = [0, 0], sizes = [2, 32], strides = [1, 1]} : vector<2x64xf32> to vector<2x32xf32>
    %c14_200 = arith.constant 14 : index
    %c0_201 = arith.constant 0 : index
    %609 = vector.load %arg23[%c14_200, %c0_201] : memref<16x64xf32, #tpu.memory_space<vmem>>, vector<2x32xf32>
    tpu.vector_store %arg23[%c14_200, %c0_201], %608 {strides = array<i32>} : memref<16x64xf32, #tpu.memory_space<vmem>>, vector<2x32xf32>,
    %610 = vector.extract_strided_slice %607 {offsets = [0, 32], sizes = [2, 32], strides = [1, 1]} : vector<2x64xf32> to vector<2x32xf32>
    %c0_202 = arith.constant 0 : index
    %c32_203 = arith.constant 32 : index
    %611 = vector.load %arg23[%c0_202, %c32_203] : memref<16x64xf32, #tpu.memory_space<vmem>>, vector<2x32xf32>
    tpu.vector_store %arg23[%c0_202, %c32_203], %610 {strides = array<i32>} : memref<16x64xf32, #tpu.memory_space<vmem>>, vector<2x32xf32>,
    %c0_204 = arith.constant 0 : index
    %c0_205 = arith.constant 0 : index
    %612 = vector.load %arg23[%c0_204, %c0_205] : memref<16x64xf32, #tpu.memory_space<vmem>>, vector<16x64xf32>
    %613 = vector.extract_strided_slice %612 {offsets = [14, 0], sizes = [2, 64], strides = [1, 1]} : vector<16x64xf32> to vector<2x64xf32>
    %614 = arith.truncf %613 : vector<2x64xf32> to vector<2x64xbf16>
    %c0_206 = arith.constant 0 : index
    %c0_207 = arith.constant 0 : index
    %615 = vector.load %arg7[%c0_206, %c0_207] : memref<64x64xbf16, #tpu.memory_space<vmem>>, vector<64x64xbf16>
    %cst_208 = arith.constant dense<0.000000e+00> : vector<2x64xf32>
    %616 = tpu.matmul %614, %615, %cst_208 {dimension_numbers = #tpu.dot_dimension_numbers<[1], [0], [0], [1], [0, 0, 1, 1], [], []>} : vector<2x64xbf16>, vector<64x64xbf16>, vector<2x64xf32> -> vector<2x64xf32>
    %c0_209 = arith.constant 0 : index
    %c0_210 = arith.constant 0 : index
    %617 = vector.load %arg9[%c0_209, %c0_210] : memref<1x64xf32, #tpu.memory_space<vmem>>, vector<1x64xf32>
    %618 = vector.broadcast %617 : vector<1x64xf32> to vector<2x64xf32>
    %619 = arith.addf %616, %618 : vector<2x64xf32>
    %cst_211 = arith.constant 2.500000e-01 : f32
    %620 = vector.broadcast %cst_211 : f32 to vector<2x64xf32>
    %621 = arith.mulf %619, %620 : vector<2x64xf32>
    %622 = arith.truncf %612 : vector<16x64xf32> to vector<16x64xbf16>
    %c0_212 = arith.constant 0 : index
    %c0_213 = arith.constant 0 : index
    %623 = vector.load %arg8[%c0_212, %c0_213] : memref<64x128xbf16, #tpu.memory_space<vmem>>, vector<64x128xbf16>
    %cst_214 = arith.constant dense<0.000000e+00> : vector<16x128xf32>
    %624 = tpu.matmul %622, %623, %cst_214 {dimension_numbers = #tpu.dot_dimension_numbers<[1], [0], [0], [1], [0, 0, 1, 1], [], []>} : vector<16x64xbf16>, vector<64x128xbf16>, vector<16x128xf32> -> vector<16x128xf32>
    %c0_215 = arith.constant 0 : index
    %c0_216 = arith.constant 0 : index
    %625 = vector.load %arg10[%c0_215, %c0_216] : memref<1x128xf32, #tpu.memory_space<vmem>>, vector<1x128xf32>
    %626 = vector.broadcast %625 : vector<1x128xf32> to vector<16x128xf32>
    %627 = arith.addf %624, %626 : vector<16x128xf32>
    %628 = vector.extract_strided_slice %627 {offsets = [0, 0], sizes = [16, 64], strides = [1, 1]} : vector<16x128xf32> to vector<16x64xf32>
    %629 = vector.extract_strided_slice %627 {offsets = [0, 64], sizes = [16, 64], strides = [1, 1]} : vector<16x128xf32> to vector<16x64xf32>
    %630 = tpu.concatenate %621, %621, %621, %621, %621, %621, %621, %621 in 0 : vector<2x64xf32>, vector<2x64xf32>, vector<2x64xf32>, vector<2x64xf32>, vector<2x64xf32>, vector<2x64xf32>, vector<2x64xf32>, vector<2x64xf32> -> vector<16x64xf32>
    %631 = arith.mulf %630, %628 : vector<16x64xf32>
    %c0_217 = arith.constant 0 : index
    %c0_218 = arith.constant 0 : index
    %632 = vector.load %arg11[%c0_217, %c0_218] : memref<64x4xf32, #tpu.memory_space<vmem>>, vector<64x4xf32>
    %cst_219 = arith.constant dense<0.000000e+00> : vector<16x4xf32>
    %633 = tpu.matmul %631, %632, %cst_219 {dimension_numbers = #tpu.dot_dimension_numbers<[1], [0], [0], [1], [0, 0, 1, 1], [], []>} : vector<16x64xf32>, vector<64x4xf32>, vector<16x4xf32> -> vector<16x4xf32>
    %634 = vector.extract_strided_slice %633 {offsets = [0, 0], sizes = [2, 4], strides = [1, 1]} : vector<16x4xf32> to vector<2x4xf32>
    %635 = vector.extract_strided_slice %633 {offsets = [2, 0], sizes = [2, 4], strides = [1, 1]} : vector<16x4xf32> to vector<2x4xf32>
    %636 = arith.maximumf %634, %635 : vector<2x4xf32>
    %637 = vector.extract_strided_slice %633 {offsets = [4, 0], sizes = [2, 4], strides = [1, 1]} : vector<16x4xf32> to vector<2x4xf32>
    %638 = arith.maximumf %636, %637 : vector<2x4xf32>
    %639 = vector.extract_strided_slice %633 {offsets = [6, 0], sizes = [2, 4], strides = [1, 1]} : vector<16x4xf32> to vector<2x4xf32>
    %640 = arith.maximumf %638, %639 : vector<2x4xf32>
    %641 = vector.extract_strided_slice %633 {offsets = [8, 0], sizes = [2, 4], strides = [1, 1]} : vector<16x4xf32> to vector<2x4xf32>
    %642 = arith.maximumf %640, %641 : vector<2x4xf32>
    %643 = vector.extract_strided_slice %633 {offsets = [10, 0], sizes = [2, 4], strides = [1, 1]} : vector<16x4xf32> to vector<2x4xf32>
    %644 = arith.maximumf %642, %643 : vector<2x4xf32>
    %645 = vector.extract_strided_slice %633 {offsets = [12, 0], sizes = [2, 4], strides = [1, 1]} : vector<16x4xf32> to vector<2x4xf32>
    %646 = arith.maximumf %644, %645 : vector<2x4xf32>
    %647 = vector.extract_strided_slice %633 {offsets = [14, 0], sizes = [2, 4], strides = [1, 1]} : vector<16x4xf32> to vector<2x4xf32>
    %648 = arith.maximumf %646, %647 : vector<2x4xf32>
    %649 = tpu.concatenate %648, %648, %648, %648, %648, %648, %648, %648 in 0 : vector<2x4xf32>, vector<2x4xf32>, vector<2x4xf32>, vector<2x4xf32>, vector<2x4xf32>, vector<2x4xf32>, vector<2x4xf32>, vector<2x4xf32> -> vector<16x4xf32>
    %650 = arith.subf %633, %649 : vector<16x4xf32>
    %651 = math.exp %650 : vector<16x4xf32>
    %652 = vector.extract_strided_slice %651 {offsets = [0, 0], sizes = [2, 4], strides = [1, 1]} : vector<16x4xf32> to vector<2x4xf32>
    %653 = vector.extract_strided_slice %651 {offsets = [2, 0], sizes = [2, 4], strides = [1, 1]} : vector<16x4xf32> to vector<2x4xf32>
    %654 = arith.addf %652, %653 : vector<2x4xf32>
    %655 = vector.extract_strided_slice %651 {offsets = [4, 0], sizes = [2, 4], strides = [1, 1]} : vector<16x4xf32> to vector<2x4xf32>
    %656 = arith.addf %654, %655 : vector<2x4xf32>
    %657 = vector.extract_strided_slice %651 {offsets = [6, 0], sizes = [2, 4], strides = [1, 1]} : vector<16x4xf32> to vector<2x4xf32>
    %658 = arith.addf %656, %657 : vector<2x4xf32>
    %659 = vector.extract_strided_slice %651 {offsets = [8, 0], sizes = [2, 4], strides = [1, 1]} : vector<16x4xf32> to vector<2x4xf32>
    %660 = arith.addf %658, %659 : vector<2x4xf32>
    %661 = vector.extract_strided_slice %651 {offsets = [10, 0], sizes = [2, 4], strides = [1, 1]} : vector<16x4xf32> to vector<2x4xf32>
    %662 = arith.addf %660, %661 : vector<2x4xf32>
    %663 = vector.extract_strided_slice %651 {offsets = [12, 0], sizes = [2, 4], strides = [1, 1]} : vector<16x4xf32> to vector<2x4xf32>
    %664 = arith.addf %662, %663 : vector<2x4xf32>
    %665 = vector.extract_strided_slice %651 {offsets = [14, 0], sizes = [2, 4], strides = [1, 1]} : vector<16x4xf32> to vector<2x4xf32>
    %666 = arith.addf %664, %665 : vector<2x4xf32>
    %cst_220 = arith.constant 1.000000e+00 : f32
    %667 = vector.broadcast %cst_220 : f32 to vector<2x4xf32>
    %668 = arith.divf %667, %666 : vector<2x4xf32>
    %669 = tpu.concatenate %668, %668, %668, %668, %668, %668, %668, %668 in 0 : vector<2x4xf32>, vector<2x4xf32>, vector<2x4xf32>, vector<2x4xf32>, vector<2x4xf32>, vector<2x4xf32>, vector<2x4xf32>, vector<2x4xf32> -> vector<16x4xf32>
    %670 = arith.mulf %651, %669 : vector<16x4xf32>
    %c0_221 = arith.constant 0 : index
    %c0_222 = arith.constant 0 : index
    %671 = vector.load %arg12[%c0_221, %c0_222] : memref<4x64xf32, #tpu.memory_space<vmem>>, vector<4x64xf32>
    %cst_223 = arith.constant dense<0.000000e+00> : vector<16x64xf32>
    %672 = tpu.matmul %670, %671, %cst_223 {dimension_numbers = #tpu.dot_dimension_numbers<[1], [0], [0], [1], [0, 0, 1, 1], [], []>} : vector<16x4xf32>, vector<4x64xf32>, vector<16x64xf32> -> vector<16x64xf32>
    %673 = arith.mulf %672, %629 : vector<16x64xf32>
    %674 = vector.extract_strided_slice %673 {offsets = [0, 0], sizes = [2, 64], strides = [1, 1]} : vector<16x64xf32> to vector<2x64xf32>
    %675 = vector.extract_strided_slice %673 {offsets = [2, 0], sizes = [2, 64], strides = [1, 1]} : vector<16x64xf32> to vector<2x64xf32>
    %676 = arith.addf %674, %675 : vector<2x64xf32>
    %677 = vector.extract_strided_slice %673 {offsets = [4, 0], sizes = [2, 64], strides = [1, 1]} : vector<16x64xf32> to vector<2x64xf32>
    %678 = arith.addf %676, %677 : vector<2x64xf32>
    %679 = vector.extract_strided_slice %673 {offsets = [6, 0], sizes = [2, 64], strides = [1, 1]} : vector<16x64xf32> to vector<2x64xf32>
    %680 = arith.addf %678, %679 : vector<2x64xf32>
    %681 = vector.extract_strided_slice %673 {offsets = [8, 0], sizes = [2, 64], strides = [1, 1]} : vector<16x64xf32> to vector<2x64xf32>
    %682 = arith.addf %680, %681 : vector<2x64xf32>
    %683 = vector.extract_strided_slice %673 {offsets = [10, 0], sizes = [2, 64], strides = [1, 1]} : vector<16x64xf32> to vector<2x64xf32>
    %684 = arith.addf %682, %683 : vector<2x64xf32>
    %685 = vector.extract_strided_slice %673 {offsets = [12, 0], sizes = [2, 64], strides = [1, 1]} : vector<16x64xf32> to vector<2x64xf32>
    %686 = arith.addf %684, %685 : vector<2x64xf32>
    %687 = vector.extract_strided_slice %673 {offsets = [14, 0], sizes = [2, 64], strides = [1, 1]} : vector<16x64xf32> to vector<2x64xf32>
    %688 = arith.addf %686, %687 : vector<2x64xf32>
    %689 = arith.truncf %688 : vector<2x64xf32> to vector<2x64xbf16>
    %c0_224 = arith.constant 0 : index
    %c0_225 = arith.constant 0 : index
    %690 = vector.load %arg13[%c0_224, %c0_225] : memref<64x64xbf16, #tpu.memory_space<vmem>>, vector<64x64xbf16>
    %cst_226 = arith.constant dense<0.000000e+00> : vector<2x64xf32>
    %691 = tpu.matmul %689, %690, %cst_226 {dimension_numbers = #tpu.dot_dimension_numbers<[1], [0], [0], [1], [0, 0, 1, 1], [], []>} : vector<2x64xbf16>, vector<64x64xbf16>, vector<2x64xf32> -> vector<2x64xf32>
    %c0_227 = arith.constant 0 : index
    %c0_228 = arith.constant 0 : index
    %692 = vector.load %arg14[%c0_227, %c0_228] : memref<1x64xf32, #tpu.memory_space<vmem>>, vector<1x64xf32>
    %693 = vector.broadcast %692 : vector<1x64xf32> to vector<2x64xf32>
    %694 = arith.addf %691, %693 : vector<2x64xf32>
    %cst_229 = arith.constant dense<0.000000e+00> : vector<2xf32>
    %695 = vector.multi_reduction <add>, %694, %cst_229 [1] : vector<2x64xf32> to vector<2xf32>
    %696 = vector.shape_cast %695 : vector<2xf32> to vector<2x1xf32>
    %cst_230 = arith.constant 6.400000e+01 : f32
    %697 = vector.broadcast %cst_230 : f32 to vector<2x1xf32>
    %698 = arith.divf %696, %697 : vector<2x1xf32>
    %699 = vector.broadcast %698 : vector<2x1xf32> to vector<2x64xf32>
    %700 = arith.subf %694, %699 : vector<2x64xf32>
    %701 = arith.mulf %700, %700 : vector<2x64xf32>
    %cst_231 = arith.constant dense<0.000000e+00> : vector<2xf32>
    %702 = vector.multi_reduction <add>, %701, %cst_231 [1] : vector<2x64xf32> to vector<2xf32>
    %703 = vector.shape_cast %702 : vector<2xf32> to vector<2x1xf32>
    %cst_232 = arith.constant 6.400000e+01 : f32
    %704 = vector.broadcast %cst_232 : f32 to vector<2x1xf32>
    %705 = arith.divf %703, %704 : vector<2x1xf32>
    %706 = vector.broadcast %698 : vector<2x1xf32> to vector<2x64xf32>
    %707 = arith.subf %694, %706 : vector<2x64xf32>
    %cst_233 = arith.constant 9.99999974E-6 : f32
    %708 = vector.broadcast %cst_233 : f32 to vector<2x1xf32>
    %709 = arith.addf %705, %708 : vector<2x1xf32>
    %710 = math.rsqrt %709 : vector<2x1xf32>
    %711 = vector.broadcast %710 : vector<2x1xf32> to vector<2x64xf32>
    %712 = arith.mulf %707, %711 : vector<2x64xf32>
    %c0_234 = arith.constant 0 : index
    %c0_235 = arith.constant 0 : index
    %713 = vector.load %arg15[%c0_234, %c0_235] : memref<1x64xf32, #tpu.memory_space<vmem>>, vector<1x64xf32>
    %714 = vector.broadcast %713 : vector<1x64xf32> to vector<2x64xf32>
    %715 = arith.mulf %712, %714 : vector<2x64xf32>
    %c0_236 = arith.constant 0 : index
    %c0_237 = arith.constant 0 : index
    %716 = vector.load %arg16[%c0_236, %c0_237] : memref<1x64xf32, #tpu.memory_space<vmem>>, vector<1x64xf32>
    %717 = vector.broadcast %716 : vector<1x64xf32> to vector<2x64xf32>
    %718 = arith.addf %715, %717 : vector<2x64xf32>
    %719 = arith.truncf %718 : vector<2x64xf32> to vector<2x64xbf16>
    %c0_238 = arith.constant 0 : index
    %c0_239 = arith.constant 0 : index
    %720 = vector.load %arg17[%c0_238, %c0_239] : memref<64x32xbf16, #tpu.memory_space<vmem>>, vector<64x32xbf16>
    %cst_240 = arith.constant dense<0.000000e+00> : vector<2x32xf32>
    %721 = tpu.matmul %719, %720, %cst_240 {dimension_numbers = #tpu.dot_dimension_numbers<[1], [0], [0], [1], [0, 0, 1, 1], [], []>} : vector<2x64xbf16>, vector<64x32xbf16>, vector<2x32xf32> -> vector<2x32xf32>
    %c0_241 = arith.constant 0 : index
    %c0_242 = arith.constant 0 : index
    %722 = vector.load %arg18[%c0_241, %c0_242] : memref<1x32xf32, #tpu.memory_space<vmem>>, vector<1x32xf32>
    %723 = vector.broadcast %722 : vector<1x32xf32> to vector<2x32xf32>
    %724 = arith.addf %721, %723 : vector<2x32xf32>
    %cst_243 = arith.constant 0.000000e+00 : f32
    %725 = vector.broadcast %cst_243 : f32 to vector<2x32xf32>
    %726 = arith.maximumf %724, %725 : vector<2x32xf32>
    %727 = arith.truncf %726 : vector<2x32xf32> to vector<2x32xbf16>
    %c0_244 = arith.constant 0 : index
    %c0_245 = arith.constant 0 : index
    %728 = vector.load %arg19[%c0_244, %c0_245] : memref<32x8xbf16, #tpu.memory_space<vmem>>, vector<32x8xbf16>
    %cst_246 = arith.constant dense<0.000000e+00> : vector<2x8xf32>
    %729 = tpu.matmul %727, %728, %cst_246 {dimension_numbers = #tpu.dot_dimension_numbers<[1], [0], [0], [1], [0, 0, 1, 1], [], []>} : vector<2x32xbf16>, vector<32x8xbf16>, vector<2x8xf32> -> vector<2x8xf32>
    %c0_247 = arith.constant 0 : index
    %c0_248 = arith.constant 0 : index
    %730 = vector.load %arg20[%c0_247, %c0_248] : memref<1x8xf32, #tpu.memory_space<vmem>>, vector<1x8xf32>
    %731 = vector.broadcast %730 : vector<1x8xf32> to vector<2x8xf32>
    %732 = arith.addf %729, %731 : vector<2x8xf32>
    %c0_249 = arith.constant 0 : index
    %c0_250 = arith.constant 0 : index
    %733 = vector.load %arg21[%c0_249, %c0_250] : memref<2x8xf32, #tpu.memory_space<vmem>>, vector<2x8xf32>
    tpu.vector_store %arg21[%c0_249, %c0_250], %732 {strides = array<i32>} : memref<2x8xf32, #tpu.memory_space<vmem>>, vector<2x8xf32>,
    return
  }
}

</mosaic_0001>

<bundles_post_ra>
// kernel: super_lstm_forward.1
= control target key start
LH: loop header
LB: loop body
LE: loop exit
PB: predicated region body
PF: predicated region fallthrough
CT: control target
= control target key end

     0   :  { %s4126_s0 = inlined_call_operand.vmem [shape: f32[16,16], index: 0, kind: input, shape index: {}]   ;;  %s4127_s1 = inlined_call_operand.vmem [shape: bf16[16,512], index: 1, kind: input, shape index: {}]   ;;  %s4128_s2 = inlined_call_operand.vmem [shape: f32[1,512], index: 2, kind: input, shape index: {}]   ;;  %s4129_s3 = inlined_call_operand.hbm [shape: bf16[64,256], index: 3, kind: input, shape index: {}]   ;;  %s4130_s4 = inlined_call_operand.vmem [shape: bf16[64,512], index: 4, kind: input, shape index: {}]   ;;  %s4131_s5 = inlined_call_operand.vmem [shape: f32[1,512], index: 5, kind: input, shape index: {}]   ;;  %s4132_s6 = inlined_call_operand.hbm [shape: bf16[64,256], index: 6, kind: input, shape index: {}]   ;;  %s4133_s7 = inlined_call_operand.hbm [shape: bf16[64,64], index: 7, kind: input, shape index: {}]   ;;  %s4134_s8 = inlined_call_operand.hbm [shape: bf16[64,128], index: 8, kind: input, shape index: {}]   ;;  %s4135_s9 = inlined_call_operand.vmem [shape: f32[1,64], index: 9, kind: input, shape index: {}]   ;;  %s4136_s10 = inlined_call_operand.vmem [shape: f32[1,128], index: 10, kind: input, shape index: {}]   ;;  %s4137_s11 = inlined_call_operand.vmem [shape: f32[64,4], index: 11, kind: input, shape index: {}]   ;;  %s4138_s12 = inlined_call_operand.vmem [shape: f32[4,64], index: 12, kind: input, shape index: {}]   ;;  %s4139_s13 = inlined_call_operand.hbm [shape: bf16[64,64], index: 13, kind: input, shape index: {}]   ;;  %s4140_s14 = inlined_call_operand.vmem [shape: f32[1,64], index: 14, kind: input, shape index: {}]   ;;  %s4141_s15 = inlined_call_operand.vmem [shape: f32[1,64], index: 15, kind: input, shape index: {}]   ;;  %s4142_s16 = inlined_call_operand.vmem [shape: f32[1,64], index: 16, kind: input, shape index: {}]   ;;  %s4143_s17 = inlined_call_operand.vmem [shape: bf16[64,32], index: 17, kind: input, shape index: {}]   ;;  %s4144_s18 = inlined_call_operand.vmem [shape: f32[1,32], index: 18, kind: input, shape index: {}]   ;;  %s4145_s19 = inlined_call_operand.vmem [shape: bf16[32,8], index: 19, kind: input, shape index: {}]   ;;  %s4146_s20 = inlined_call_operand.vmem [shape: f32[1,8], index: 20, kind: input, shape index: {}]   ;;  %s4147_s21 = inlined_call_operand.hbm [shape: f32[2,8], index: 21, kind: output, shape index: {}]  }
   0x1   :  { %4151 = sst [smem:[#allocation18_spill]] %s4126_s0 }
   0x2   :  { %4152 = sst [smem:[#allocation19_spill]] %s4127_s1 }
   0x3   :  { %4153 = sst [smem:[#allocation20_spill]] %s4128_s2 }
   0x4   :  { %4154 = sst [smem:[#allocation21_spill]] %s4129_s3 }
   0x5   :  { %4155 = sst [smem:[#allocation22_spill]] %s4130_s4 }
   0x6   :  { %4156 = sst [smem:[#allocation23_spill]] %s4131_s5 }
   0x7   :  { %4157 = sst [smem:[#allocation24_spill]] %s4147_s21 }
   0x8   :  { %26 = vsyncpa [#allocation5], 0 }
   0x9   :  { %27 = vsyncpa [#allocation8], 0 }
   0xa   :  { %28 = vsyncpa [#allocation11], 0 }
   0xb   :  { %29 = vsyncpa [#allocation6], 0  ;;  %s57_s26 = sshll.u32 %s4132_s6, 4  ;;  %s3416_s27 = smov [#allocation7]   ;;  %s58_s26 = int_to_ptr.hbm [resolvable:$true] %s57_s26 }
   0xc   :  { %s59_s3 = sshll.u32 %s3416_s27, 4  ;;  %s3417_s28 = smov 128   ;;  %s60_s3 = int_to_ptr.vmem [resolvable:$true] %s59_s3 }
   0xd   :  { %s3418_s29 = smov 8   ;;  %s83_s30 = sshll.u32 %s4134_s8, 4  ;;  %s84_s30 = int_to_ptr.hbm [resolvable:$true] %s83_s30 }
   0xe   :  { %65 = dma.hbm_to_vmem [thread:$0]  %s58_s26, 1024, %s60_s3, [#allocation8], %s3417_s28, %s3417_s28, %s3418_s29  }
   0xf   :  { %s3419_s5 = smov [#allocation10]   ;;  %s4158_s24 = sld [smem:[#allocation21_spill]] }
  0x10   :  { %s85_s22 = sshll.u32 %s3419_s5, 4  ;;  %s3420_s6 = smov 64   ;;  %s86_s22 = int_to_ptr.vmem [resolvable:$true] %s85_s22 }
  0x11   :  { %s3421_s2 = smov 4   ;;  %s70_s27 = sshll.u32 %s4133_s7, 4  ;;  %s71_s27 = int_to_ptr.hbm [resolvable:$true] %s70_s27 }
  0x12   :  { %91 = dma.hbm_to_vmem [thread:$0]  %s84_s30, 512, %s86_s22, [#allocation11], %s3420_s6, %s3420_s6, %s3421_s2  }
  0x13   :  { %s3422_s3 = smov [#allocation4]   ;;  %s3423_s0 = smov [#allocation9]  }
  0x14   :  { %s42_s8 = sshll.u32 %s3422_s3, 4  ;;  %s72_s4 = sshll.u32 %s3423_s0, 4  ;;  %s43_s8 = int_to_ptr.vmem [resolvable:$true] %s42_s8  ;;  %s73_s4 = int_to_ptr.vmem [resolvable:$true] %s72_s4 }
  0x15   :  { %s40_s21 = sshll.u32 %s4158_s24, 4  ;;  %s104_s1 = sshll.u32 %s4139_s13, 4  ;;  %s41_s21 = int_to_ptr.hbm [resolvable:$true] %s40_s21  ;;  %s105_s1 = int_to_ptr.hbm [resolvable:$true] %s104_s1 }
  0x16   :  { %48 = dma.hbm_to_vmem [thread:$0]  %s41_s21, 1024, %s43_s8, [#allocation5], %s3417_s28, %s3417_s28, %s3418_s29  }
  0x17   :  { %78 = dma.hbm_to_vmem [thread:$0]  %s71_s27, 512, %s73_s4, [#allocation8], %s3420_s6, %s3420_s6, %s3421_s2  }
  0x18   :  { %s3424_s30 = smov [#allocation12]  }
  0x19   :  { %s106_s22 = sshll.u32 %s3424_s30, 4  ;;  %s107_s22 = int_to_ptr.vmem [resolvable:$true] %s106_s22 }
  0x1a   :  { %112 = dma.hbm_to_vmem [thread:$0]  %s105_s1, 512, %s107_s22, [#allocation11], %s3420_s6, %s3420_s6, %s3421_s2  }
  0x1b   :  { %3408 = dma.done.wait [#allocation5], 1024  }
  0x1c   :  { %3409 = vsyncadd [#allocation5], 4294966272 }
  0x1d   :  { %3410 = dma.done.wait [#allocation8], 1536  }
  0x1e   :  { %3411 = vsyncadd [#allocation8], 4294965760 }
  0x1f   :  { %3412 = dma.done.wait [#allocation11], 1024  }
  0x20   :  { %3413 = vsyncadd [#allocation11], 4294966272  ;;  %s4159_s13 = sld [smem:[#allocation19_spill]]  ;;  %vm185_vm0 = vcmask 130048   ;;  %v2741_v11 = vld [vmem:[#allocation4 + $0x30] sm:$0xf] }
  0x21   :  { %s4160_s23 = sld [smem:[#allocation18_spill]]  ;;  %v3000_v13 = vld [vmem:[#allocation4 + $0x34] sm:$0xf0]  ;;  %v2733_v18 = vld [vmem:[#allocation4 + $0x20] sm:$0xf]  ;;  %v3425_v39 = vmov 0  }
  0x22   :  { %v3589_v16 = vor.u32 %v3000_v13, %v2741_v11  ;;  %v2998_v19 = vld [vmem:[#allocation4 + $0x24] sm:$0xf0]  ;;  %v2999_v20 = vld [vmem:[#allocation4 + $0x34] sm:$0xf]  ;;  %v2743_v21 = vld [vmem:[#allocation4 + $0x38] sm:$0xf0] }
  0x23   :  { %v3592_v22 = vor.u32 %v2999_v20, %v2743_v21  ;;  %v2997_v23 = vld [vmem:[#allocation4 + $0x24] sm:$0xf]  ;;  %v2735_v24 = vld [vmem:[#allocation4 + $0x28] sm:$0xf0]  ;;  %v3597_v25 = vor.u32 %v2998_v19, %v2733_v18  ;;  %v2725_v26 = vld [vmem:[#allocation4 + $0x10] sm:$0xf] }
  0x24   :  { %v2996_v27 = vld [vmem:[#allocation4 + $0x14] sm:$0xf0]  ;;  %v3600_v28 = vor.u32 %v2997_v23, %v2735_v24  ;;  %v2995_v29 = vld [vmem:[#allocation4 + $0x14] sm:$0xf]  ;;  %v2727_v30 = vld [vmem:[#allocation4 + $0x18] sm:$0xf0] }
  0x25   :  { %v3606_v31 = vor.u32 %v2996_v27, %v2725_v26  ;;  %v2717_v32 = vld [vmem:[#allocation4] sm:$0xf]  ;;  %v3609_v33 = vor.u32 %v2995_v29, %v2727_v30  ;;  %v2994_v34 = vld [vmem:[#allocation4 + $0x4] sm:$0xf0]  ;;  %v2993_v35 = vld [vmem:[#allocation4 + $0x4] sm:$0xf] }
  0x26   :  { %v2697_v0 = vld [vmem:[%s4159_s13] sm:$0xf]  ;;  %v2991_v1 = vld [vmem:[%s4159_s13 + $0xc] sm:$0xf0]  ;;  %v2705_v2 = vld [vmem:[%s4159_s13 + $0x8] sm:$0xf]  ;;  %v3614_v37 = vor.u32 %v2994_v34, %v2717_v32 }
  0x27   :  { %v2698_v3 = vor.u32 %v2991_v1, %v2697_v0  ;;  %v2992_v4 = vld [vmem:[%s4159_s13 + $0x14] sm:$0xf0]  ;;  %v2990_v5 = vld [vmem:[%s4159_s13 + $0xc] sm:$0xf]  ;;  %v2707_v6 = vld [vmem:[%s4159_s13 + $0x18] sm:$0xf0] }
  0x28   :  { %v2706_v7 = vor.u32 %v2992_v4, %v2705_v2  ;;  %v2710_v8 = vor.u32 %v2990_v5, %v2707_v6  ;;  %v148_v9 = vld [vmem:[%s4160_s23] sm:$0xff]  ;;  %v149_v10 = vld [vmem:[%s4160_s23 + $0x8] sm:$0xff]  ;;  %v2699_v15 = vld [vmem:[%s4159_s13 + $0x10] sm:$0xf0]  ;;  %s4161_s24 = sld [smem:[#allocation20_spill]]  ;;  %vm339_vm9 = vcmask 523264  }
  0x29   :  { %196 = vmatpush.bf16.msra.mxu0 %v2698_v3  ;;  %v150_v12 = vpack.c.bf16 %v149_v10, %v148_v9  ;;  %v2989_v14 = vld [vmem:[%s4159_s13 + $0x4] sm:$0xf]  ;;  %v2719_v36 = vld [vmem:[#allocation4 + $0x8] sm:$0xf0]  ;;  %s4162_s26 = sld [smem:[#allocation22_spill]] }
  0x2a   :  { %224 = vmatpush.bf16.msra.mxu2 %v2706_v7  ;;  %238 = vmatpush.bf16.msra.mxu3 %v2710_v8  ;;  %v2702_v17 = vor.u32 %v2989_v14, %v2699_v15  ;;  %v3617_v38 = vor.u32 %v2993_v35, %v2719_v36  ;;  %s4163_s22 = sld [smem:[#allocation23_spill]] }
  0x2b   :  { %s4164_s7 = sld [smem:[#allocation24_spill]] }
  0x2c   :  { %2711 = vmatmul.msk.bf16.vlgmr.msra.gmra.mxu0 %vm185_vm0, %v150_v12  ;;  %210 = vmatpush.bf16.msra.mxu1 %v2702_v17 }
  0x2d   :  { %2713 = vmatmul.msk.bf16.vlgmr.msra.gmra.mxu2 %vm185_vm0, %v150_v12  ;;  %2714 = vmatmul.msk.bf16.vlgmr.msra.gmra.mxu3 %vm185_vm0, %v150_v12 }
  0x2e   :  { %347 = vmatpush.bf16.msrb.mxu0 %v3589_v16  ;;  %440 = vmatpush.bf16.msrb.mxu2 %v3589_v16  ;;  %v155_v41 = vld [vmem:[%s4161_s24] sm:$0xf] }
  0x2f   :  { %2712 = vmatmul.msk.bf16.vlgmr.msra.gmra.mxu1 %vm185_vm0, %v150_v12  ;;  %453 = vmatpush.bf16.msrb.mxu3 %v3592_v22  ;;  %v159_v43 = vperm.slane %v155_v41, 2  ;;  %v157_v44 = vperm.slane %v155_v41, 0  ;;  %v160_v45 = vperm.slane %v155_v41, 3  ;;  %v158_v52 = vperm.slane %v155_v41, 1 }
  0x30   :  { %360 = vmatpush.bf16.msrb.mxu1 %v3592_v22 }
  0x32   :  { %348 = vmatpush.bf16.msrb.mxu0 %v3597_v25  ;;  %441 = vmatpush.bf16.msrb.mxu2 %v3597_v25 }
  0x33   :  { %454 = vmatpush.bf16.msrb.mxu3 %v3600_v28 }
  0x34   :  { %361 = vmatpush.bf16.msrb.mxu1 %v3600_v28 }
  0x36   :  { %349 = vmatpush.bf16.msrb.mxu0 %v3606_v31  ;;  %442 = vmatpush.bf16.msrb.mxu2 %v3606_v31 }
  0x37   :  { %455 = vmatpush.bf16.msrb.mxu3 %v3609_v33 }
  0x38   :  { %362 = vmatpush.bf16.msrb.mxu1 %v3609_v33 }
  0x3a   :  { %350 = vmatpush.bf16.msrb.mxu0 %v3614_v37  ;;  %443 = vmatpush.bf16.msrb.mxu2 %v3614_v37 }
  0x3b   :  { %456 = vmatpush.bf16.msrb.mxu3 %v3617_v38 }
  0x3c   :  { %363 = vmatpush.bf16.msrb.mxu1 %v3617_v38 }
  0x3d   :  { %351 = vmatmul.bf16.vlgmr.msrb.gmra.mxu0 %v3425_v39 }
  0x3e   :  { %543 = vmatpush.bf16.msra.mxu0 %v3589_v16  ;;  %646 = vmatpush.bf16.msra.mxu2 %v3589_v16 }
  0x3f   :  { %659 = vmatpush.bf16.msra.mxu3 %v3592_v22  ;;  %364 = vmatmul.bf16.vlgmr.msrb.gmra.mxu1 %v3425_v39 }
  0x40   :  { %556 = vmatpush.bf16.msra.mxu1 %v3592_v22 }
  0x42   :  { %544 = vmatpush.bf16.msra.mxu0 %v3597_v25  ;;  %647 = vmatpush.bf16.msra.mxu2 %v3597_v25 }
  0x43   :  { %660 = vmatpush.bf16.msra.mxu3 %v3600_v28 }
  0x44   :  { %557 = vmatpush.bf16.msra.mxu1 %v3600_v28 }
  0x46   :  { %545 = vmatpush.bf16.msra.mxu0 %v3606_v31  ;;  %648 = vmatpush.bf16.msra.mxu2 %v3606_v31 }
  0x47   :  { %661 = vmatpush.bf16.msra.mxu3 %v3609_v33 }
  0x48   :  { %558 = vmatpush.bf16.msra.mxu1 %v3609_v33 }
  0x4a   :  { %546 = vmatpush.bf16.msra.mxu0 %v3614_v37  ;;  %649 = vmatpush.bf16.msra.mxu2 %v3614_v37 }
  0x4b   :  { %662 = vmatpush.bf16.msra.mxu3 %v3617_v38 }
  0x4c   :  { %559 = vmatpush.bf16.msra.mxu1 %v3617_v38 }
  0x4e   :  { %749 = vmatpush.bf16.msrb.mxu0 %v3589_v16 }
  0x50   :  { %762 = vmatpush.bf16.msrb.mxu1 %v3592_v22 }
  0x52   :  { %750 = vmatpush.bf16.msrb.mxu0 %v3597_v25 }
  0x54   :  { %763 = vmatpush.bf16.msrb.mxu1 %v3600_v28 }
  0x56   :  { %751 = vmatpush.bf16.msrb.mxu0 %v3606_v31 }
  0x58   :  { %764 = vmatpush.bf16.msrb.mxu1 %v3609_v33 }
  0x5a   :  { %752 = vmatpush.bf16.msrb.mxu0 %v3614_v37 }
  0x5c   :  { %765 = vmatpush.bf16.msrb.mxu1 %v3617_v38 }
  0xa9   :  { %v198_v40 = vpop.f32.mrf.mxu0 }
  0xaa   :  { %v199_v4 = vadd.f32 %v198_v40, %v157_v44 }
  0xac   :  { %v212_v42 = vpop.f32.mrf.mxu1 }
  0xad   :  { %v213_v1 = vadd.f32 %v212_v42, %v158_v52 }
  0xb0   :  { %v226_v46 = vpop.f32.mrf.mxu2  ;;  %v240_v47 = vpop.f32.mrf.mxu3 }
  0xb1   :  { %v227_v48 = vadd.f32 %v226_v46, %v159_v43  ;;  %v241_v49 = vadd.f32 %v240_v47, %v160_v45  ;;  %v200_v50 = vpop.f32.mrf.mxu0 }
  0xb2   :  { %v201_v51 = vadd.f32 %v200_v50, %v157_v44 }
  0xb3   :  { %v269_v53 = vrot.slane %v227_v48, 6  ;;  %v277_v54 = vrot.slane %v227_v48, 2  ;;  %v270_v55 = vrot.slane %v241_v49, 6  ;;  %v278_v56 = vrot.slane %v241_v49, 2 }
  0xb4   :  { %v214_v57 = vpop.f32.mrf.mxu1 }
  0xb5   :  { %v273_v58 = vadd.f32 %v269_v53, %v201_v51  ;;  %v281_v59 = vadd.f32 %v277_v54, %v201_v51  ;;  %v215_v60 = vadd.f32 %v214_v57, %v158_v52 }
  0xb7   :  { %275 = vst [vmem:[#allocation2 + $0x18] sm:$0x33] %v273_v58   ;;  %v274_v61 = vadd.f32 %v270_v55, %v215_v60  ;;  %v282_v62 = vadd.f32 %v278_v56, %v215_v60 }
  0xb8   :  { %283 = vst [vmem:[#allocation2 + $0x18] sm:$0xcc] %v281_v59   ;;  %v228_v63 = vpop.f32.mrf.mxu2  ;;  %v242_v0 = vpop.f32.mrf.mxu3 }
  0xb9   :  { %v229_v2 = vadd.f32 %v228_v63, %v159_v43  ;;  %v243_v3 = vadd.f32 %v242_v0, %v160_v45  ;;  %276 = vst [vmem:[#allocation2 + $0x8] sm:$0x33] %v274_v61  }
  0xba   :  { %284 = vst [vmem:[#allocation2 + $0x8] sm:$0xcc] %v282_v62   ;;  %v352_v5 = vpop.f32.mrf.mxu0 }
  0xbb   :  { %v247_v6 = vrot.slane %v229_v2, 6  ;;  %v255_v7 = vrot.slane %v229_v2, 2  ;;  %v248_v8 = vrot.slane %v243_v3, 6  ;;  %v256_v9 = vrot.slane %v243_v3, 2 }
  0xbc   :  { %v365_v10 = vpop.f32.mrf.mxu1 }
  0xbd   :  { %v251_v11 = vadd.f32 %v247_v6, %v199_v4  ;;  %v259_v12 = vadd.f32 %v255_v7, %v199_v4  ;;  %v252_v13 = vadd.f32 %v248_v8, %v213_v1  ;;  %v260_v14 = vadd.f32 %v256_v9, %v213_v1 }
  0xbf   :  { %253 = vst [vmem:[#allocation2 + $0x10] sm:$0x33] %v251_v11  }
  0xc0   :  { %261 = vst [vmem:[#allocation2 + $0x10] sm:$0xcc] %v259_v12  }
  0xc1   :  { %254 = vst [vmem:[#allocation2] sm:$0x33] %v252_v13  }
  0xc2   :  { %262 = vst [vmem:[#allocation2] sm:$0xcc] %v260_v14   ;;  %v354_v15 = vpop.f32.mrf.mxu0 }
  0xc4   :  { %v367_v17 = vpop.f32.mrf.mxu1 }
  0xc6   :  { %v297_v18 = vld [vmem:[#allocation2 + $0x10] sm:$0x3] }
  0xc7   :  { %v369_v19 = vadd.f32 %v352_v5, %v297_v18  ;;  %v427_v4 = vld [vmem:[#allocation2 + $0x10] sm:$0xc] }
  0xc8   :  { %v298_v24 = vld [vmem:[#allocation2] sm:$0x3] }
  0xc9   :  { %v2747_v20 = vmul.f32 -1.442695, %v369_v19  ;;  %v370_v29 = vadd.f32 %v365_v10, %v298_v24  ;;  %v428_v12 = vld [vmem:[#allocation2] sm:$0xc] }
  0xcb   :  { %3062 = vpow2.f32 %v2747_v20  ;;  %v2748_v45 = vmul.f32 -1.442695, %v370_v29 }
  0xd1   :  { %v3063_v21 = vpop.eup %3062 }
  0xd2   :  { %v374_v23 = vadd.f32 1.0, %v3063_v21 }
  0xd4   :  { %3064 = vrcp.f32 %v374_v23  ;;  %v386_v32 = vand.u32 2147483648, %v374_v23  ;;  %v384_v35 = vand.u32 2147483647, %v374_v23  ;;  %vm380_vm2 = vweird.f32 %v374_v23 }
  0xd5   :  { %3066 = vtanh.f32 %v370_v29 }
  0xd6   :  { %v387_v40 = vor.u32 1.1754944e-38, %v386_v32  ;;  %vm385_vm4 = vcmp.eq.f32.partialorder %v384_v35, 8.507059e+37  ;;  %3068 = vpow2.f32 %v2748_v45 }
  0xda   :  { %v3065_v26 = vpop.eup %3064 }
  0xdb   :  { %v376_v27 = vmul.f32 %v3065_v26, %v374_v23  ;;  %vm381_vm1 = vweird.f32 %v3065_v26  ;;  %v3067_v42 = vpop.eup %3066 }
  0xdc   :  { %vm382_vm3 = vmor %vm380_vm2, %vm381_vm1  ;;  %v3069_v46 = vpop.eup %3068 }
  0xdd   :  { %v377_v30 = vsub.f32 1.0, %v376_v27  ;;  %v394_v47 = vadd.f32 1.0, %v3069_v46 }
  0xdf   :  { %v378_v34 = vmul.f32 %v3065_v26, %v377_v30  ;;  %3070 = vrcp.f32 %v394_v47  ;;  %vm400_vm5 = vweird.f32 %v394_v47  ;;  %v406_v55 = vand.u32 2147483648, %v394_v47 }
  0xe0   :  { %v404_v57 = vand.u32 2147483647, %v394_v47 }
  0xe1   :  { %v379_v36 = vadd.f32 %v3065_v26, %v378_v34  ;;  %v407_v58 = vor.u32 1.1754944e-38, %v406_v55 }
  0xe2   :  { %vm405_vm8 = vcmp.eq.f32.partialorder %v404_v57, 8.507059e+37 }
  0xe3   :  { %v383_v41 = vsel %vm382_vm3, %v3065_v26, %v379_v36 }
  0xe4   :  { %v388_v43 = vsel %vm385_vm4, %v387_v40, %v383_v41 }
  0xe5   :  { %v411_v44 = vmul.f32 %v3067_v42, %v388_v43  ;;  %v3071_v48 = vpop.eup %3070  ;;  %v410_v52 = vmul.f32 0.0, %v388_v43 }
  0xe6   :  { %v396_v49 = vmul.f32 %v3071_v48, %v394_v47  ;;  %vm401_vm6 = vweird.f32 %v3071_v48 }
  0xe7   :  { %413 = vrot.lane.b32.xlu0 %v411_v44, %s3420_s6  ;;  %vm402_vm7 = vmor %vm400_vm5, %vm401_vm6 }
  0xe8   :  { %v397_v50 = vsub.f32 1.0, %v396_v49 }
  0xea   :  { %v398_v51 = vmul.f32 %v3071_v48, %v397_v50 }
  0xec   :  { %v399_v56 = vadd.f32 %v3071_v48, %v398_v51 }
  0xee   :  { %v403_v59 = vsel %vm402_vm7, %v3071_v48, %v399_v56 }
  0xef   :  { %v408_v61 = vsel %vm405_vm8, %v407_v58, %v403_v59 }
 0x159   :  { %v414_v53 = vpop.permute.xlu0 %413 }
 0x15a   :  { %v416_v54 = vadd.f32 %v414_v53, %v410_v52 }
 0x15c   :  { %3072 = vtanh.f32 %v416_v54  ;;  %v510_v24 = vrot.slane %v416_v54, 6 }
 0x162   :  { %v3073_v60 = vpop.eup %3072 }
 0x163   :  { %v3655_v62 = vmul.f32 %v3073_v60, %v408_v61  ;;  %v529_v60 = vld [vmem:[#allocation2 + $0x10] sm:$0x30] }
 0x165   :  { %v429_v63 = vpack.c.bf16 %v3655_v62, %v3655_v62 }
 0x167   :  { %431 = vrot.lane.b32.xlu0 %v429_v63, %s3420_s6 }
 0x1d9   :  { %v432_v0 = vpop.permute.xlu0 %431 }
 0x1da   :  { %2749 = vmatmul.msk.bf16.vlgmr.msrb.gmra.mxu2 %vm339_vm9, %v432_v0  ;;  %2750 = vmatmul.msk.bf16.vlgmr.msrb.gmra.mxu3 %vm339_vm9, %v432_v0 }
 0x1db   :  { %843 = vmatpush.bf16.msrb.mxu2 %v3589_v16  ;;  %856 = vmatpush.bf16.msrb.mxu3 %v3592_v22 }
 0x1df   :  { %844 = vmatpush.bf16.msrb.mxu2 %v3597_v25  ;;  %857 = vmatpush.bf16.msrb.mxu3 %v3600_v28 }
 0x1e3   :  { %845 = vmatpush.bf16.msrb.mxu2 %v3606_v31  ;;  %858 = vmatpush.bf16.msrb.mxu3 %v3609_v33 }
 0x1e7   :  { %846 = vmatpush.bf16.msrb.mxu2 %v3614_v37  ;;  %859 = vmatpush.bf16.msrb.mxu3 %v3617_v38 }
 0x25d   :  { %v445_v1 = vpop.f32.mrf.mxu2  ;;  %v458_v2 = vpop.f32.mrf.mxu3 }
 0x25e   :  { %v464_v3 = vrot.slane %v445_v1, 6  ;;  %v465_v11 = vrot.slane %v458_v2, 6 }
 0x260   :  { %v468_v5 = vadd.f32 %v464_v3, %v427_v4  ;;  %v469_v14 = vadd.f32 %v465_v11, %v428_v12 }
 0x262   :  { %v2751_v6 = vmul.f32 -1.442695, %v468_v5  ;;  %v2752_v34 = vmul.f32 -1.442695, %v469_v14  ;;  %v530_v5 = vld [vmem:[#allocation2] sm:$0x30] }
 0x264   :  { %3074 = vpow2.f32 %v2751_v6 }
 0x265   :  { %v447_v7 = vpop.f32.mrf.mxu2  ;;  %v460_v8 = vpop.f32.mrf.mxu3 }
 0x26a   :  { %v3075_v9 = vpop.eup %3074 }
 0x26b   :  { %v473_v10 = vadd.f32 1.0, %v3075_v9 }
 0x26d   :  { %3076 = vrcp.f32 %v473_v10  ;;  %v485_v18 = vand.u32 2147483648, %v473_v10  ;;  %v483_v20 = vand.u32 2147483647, %v473_v10  ;;  %vm479_vm11 = vweird.f32 %v473_v10 }
 0x26e   :  { %3078 = vtanh.f32 %v469_v14 }
 0x26f   :  { %v486_v23 = vor.u32 1.1754944e-38, %v485_v18  ;;  %vm484_vm13 = vcmp.eq.f32.partialorder %v483_v20, 8.507059e+37  ;;  %3080 = vpow2.f32 %v2752_v34 }
 0x273   :  { %v3077_v13 = vpop.eup %3076 }
 0x274   :  { %v475_v15 = vmul.f32 %v3077_v13, %v473_v10  ;;  %vm480_vm10 = vweird.f32 %v3077_v13  ;;  %v3079_v27 = vpop.eup %3078 }
 0x275   :  { %vm481_vm12 = vmor %vm479_vm11, %vm480_vm10  ;;  %v3081_v35 = vpop.eup %3080 }
 0x276   :  { %v476_v17 = vsub.f32 1.0, %v475_v15  ;;  %v493_v36 = vadd.f32 1.0, %v3081_v35 }
 0x278   :  { %v477_v19 = vmul.f32 %v3077_v13, %v476_v17  ;;  %3082 = vrcp.f32 %v493_v36  ;;  %v505_v47 = vand.u32 2147483648, %v493_v36  ;;  %vm499_vm15 = vweird.f32 %v493_v36 }
 0x279   :  { %v503_v48 = vand.u32 2147483647, %v493_v36 }
 0x27a   :  { %v478_v21 = vadd.f32 %v3077_v13, %v477_v19  ;;  %v506_v50 = vor.u32 1.1754944e-38, %v505_v47 }
 0x27b   :  { %vm504_vm1 = vcmp.eq.f32.partialorder %v503_v48, 8.507059e+37 }
 0x27c   :  { %v482_v26 = vsel %vm481_vm12, %v3077_v13, %v478_v21 }
 0x27d   :  { %v487_v29 = vsel %vm484_vm13, %v486_v23, %v482_v26 }
 0x27e   :  { %v513_v30 = vmul.f32 %v3079_v27, %v487_v29  ;;  %v512_v32 = vmul.f32 %v510_v24, %v487_v29  ;;  %v3083_v40 = vpop.eup %3082 }
 0x27f   :  { %v495_v41 = vmul.f32 %v3083_v40, %v493_v36  ;;  %vm500_vm14 = vweird.f32 %v3083_v40 }
 0x280   :  { %515 = vrot.lane.b32.xlu1 %v513_v30, %s3420_s6  ;;  %vm501_vm0 = vmor %vm499_vm15, %vm500_vm14 }
 0x281   :  { %v496_v42 = vsub.f32 1.0, %v495_v41 }
 0x283   :  { %v497_v43 = vmul.f32 %v3083_v40, %v496_v42 }
 0x285   :  { %v498_v46 = vadd.f32 %v3083_v40, %v497_v43 }
 0x287   :  { %v502_v49 = vsel %vm501_vm0, %v3083_v40, %v498_v46 }
 0x288   :  { %v507_v52 = vsel %vm504_vm1, %v506_v50, %v502_v49 }
 0x2f2   :  { %v516_v44 = vpop.permute.xlu1 %515 }
 0x2f3   :  { %v518_v45 = vadd.f32 %v516_v44, %v512_v32 }
 0x2f5   :  { %3084 = vtanh.f32 %v518_v45  ;;  %v613_v15 = vrot.slane %v518_v45, 6 }
 0x2fb   :  { %v3085_v51 = vpop.eup %3084 }
 0x2fc   :  { %v3671_v53 = vmul.f32 %v3085_v51, %v507_v52 }
 0x2fe   :  { %v531_v54 = vpack.c.bf16 %v3671_v53, %v3671_v53 }
 0x300   :  { %v533_v55 = vrot.slane %v531_v54, 1  ;;  %v632_v54 = vld [vmem:[#allocation2 + $0x10] sm:$0xc0] }
 0x302   :  { %534 = vrot.lane.b32.xlu1 %v533_v55, %s3420_s6 }
 0x374   :  { %v535_v56 = vpop.permute.xlu1 %534 }
 0x375   :  { %2753 = vmatmul.msk.bf16.vlgmr.msra.gmra.mxu0 %vm339_vm9, %v535_v56  ;;  %2754 = vmatmul.msk.bf16.vlgmr.msra.gmra.mxu1 %vm339_vm9, %v535_v56 }
 0x376   :  { %944 = vmatpush.bf16.msra.mxu0 %v3589_v16  ;;  %957 = vmatpush.bf16.msra.mxu1 %v3592_v22 }
 0x37a   :  { %945 = vmatpush.bf16.msra.mxu0 %v3597_v25  ;;  %958 = vmatpush.bf16.msra.mxu1 %v3600_v28 }
 0x37e   :  { %946 = vmatpush.bf16.msra.mxu0 %v3606_v31  ;;  %959 = vmatpush.bf16.msra.mxu1 %v3609_v33 }
 0x382   :  { %947 = vmatpush.bf16.msra.mxu0 %v3614_v37  ;;  %960 = vmatpush.bf16.msra.mxu1 %v3617_v38 }
 0x3f2   :  { %v548_v57 = vpop.f32.mrf.mxu0  ;;  %v561_v58 = vpop.f32.mrf.mxu1 }
 0x3f3   :  { %v567_v59 = vrot.slane %v548_v57, 4  ;;  %v568_v4 = vrot.slane %v561_v58, 4 }
 0x3f5   :  { %v571_v61 = vadd.f32 %v567_v59, %v529_v60  ;;  %v572_v7 = vadd.f32 %v568_v4, %v530_v5 }
 0x3f7   :  { %v2755_v63 = vmul.f32 -1.442695, %v571_v61  ;;  %v2756_v23 = vmul.f32 -1.442695, %v572_v7 }
 0x3f9   :  { %3086 = vpow2.f32 %v2755_v63 }
 0x3fa   :  { %v550_v0 = vpop.f32.mrf.mxu0  ;;  %v563_v1 = vpop.f32.mrf.mxu1 }
 0x3ff   :  { %v3087_v2 = vpop.eup %3086 }
 0x400   :  { %v576_v3 = vadd.f32 1.0, %v3087_v2 }
 0x402   :  { %3088 = vrcp.f32 %v576_v3  ;;  %v588_v10 = vand.u32 2147483648, %v576_v3  ;;  %v586_v12 = vand.u32 2147483647, %v576_v3  ;;  %vm582_vm3 = vweird.f32 %v576_v3 }
 0x403   :  { %3090 = vtanh.f32 %v572_v7 }
 0x404   :  { %v589_v14 = vor.u32 1.1754944e-38, %v588_v10  ;;  %vm587_vm5 = vcmp.eq.f32.partialorder %v586_v12, 8.507059e+37  ;;  %3092 = vpow2.f32 %v2756_v23 }
 0x408   :  { %v3089_v6 = vpop.eup %3088 }
 0x409   :  { %v578_v8 = vmul.f32 %v3089_v6, %v576_v3  ;;  %vm583_vm2 = vweird.f32 %v3089_v6  ;;  %v3091_v18 = vpop.eup %3090 }
 0x40a   :  { %vm584_vm4 = vmor %vm582_vm3, %vm583_vm2  ;;  %v3093_v24 = vpop.eup %3092 }
 0x40b   :  { %v579_v9 = vsub.f32 1.0, %v578_v8  ;;  %v596_v26 = vadd.f32 1.0, %v3093_v24 }
 0x40d   :  { %v580_v11 = vmul.f32 %v3089_v6, %v579_v9  ;;  %3094 = vrcp.f32 %v596_v26  ;;  %v608_v40 = vand.u32 2147483648, %v596_v26  ;;  %vm602_vm7 = vweird.f32 %v596_v26 }
 0x40e   :  { %v606_v41 = vand.u32 2147483647, %v596_v26 }
 0x40f   :  { %v581_v13 = vadd.f32 %v3089_v6, %v580_v11  ;;  %v609_v43 = vor.u32 1.1754944e-38, %v608_v40 }
 0x410   :  { %vm607_vm10 = vcmp.eq.f32.partialorder %v606_v41, 8.507059e+37 }
 0x411   :  { %v585_v17 = vsel %vm584_vm4, %v3089_v6, %v581_v13 }
 0x412   :  { %v590_v19 = vsel %vm587_vm5, %v589_v14, %v585_v17 }
 0x413   :  { %v616_v20 = vmul.f32 %v3091_v18, %v590_v19  ;;  %v615_v21 = vmul.f32 %v613_v15, %v590_v19  ;;  %v3095_v27 = vpop.eup %3094 }
 0x414   :  { %v598_v29 = vmul.f32 %v3095_v27, %v596_v26  ;;  %vm603_vm6 = vweird.f32 %v3095_v27 }
 0x415   :  { %618 = vrot.lane.b32.xlu2 %v616_v20, %s3420_s6  ;;  %vm604_vm8 = vmor %vm602_vm7, %vm603_vm6 }
 0x416   :  { %v599_v30 = vsub.f32 1.0, %v598_v29 }
 0x418   :  { %v600_v32 = vmul.f32 %v3095_v27, %v599_v30 }
 0x41a   :  { %v601_v36 = vadd.f32 %v3095_v27, %v600_v32  ;;  %v735_v32 = vld [vmem:[#allocation2 + $0x18] sm:$0x3] }
 0x41c   :  { %v605_v42 = vsel %vm604_vm8, %v3095_v27, %v601_v36 }
 0x41d   :  { %v610_v45 = vsel %vm607_vm10, %v609_v43, %v605_v42 }
 0x46f   :  { %v619_v34 = vpop.permute.xlu2 %618 }
 0x470   :  { %v621_v35 = vadd.f32 %v619_v34, %v615_v21 }
 0x472   :  { %3096 = vtanh.f32 %v621_v35  ;;  %v716_v1 = vrot.slane %v621_v35, 6 }
 0x478   :  { %v3097_v44 = vpop.eup %3096 }
 0x479   :  { %v3687_v46 = vmul.f32 %v3097_v44, %v610_v45  ;;  %v736_v45 = vld [vmem:[#allocation2 + $0x8] sm:$0x3] }
 0x47b   :  { %v634_v47 = vpack.c.bf16 %v3687_v46, %v3687_v46 }
 0x47d   :  { %v636_v48 = vrot.slane %v634_v47, 2 }
 0x47f   :  { %637 = vrot.lane.b32.xlu2 %v636_v48, %s3420_s6 }
 0x4d9   :  { %v638_v49 = vpop.permute.xlu2 %637 }
 0x4da   :  { %2757 = vmatmul.msk.bf16.vlgmr.msra.gmra.mxu2 %vm339_vm9, %v638_v49  ;;  %2758 = vmatmul.msk.bf16.vlgmr.msra.gmra.mxu3 %vm339_vm9, %v638_v49 }
 0x4db   :  { %1045 = vmatpush.bf16.msra.mxu2 %v3589_v16  ;;  %1058 = vmatpush.bf16.msra.mxu3 %v3592_v22 }
 0x4df   :  { %1046 = vmatpush.bf16.msra.mxu2 %v3597_v25  ;;  %1059 = vmatpush.bf16.msra.mxu3 %v3600_v28 }
 0x4e3   :  { %1047 = vmatpush.bf16.msra.mxu2 %v3606_v31  ;;  %1060 = vmatpush.bf16.msra.mxu3 %v3609_v33  ;;  %v633_v31 = vld [vmem:[#allocation2] sm:$0xc0] }
 0x4e7   :  { %1048 = vmatpush.bf16.msra.mxu2 %v3614_v37  ;;  %1061 = vmatpush.bf16.msra.mxu3 %v3617_v38 }
 0x55d   :  { %v651_v50 = vpop.f32.mrf.mxu2  ;;  %v664_v51 = vpop.f32.mrf.mxu3 }
 0x55e   :  { %v670_v52 = vrot.slane %v651_v50, 2  ;;  %v671_v28 = vrot.slane %v664_v51, 2 }
 0x560   :  { %v674_v55 = vadd.f32 %v670_v52, %v632_v54  ;;  %v675_v33 = vadd.f32 %v671_v28, %v633_v31 }
 0x562   :  { %v2759_v16 = vmul.f32 -1.442695, %v674_v55  ;;  %v2760_v7 = vmul.f32 -1.442695, %v675_v33 }
 0x564   :  { %3098 = vpow2.f32 %v2759_v16 }
 0x565   :  { %v653_v22 = vpop.f32.mrf.mxu2  ;;  %v666_v56 = vpop.f32.mrf.mxu3 }
 0x56a   :  { %v3099_v25 = vpop.eup %3098 }
 0x56b   :  { %v679_v57 = vadd.f32 1.0, %v3099_v25 }
 0x56d   :  { %3100 = vrcp.f32 %v679_v57  ;;  %v691_v38 = vand.u32 2147483648, %v679_v57  ;;  %v689_v61 = vand.u32 2147483647, %v679_v57  ;;  %vm685_vm12 = vweird.f32 %v679_v57 }
 0x56e   :  { %3102 = vtanh.f32 %v675_v33 }
 0x56f   :  { %v692_v0 = vor.u32 1.1754944e-38, %v691_v38  ;;  %vm690_vm14 = vcmp.eq.f32.partialorder %v689_v61, 8.507059e+37  ;;  %3104 = vpow2.f32 %v2760_v7 }
 0x573   :  { %v3101_v58 = vpop.eup %3100 }
 0x574   :  { %v681_v59 = vmul.f32 %v3101_v58, %v679_v57  ;;  %vm686_vm11 = vweird.f32 %v3101_v58  ;;  %v3103_v3 = vpop.eup %3102 }
 0x575   :  { %vm687_vm13 = vmor %vm685_vm12, %vm686_vm11  ;;  %v3105_v8 = vpop.eup %3104 }
 0x576   :  { %v682_v37 = vsub.f32 1.0, %v681_v59  ;;  %v699_v9 = vadd.f32 1.0, %v3105_v8 }
 0x578   :  { %v683_v60 = vmul.f32 %v3101_v58, %v682_v37  ;;  %3106 = vrcp.f32 %v699_v9  ;;  %v711_v18 = vand.u32 2147483648, %v699_v9  ;;  %vm705_vm0 = vweird.f32 %v699_v9 }
 0x579   :  { %v709_v19 = vand.u32 2147483647, %v699_v9 }
 0x57a   :  { %v684_v63 = vadd.f32 %v3101_v58, %v683_v60  ;;  %v712_v21 = vor.u32 1.1754944e-38, %v711_v18 }
 0x57b   :  { %vm710_vm2 = vcmp.eq.f32.partialorder %v709_v19, 8.507059e+37 }
 0x57c   :  { %v688_v2 = vsel %vm687_vm13, %v3101_v58, %v684_v63 }
 0x57d   :  { %v693_v4 = vsel %vm690_vm14, %v692_v0, %v688_v2 }
 0x57e   :  { %v719_v5 = vmul.f32 %v3103_v3, %v693_v4  ;;  %v718_v6 = vmul.f32 %v716_v1, %v693_v4  ;;  %v3107_v10 = vpop.eup %3106 }
 0x57f   :  { %v701_v11 = vmul.f32 %v3107_v10, %v699_v9  ;;  %vm706_vm15 = vweird.f32 %v3107_v10 }
 0x580   :  { %721 = vrot.lane.b32.xlu0 %v719_v5, %s3420_s6  ;;  %vm707_vm1 = vmor %vm705_vm0, %vm706_vm15 }
 0x581   :  { %v702_v12 = vsub.f32 1.0, %v701_v11 }
 0x583   :  { %v703_v13 = vmul.f32 %v3107_v10, %v702_v12 }
 0x585   :  { %v704_v17 = vadd.f32 %v3107_v10, %v703_v13 }
 0x587   :  { %v708_v20 = vsel %vm707_vm1, %v3107_v10, %v704_v17 }
 0x588   :  { %v713_v24 = vsel %vm710_vm2, %v712_v21, %v708_v20 }
 0x5f2   :  { %v722_v14 = vpop.permute.xlu0 %721 }
 0x5f3   :  { %v724_v15 = vadd.f32 %v722_v14, %v718_v6  ;;  %v830_v14 = vld [vmem:[#allocation2 + $0x18] sm:$0xc] }
 0x5f5   :  { %3108 = vtanh.f32 %v724_v15  ;;  %v813_v22 = vrot.slane %v724_v15, 6 }
 0x5fb   :  { %v3109_v23 = vpop.eup %3108 }
 0x5fc   :  { %v3703_v26 = vmul.f32 %v3109_v23, %v713_v24  ;;  %v831_v24 = vld [vmem:[#allocation2 + $0x8] sm:$0xc] }
 0x5fe   :  { %v737_v27 = vpack.c.bf16 %v3703_v26, %v3703_v26 }
 0x600   :  { %v739_v29 = vrot.slane %v737_v27, 3 }
 0x602   :  { %740 = vrot.lane.b32.xlu1 %v739_v29, %s3420_s6 }
 0x674   :  { %v741_v30 = vpop.permute.xlu1 %740 }
 0x675   :  { %2761 = vmatmul.msk.bf16.vlgmr.msrb.gmra.mxu0 %vm339_vm9, %v741_v30  ;;  %2762 = vmatmul.msk.bf16.vlgmr.msrb.gmra.mxu1 %vm339_vm9, %v741_v30 }
 0x6f2   :  { %v754_v34 = vpop.f32.mrf.mxu0  ;;  %v767_v35 = vpop.f32.mrf.mxu1 }
 0x6f3   :  { %v771_v36 = vadd.f32 %v754_v34, %v735_v32  ;;  %v772_v48 = vadd.f32 %v767_v35, %v736_v45 }
 0x6f5   :  { %v2763_v40 = vmul.f32 -1.442695, %v771_v36  ;;  %v2764_v58 = vmul.f32 -1.442695, %v772_v48 }
 0x6f7   :  { %3110 = vpow2.f32 %v2763_v40 }
 0x6fa   :  { %v756_v41 = vpop.f32.mrf.mxu0  ;;  %v769_v42 = vpop.f32.mrf.mxu1 }
 0x6fd   :  { %v3111_v43 = vpop.eup %3110 }
 0x6fe   :  { %v776_v44 = vadd.f32 1.0, %v3111_v43 }
 0x700   :  { %3112 = vrcp.f32 %v776_v44  ;;  %v788_v51 = vand.u32 2147483648, %v776_v44  ;;  %v786_v54 = vand.u32 2147483647, %v776_v44  ;;  %vm782_vm4 = vweird.f32 %v776_v44 }
 0x701   :  { %3114 = vtanh.f32 %v772_v48 }
 0x702   :  { %v789_v16 = vor.u32 1.1754944e-38, %v788_v51  ;;  %vm787_vm6 = vcmp.eq.f32.partialorder %v786_v54, 8.507059e+37  ;;  %3116 = vpow2.f32 %v2764_v58 }
 0x706   :  { %v3113_v47 = vpop.eup %3112 }
 0x707   :  { %v778_v49 = vmul.f32 %v3113_v47, %v776_v44  ;;  %vm783_vm3 = vweird.f32 %v3113_v47  ;;  %v3115_v25 = vpop.eup %3114 }
 0x708   :  { %vm784_vm5 = vmor %vm782_vm4, %vm783_vm3  ;;  %v3117_v33 = vpop.eup %3116 }
 0x709   :  { %v779_v50 = vsub.f32 1.0, %v778_v49  ;;  %v796_v59 = vadd.f32 1.0, %v3117_v33 }
 0x70b   :  { %v780_v52 = vmul.f32 %v3113_v47, %v779_v50  ;;  %3118 = vrcp.f32 %v796_v59  ;;  %v808_v2 = vand.u32 2147483648, %v796_v59  ;;  %vm802_vm8 = vweird.f32 %v796_v59 }
 0x70c   :  { %v806_v3 = vand.u32 2147483647, %v796_v59 }
 0x70d   :  { %v781_v55 = vadd.f32 %v3113_v47, %v780_v52  ;;  %v809_v5 = vor.u32 1.1754944e-38, %v808_v2  ;;  %v930_v2 = vld [vmem:[#allocation2 + $0x18] sm:$0x30] }
 0x70e   :  { %vm807_vm11 = vcmp.eq.f32.partialorder %v806_v3, 8.507059e+37 }
 0x70f   :  { %v785_v56 = vsel %vm784_vm5, %v3113_v47, %v781_v55 }
 0x710   :  { %v790_v57 = vsel %vm787_vm6, %v789_v16, %v785_v56 }
 0x711   :  { %v816_v28 = vmul.f32 %v3115_v25, %v790_v57  ;;  %v815_v31 = vmul.f32 %v813_v22, %v790_v57  ;;  %v3119_v37 = vpop.eup %3118 }
 0x712   :  { %v798_v38 = vmul.f32 %v3119_v37, %v796_v59  ;;  %vm803_vm7 = vweird.f32 %v3119_v37 }
 0x713   :  { %818 = vrot.lane.b32.xlu2 %v816_v28, %s3420_s6  ;;  %vm804_vm10 = vmor %vm802_vm8, %vm803_vm7 }
 0x714   :  { %v799_v60 = vsub.f32 1.0, %v798_v38 }
 0x716   :  { %v800_v61 = vmul.f32 %v3119_v37, %v799_v60 }
 0x718   :  { %v801_v1 = vadd.f32 %v3119_v37, %v800_v61 }
 0x71a   :  { %v805_v4 = vsel %vm804_vm10, %v3119_v37, %v801_v1 }
 0x71b   :  { %v810_v7 = vsel %vm807_vm11, %v809_v5, %v805_v4 }
 0x76d   :  { %v819_v63 = vpop.permute.xlu2 %818 }
 0x76e   :  { %v821_v0 = vadd.f32 %v819_v63, %v815_v31 }
 0x770   :  { %3120 = vtanh.f32 %v821_v0  ;;  %v913_v42 = vrot.slane %v821_v0, 6 }
 0x776   :  { %v3121_v6 = vpop.eup %3120 }
 0x777   :  { %v3711_v8 = vmul.f32 %v3121_v6, %v810_v7 }
 0x779   :  { %v832_v9 = vpack.c.bf16 %v3711_v8, %v3711_v8 }
 0x77b   :  { %834 = vrot.lane.b32.xlu0 %v832_v9, %s3420_s6 }
 0x7ed   :  { %v835_v10 = vpop.permute.xlu0 %834 }
 0x7ee   :  { %2765 = vmatmul.msk.bf16.vlgmr.msrb.gmra.mxu2 %vm339_vm9, %v835_v10  ;;  %2766 = vmatmul.msk.bf16.vlgmr.msrb.gmra.mxu3 %vm339_vm9, %v835_v10 }
 0x871   :  { %v848_v11 = vpop.f32.mrf.mxu2  ;;  %v861_v12 = vpop.f32.mrf.mxu3 }
 0x872   :  { %v867_v13 = vrot.slane %v848_v11, 6  ;;  %v868_v23 = vrot.slane %v861_v12, 6  ;;  %v931_v11 = vld [vmem:[#allocation2 + $0x8] sm:$0x30] }
 0x874   :  { %v871_v15 = vadd.f32 %v867_v13, %v830_v14  ;;  %v872_v29 = vadd.f32 %v868_v23, %v831_v24 }
 0x876   :  { %v2767_v17 = vmul.f32 -1.442695, %v871_v15  ;;  %v2768_v49 = vmul.f32 -1.442695, %v872_v29 }
 0x878   :  { %3122 = vpow2.f32 %v2767_v17 }
 0x879   :  { %v850_v18 = vpop.f32.mrf.mxu2  ;;  %v863_v19 = vpop.f32.mrf.mxu3 }
 0x87e   :  { %v3123_v20 = vpop.eup %3122 }
 0x87f   :  { %v876_v21 = vadd.f32 1.0, %v3123_v20 }
 0x881   :  { %3124 = vrcp.f32 %v876_v21  ;;  %v888_v34 = vand.u32 2147483648, %v876_v21  ;;  %v886_v36 = vand.u32 2147483647, %v876_v21  ;;  %vm882_vm13 = vweird.f32 %v876_v21 }
 0x882   :  { %3126 = vtanh.f32 %v872_v29 }
 0x883   :  { %v889_v41 = vor.u32 1.1754944e-38, %v888_v34  ;;  %vm887_vm15 = vcmp.eq.f32.partialorder %v886_v36, 8.507059e+37  ;;  %3128 = vpow2.f32 %v2768_v49 }
 0x887   :  { %v3125_v27 = vpop.eup %3124 }
 0x888   :  { %v878_v30 = vmul.f32 %v3125_v27, %v876_v21  ;;  %vm883_vm12 = vweird.f32 %v3125_v27  ;;  %v3127_v44 = vpop.eup %3126 }
 0x889   :  { %vm884_vm14 = vmor %vm882_vm13, %vm883_vm12  ;;  %v3129_v50 = vpop.eup %3128  ;;  %vm423_vm12 = vcmask 254976   ;;  %vm425_vm13 = vcmask 517376  }
 0x88a   :  { %v879_v32 = vsub.f32 1.0, %v878_v30  ;;  %v896_v51 = vadd.f32 1.0, %v3129_v50 }
 0x88c   :  { %v880_v35 = vmul.f32 %v3125_v27, %v879_v32  ;;  %3130 = vrcp.f32 %v896_v51  ;;  %v908_v57 = vand.u32 2147483648, %v896_v51  ;;  %vm902_vm1 = vweird.f32 %v896_v51 }
 0x88d   :  { %v906_v28 = vand.u32 2147483647, %v896_v51 }
 0x88e   :  { %v881_v40 = vadd.f32 %v3125_v27, %v880_v35  ;;  %v909_v58 = vor.u32 1.1754944e-38, %v908_v57 }
 0x88f   :  { %vm907_vm3 = vcmp.eq.f32.partialorder %v906_v28, 8.507059e+37 }
 0x890   :  { %v885_v43 = vsel %vm884_vm14, %v3125_v27, %v881_v40 }
 0x891   :  { %v890_v45 = vsel %vm887_vm15, %v889_v41, %v885_v43  ;;  %vm731_vm15 = vcmask 261126  }
 0x892   :  { %v916_v47 = vmul.f32 %v3127_v44, %v890_v45  ;;  %v915_v48 = vmul.f32 %v913_v42, %v890_v45  ;;  %v3131_v52 = vpop.eup %3130 }
 0x893   :  { %v898_v54 = vmul.f32 %v3131_v52, %v896_v51  ;;  %vm903_vm0 = vweird.f32 %v3131_v52 }
 0x894   :  { %918 = vrot.lane.b32.xlu1 %v916_v47, %s3420_s6  ;;  %vm904_vm2 = vmor %vm902_vm1, %vm903_vm0  ;;  %vm733_vm0 = vcmask 523526   ;;  %vm525_vm1 = vcmask 257026  }
 0x895   :  { %v899_v55 = vsub.f32 1.0, %v898_v54 }
 0x897   :  { %v900_v16 = vmul.f32 %v3131_v52, %v899_v55 }
 0x899   :  { %v901_v25 = vadd.f32 %v3131_v52, %v900_v16 }
 0x89b   :  { %v905_v31 = vsel %vm904_vm2, %v3131_v52, %v901_v25  ;;  %vm527_vm2 = vcmask 519426  }
 0x89c   :  { %v910_v59 = vsel %vm907_vm3, %v909_v58, %v905_v31  ;;  %vm628_vm3 = vcmask 259076   ;;  %v1031_v58 = vld [vmem:[#allocation2 + $0x18] sm:$0xc0] }
 0x906   :  { %v919_v22 = vpop.permute.xlu1 %918 }
 0x907   :  { %v921_v56 = vadd.f32 %v919_v22, %v915_v48 }
 0x909   :  { %3132 = vtanh.f32 %v921_v56  ;;  %v1014_v23 = vrot.slane %v921_v56, 6 }
 0x90f   :  { %v3133_v33 = vpop.eup %3132 }
 0x910   :  { %v3719_v37 = vmul.f32 %v3133_v33, %v910_v59 }
 0x912   :  { %v932_v38 = vpack.c.bf16 %v3719_v37, %v3719_v37 }
 0x914   :  { %v934_v60 = vrot.slane %v932_v38, 1 }
 0x916   :  { %935 = vrot.lane.b32.xlu2 %v934_v60, %s3420_s6 }
 0x970   :  { %v936_v61 = vpop.permute.xlu2 %935 }
 0x971   :  { %2769 = vmatmul.msk.bf16.vlgmr.msra.gmra.mxu0 %vm339_vm9, %v936_v61  ;;  %2770 = vmatmul.msk.bf16.vlgmr.msra.gmra.mxu1 %vm339_vm9, %v936_v61 }
 0x9ee   :  { %v949_v63 = vpop.f32.mrf.mxu0  ;;  %v962_v0 = vpop.f32.mrf.mxu1 }
 0x9ef   :  { %v968_v1 = vrot.slane %v949_v63, 4  ;;  %v969_v10 = vrot.slane %v962_v0, 4 }
 0x9f1   :  { %v972_v3 = vadd.f32 %v968_v1, %v930_v2  ;;  %v973_v13 = vadd.f32 %v969_v10, %v931_v11  ;;  %v1032_v1 = vld [vmem:[#allocation2 + $0x8] sm:$0xc0] }
 0x9f3   :  { %v2771_v4 = vmul.f32 -1.442695, %v972_v3  ;;  %v2772_v34 = vmul.f32 -1.442695, %v973_v13 }
 0x9f5   :  { %3134 = vpow2.f32 %v2771_v4 }
 0x9f6   :  { %v951_v5 = vpop.f32.mrf.mxu0  ;;  %v964_v6 = vpop.f32.mrf.mxu1 }
 0x9fb   :  { %v3135_v7 = vpop.eup %3134 }
 0x9fc   :  { %v977_v9 = vadd.f32 1.0, %v3135_v7 }
 0x9fe   :  { %3136 = vrcp.f32 %v977_v9  ;;  %v989_v17 = vand.u32 2147483648, %v977_v9  ;;  %v987_v19 = vand.u32 2147483647, %v977_v9  ;;  %vm983_vm5 = vweird.f32 %v977_v9 }
 0x9ff   :  { %3138 = vtanh.f32 %v973_v13 }
 0xa00   :  { %v990_v21 = vor.u32 1.1754944e-38, %v989_v17  ;;  %vm988_vm7 = vcmp.eq.f32.partialorder %v987_v19, 8.507059e+37  ;;  %3140 = vpow2.f32 %v2772_v34 }
 0xa04   :  { %v3137_v12 = vpop.eup %3136 }
 0xa05   :  { %v979_v14 = vmul.f32 %v3137_v12, %v977_v9  ;;  %vm984_vm4 = vweird.f32 %v3137_v12  ;;  %v3139_v27 = vpop.eup %3138 }
 0xa06   :  { %vm985_vm6 = vmor %vm983_vm5, %vm984_vm4  ;;  %v3141_v35 = vpop.eup %3140  ;;  %vm630_vm4 = vcmask 521476  }
 0xa07   :  { %v980_v15 = vsub.f32 1.0, %v979_v14  ;;  %v997_v36 = vadd.f32 1.0, %v3141_v35 }
 0xa09   :  { %v981_v18 = vmul.f32 %v3137_v12, %v980_v15  ;;  %3142 = vrcp.f32 %v997_v36  ;;  %vm1003_vm10 = vweird.f32 %v997_v36  ;;  %v1007_v48 = vand.u32 2147483647, %v997_v36 }
 0xa0b   :  { %v982_v20 = vadd.f32 %v3137_v12, %v981_v18  ;;  %vm1008_vm14 = vcmp.eq.f32.partialorder %v1007_v48, 8.507059e+37 }
 0xa0d   :  { %v986_v24 = vsel %vm985_vm6, %v3137_v12, %v982_v20 }
 0xa0e   :  { %v991_v29 = vsel %vm988_vm7, %v990_v21, %v986_v24  ;;  %v3016_v24 = vld [vmem:[%s4162_s26 + $0x74] sm:$0xf0] }
 0xa0f   :  { %v1017_v30 = vmul.f32 %v3139_v27, %v991_v29  ;;  %v1016_v32 = vmul.f32 %v1014_v23, %v991_v29  ;;  %v3143_v40 = vpop.eup %3142  ;;  %v2835_v23 = vld [vmem:[%s4162_s26 + $0x68] sm:$0xf] }
 0xa10   :  { %v999_v41 = vmul.f32 %v3143_v40, %v997_v36  ;;  %vm1004_vm8 = vweird.f32 %v3143_v40  ;;  %v2836_v29 = vor.u32 %v3016_v24, %v2835_v23  ;;  %v2871_v24 = vld [vmem:[#allocation7 + $0x30] sm:$0xf] }
 0xa11   :  { %1019 = vrot.lane.b32.xlu0 %v1017_v30, %s3420_s6  ;;  %vm1005_vm11 = vmor %vm1003_vm10, %vm1004_vm8  ;;  %v3013_v30 = vld [vmem:[%s4162_s26 + $0x64] sm:$0xf] }
 0xa12   :  { %v1000_v42 = vsub.f32 1.0, %v999_v41  ;;  %v2819_v41 = vld [vmem:[%s4162_s26 + $0x48] sm:$0xf]  ;;  %1276 = vmatpush.bf16.msrb.mxu2 %v2836_v29 }
 0xa14   :  { %v1001_v43 = vmul.f32 %v3143_v40, %v1000_v42 }
 0xa16   :  { %v1002_v47 = vadd.f32 %v3143_v40, %v1001_v43  ;;  %v3012_v43 = vld [vmem:[%s4162_s26 + $0x54] sm:$0xf0] }
 0xa19   :  { %420 = vrot.lane.b32.xlu0 %v3655_v62, %s3420_s6  ;;  %v1009_v62 = vand.u32 2147483648, %v997_v36  ;;  %v3014_v36 = vld [vmem:[%s4162_s26 + $0x6c] sm:$0xf] }
 0xa1b   :  { %v1010_v49 = vor.u32 1.1754944e-38, %v1009_v62  ;;  %v2820_v62 = vor.u32 %v3012_v43, %v2819_v41  ;;  %v2855_v41 = vld [vmem:[#allocation7 + $0x10] sm:$0xf] }
 0xa1d   :  { %1277 = vmatpush.bf16.msrb.mxu2 %v2820_v62 }
 0xa21   :  { %728 = vrot.lane.b32.xlu0 %v3703_v26, %s3420_s6  ;;  %v1006_v26 = vsel %vm1005_vm11, %v3143_v40, %v1002_v47  ;;  %v2837_v40 = vld [vmem:[%s4162_s26 + $0x78] sm:$0xf0] }
 0xa22   :  { %v1011_v52 = vsel %vm1008_vm14, %v1010_v49, %v1006_v26  ;;  %v2840_v42 = vor.u32 %v3014_v36, %v2837_v40  ;;  %v3009_v26 = vld [vmem:[%s4162_s26 + $0x44] sm:$0xf]  ;;  %v2813_v49 = vld [vmem:[%s4162_s26 + $0x50] sm:$0xf0]  ;;  %v2865_v40 = vld [vmem:[#allocation7 + $0x28] sm:$0xf0] }
 0xa23   :  { %v3021_v36 = vld [vmem:[#allocation7 + $0x24] sm:$0xf] }
 0xa24   :  { %1290 = vmatpush.bf16.msrb.mxu3 %v2840_v42  ;;  %v3020_v42 = vld [vmem:[#allocation7 + $0x14] sm:$0xf0]  ;;  %v3868_v43 = vor.u32 %v3021_v36, %v2865_v40 }
 0xa83   :  { %v1020_v44 = vpop.permute.xlu0 %1019 }
 0xa84   :  { %v3731_v45 = vadd.f32 %v1020_v44, %v1016_v32  ;;  %v2829_v32 = vld [vmem:[%s4162_s26 + $0x70] sm:$0xf0]  ;;  %v2811_v44 = vld [vmem:[%s4162_s26 + $0x40] sm:$0xf] }
 0xa85   :  { %v2832_v35 = vor.u32 %v3013_v30, %v2829_v32  ;;  %v3023_v30 = vld [vmem:[#allocation7 + $0x34] sm:$0xf]  ;;  %v2873_v32 = vld [vmem:[#allocation7 + $0x38] sm:$0xf0] }
 0xa86   :  { %3144 = vtanh.f32 %v3731_v45  ;;  %v1115_v12 = vrot.slane %v3731_v45, 6  ;;  %v3011_v45 = vld [vmem:[%s4162_s26 + $0x4c] sm:$0xf0] }
 0xa87   :  { %1262 = vmatpush.bf16.msrb.mxu1 %v2832_v35  ;;  %v2812_v48 = vor.u32 %v3011_v45, %v2811_v44  ;;  %v3864_v35 = vor.u32 %v3023_v30, %v2873_v32  ;;  %v3872_v44 = vor.u32 %v3020_v42, %v2855_v41  ;;  %v2847_v45 = vld [vmem:[#allocation7] sm:$0xf] }
 0xa8b   :  { %v421_v50 = vpop.permute.xlu0 %420 }
 0xa8c   :  { %v3145_v51 = vpop.eup %3144  ;;  %424 = vst.msk [vmem:[#allocation3] sm:$0x3] %vm423_vm12, %v421_v50 }
 0xa8d   :  { %426 = vst.msk [vmem:[#allocation3 + $0xe] sm:$0x3] %vm425_vm13, %v421_v50  ;;  %v1024_v54 = vmul.f32 %v3145_v51, %v1011_v52  ;;  %v3010_v50 = vld [vmem:[%s4162_s26 + $0x4c] sm:$0xf]  ;;  %v2816_v51 = vor.u32 %v3009_v26, %v2813_v49  ;;  %v2821_v52 = vld [vmem:[%s4162_s26 + $0x58] sm:$0xf0] }
 0xa8e   :  { %v2857_v26 = vld [vmem:[#allocation7 + $0x18] sm:$0xf0]  ;;  %v3017_v49 = vld [vmem:[#allocation7 + $0x4] sm:$0xf] }
 0xa8f   :  { %1026 = vrot.lane.b32.xlu0 %v1024_v54, %s3420_s6  ;;  %v1033_v55 = vpack.c.bf16 %v1024_v54, %v1024_v54  ;;  %v2824_v54 = vor.u32 %v3010_v50, %v2821_v52  ;;  %1263 = vmatpush.bf16.msrb.mxu1 %v2816_v51  ;;  %v2849_v51 = vld [vmem:[#allocation7 + $0x8] sm:$0xf0] }
 0xa90   :  { %v3886_v52 = vor.u32 %v3017_v49, %v2849_v51 }
 0xa91   :  { %v1035_v16 = vrot.slane %v1033_v55, 2  ;;  %1291 = vmatpush.bf16.msrb.mxu3 %v2824_v54 }
 0xa93   :  { %v729_v22 = vpop.permute.xlu0 %728  ;;  %1036 = vrot.lane.b32.xlu1 %v1035_v16, %s3420_s6 }
 0xa94   :  { %732 = vst.msk [vmem:[#allocation3] sm:$0xc0] %vm731_vm15, %v729_v22 }
 0xa95   :  { %734 = vst.msk [vmem:[#allocation3 + $0x2] sm:$0xc0] %vm733_vm0, %v729_v22 }
 0xa9b   :  { %522 = vrot.lane.b32.xlu1 %v3671_v53, %s3420_s6 }
 0xaa3   :  { %825 = vrot.lane.b32.xlu1 %v3711_v8, %s3420_s6 }
 0xb01   :  { %v1027_v57 = vpop.permute.xlu0 %1026 }
 0xb05   :  { %v1037_v56 = vpop.permute.xlu1 %1036 }
 0xb06   :  { %2773 = vmatmul.msk.bf16.vlgmr.msra.gmra.mxu2 %vm339_vm9, %v1037_v56  ;;  %2774 = vmatmul.msk.bf16.vlgmr.msra.gmra.mxu3 %vm339_vm9, %v1037_v56 }
 0xb0d   :  { %v523_v25 = vpop.permute.xlu1 %522 }
 0xb0e   :  { %526 = vst.msk [vmem:[#allocation3] sm:$0xc] %vm525_vm1, %v523_v25 }
 0xb0f   :  { %528 = vst.msk [vmem:[#allocation3 + $0xa] sm:$0xc] %vm527_vm2, %v523_v25 }
 0xb10   :  { %1029 = vst.msk [vmem:[#allocation3 + $0x8] sm:$0x30] %vm628_vm3, %v1027_v57 }
 0xb11   :  { %1030 = vst.msk [vmem:[#allocation3 - $0x2] sm:$0x30] %vm630_vm4, %v1027_v57 }
 0xb15   :  { %v826_v53 = vpop.permute.xlu1 %825 }
 0xb16   :  { %828 = vst.msk [vmem:[#allocation3 + $0x8] sm:$0x3] %vm423_vm12, %v826_v53 }
 0xb17   :  { %829 = vst.msk [vmem:[#allocation3 + $0x6] sm:$0x3] %vm425_vm13, %v826_v53 }
 0xb89   :  { %v1050_v8 = vpop.f32.mrf.mxu2  ;;  %v1063_v28 = vpop.f32.mrf.mxu3 }
 0xb8a   :  { %v1069_v31 = vrot.slane %v1050_v8, 2  ;;  %v1070_v0 = vrot.slane %v1063_v28, 2 }
 0xb8c   :  { %v1073_v33 = vadd.f32 %v1069_v31, %v1031_v58  ;;  %v1074_v3 = vadd.f32 %v1070_v0, %v1032_v1  ;;  %v3007_v1 = vld [vmem:[%s4162_s26 + $0x2c] sm:$0xf0] }
 0xb8e   :  { %v2775_v59 = vmul.f32 -1.442695, %v1073_v33  ;;  %v2776_v19 = vmul.f32 -1.442695, %v1074_v3 }
 0xb90   :  { %3146 = vpow2.f32 %v2775_v59 }
 0xb91   :  { %v1052_v38 = vpop.f32.mrf.mxu2  ;;  %v1065_v60 = vpop.f32.mrf.mxu3 }
 0xb92   :  { %v2803_v60 = vld [vmem:[%s4162_s26 + $0x28] sm:$0xf] }
 0xb96   :  { %v3147_v61 = vpop.eup %3146 }
 0xb97   :  { %v1078_v63 = vadd.f32 1.0, %v3147_v61  ;;  %v3008_v61 = vld [vmem:[%s4162_s26 + $0x34] sm:$0xf0] }
 0xb98   :  { %v2804_v0 = vor.u32 %v3008_v61, %v2803_v60 }
 0xb99   :  { %3148 = vrcp.f32 %v1078_v63  ;;  %v1090_v6 = vand.u32 2147483648, %v1078_v63  ;;  %v1088_v9 = vand.u32 2147483647, %v1078_v63  ;;  %vm1084_vm6 = vweird.f32 %v1078_v63 }
 0xb9a   :  { %3150 = vtanh.f32 %v1074_v3  ;;  %v2797_v3 = vld [vmem:[%s4162_s26 + $0x30] sm:$0xf0]  ;;  %1278 = vmatpush.bf16.msrb.mxu2 %v2804_v0 }
 0xb9b   :  { %v1091_v11 = vor.u32 1.1754944e-38, %v1090_v6  ;;  %vm1089_vm8 = vcmp.eq.f32.partialorder %v1088_v9, 8.507059e+37  ;;  %3152 = vpow2.f32 %v2776_v19  ;;  %v3006_v6 = vld [vmem:[%s4162_s26 + $0x2c] sm:$0xf]  ;;  %v2787_v9 = vld [vmem:[%s4162_s26 + $0x8] sm:$0xf] }
 0xb9c   :  { %v3002_v19 = vld [vmem:[%s4162_s26 + $0xc] sm:$0xf] }
 0xb9f   :  { %v3149_v2 = vpop.eup %3148 }
 0xba0   :  { %v1080_v4 = vmul.f32 %v3149_v2, %v1078_v63  ;;  %vm1085_vm5 = vweird.f32 %v3149_v2  ;;  %v3151_v14 = vpop.eup %3150  ;;  %v2795_v63 = vld [vmem:[%s4162_s26 + $0x20] sm:$0xf] }
 0xba1   :  { %vm1086_vm7 = vmor %vm1084_vm6, %vm1085_vm5  ;;  %v3153_v20 = vpop.eup %3152 }
 0xba2   :  { %v1081_v5 = vsub.f32 1.0, %v1080_v4  ;;  %v1098_v21 = vadd.f32 1.0, %v3153_v20  ;;  %v2796_v4 = vor.u32 %v3007_v1, %v2795_v63 }
 0xba4   :  { %v1082_v7 = vmul.f32 %v3149_v2, %v1081_v5  ;;  %3154 = vrcp.f32 %v1098_v21  ;;  %v1110_v57 = vand.u32 2147483648, %v1098_v21  ;;  %vm1104_vm11 = vweird.f32 %v1098_v21 }
 0xba5   :  { %v1108_v53 = vand.u32 2147483647, %v1098_v21 }
 0xba6   :  { %v1083_v10 = vadd.f32 %v3149_v2, %v1082_v7  ;;  %v1111_v28 = vor.u32 1.1754944e-38, %v1110_v57  ;;  %v2805_v7 = vld [vmem:[%s4162_s26 + $0x38] sm:$0xf0] }
 0xba7   :  { %vm1109_vm5 = vcmp.eq.f32.partialorder %v1108_v53, 8.507059e+37 }
 0xba8   :  { %v1087_v13 = vsel %vm1086_vm7, %v3149_v2, %v1083_v10  ;;  %v3005_v2 = vld [vmem:[%s4162_s26 + $0x24] sm:$0xf]  ;;  %v2808_v10 = vor.u32 %v3006_v6, %v2805_v7 }
 0xba9   :  { %v1092_v15 = vsel %vm1089_vm8, %v1091_v11, %v1087_v13  ;;  %v2800_v5 = vor.u32 %v3005_v2, %v2797_v3  ;;  %v3004_v11 = vld [vmem:[%s4162_s26 + $0x14] sm:$0xf0]  ;;  %v3003_v13 = vld [vmem:[%s4162_s26 + $0xc] sm:$0xf0] }
 0xbaa   :  { %v1118_v17 = vmul.f32 %v3151_v14, %v1092_v15  ;;  %v1117_v18 = vmul.f32 %v1115_v12, %v1092_v15  ;;  %v3155_v27 = vpop.eup %3154  ;;  %v2779_v12 = vld [vmem:[%s4162_s26] sm:$0xf]  ;;  %v2788_v14 = vor.u32 %v3004_v11, %v2787_v9  ;;  %1292 = vmatpush.bf16.msrb.mxu3 %v2808_v10 }
 0xbab   :  { %v1100_v47 = vmul.f32 %v3155_v27, %v1098_v21  ;;  %vm1105_vm10 = vweird.f32 %v3155_v27  ;;  %1264 = vmatpush.bf16.msrb.mxu1 %v2800_v5  ;;  %v2780_v15 = vor.u32 %v3003_v13, %v2779_v12  ;;  %v2789_v21 = vld [vmem:[%s4162_s26 + $0x18] sm:$0xf0] }
 0xbac   :  { %1120 = vrot.lane.b32.xlu2 %v1118_v17, %s3420_s6  ;;  %vm1106_vm14 = vmor %vm1104_vm11, %vm1105_vm10  ;;  %v3001_v17 = vld [vmem:[%s4162_s26 + $0x4] sm:$0xf]  ;;  %v2792_v23 = vor.u32 %v3002_v19, %v2789_v21  ;;  %1279 = vmatpush.bf16.msrb.mxu2 %v2788_v14 }
 0xbad   :  { %v1101_v55 = vsub.f32 1.0, %v1100_v47  ;;  %v3018_v47 = vld [vmem:[#allocation7 + $0x4] sm:$0xf0] }
 0xbae   :  { %1293 = vmatpush.bf16.msrb.mxu3 %v2792_v23  ;;  %v3878_v62 = vor.u32 %v3018_v47, %v2847_v45 }
 0xbaf   :  { %v1102_v16 = vmul.f32 %v3155_v27, %v1101_v55 }
 0xbb1   :  { %v1103_v25 = vadd.f32 %v3155_v27, %v1102_v16 }
 0xbb2   :  { %1502 = vmatpush.bf16.msra.mxu3 %v3864_v35 }
 0xbb3   :  { %v1107_v8 = vsel %vm1106_vm14, %v3155_v27, %v1103_v25  ;;  %v2863_v27 = vld [vmem:[#allocation7 + $0x20] sm:$0xf] }
 0xbb4   :  { %625 = vrot.lane.b32.xlu2 %v3687_v46, %s3420_s6  ;;  %v2827_v46 = vld [vmem:[%s4162_s26 + $0x60] sm:$0xf]  ;;  %v1112_v33 = vsel %vm1109_vm5, %v1111_v28, %v1107_v8 }
 0xbb6   :  { %1503 = vmatpush.bf16.msra.mxu3 %v3868_v43 }
 0xbbc   :  { %925 = vrot.lane.b32.xlu2 %v3719_v37, %s3420_s6  ;;  %v3015_v37 = vld [vmem:[%s4162_s26 + $0x6c] sm:$0xf0] }
 0xbbd   :  { %v2828_v34 = vor.u32 %v3015_v37, %v2827_v46  ;;  %v3024_v46 = vld [vmem:[#allocation7 + $0x34] sm:$0xf0]  ;;  %v3022_v37 = vld [vmem:[#allocation7 + $0x24] sm:$0xf0] }
 0xbbe   :  { %v3859_v29 = vor.u32 %v3024_v46, %v2871_v24 }
 0xbbf   :  { %1248 = vmatpush.bf16.msrb.mxu0 %v2828_v34  ;;  %v3862_v34 = vor.u32 %v3022_v37, %v2863_v27 }
 0xbc0   :  { %1489 = vmatpush.bf16.msra.mxu2 %v3859_v29 }
 0xbc3   :  { %1249 = vmatpush.bf16.msrb.mxu0 %v2812_v48  ;;  %v3019_v48 = vld [vmem:[#allocation7 + $0x14] sm:$0xf] }
 0xbc4   :  { %1490 = vmatpush.bf16.msra.mxu2 %v3862_v34  ;;  %v3883_v50 = vor.u32 %v3019_v48, %v2857_v26 }
 0xbc6   :  { %1504 = vmatpush.bf16.msra.mxu3 %v3883_v50 }
 0xbc7   :  { %1250 = vmatpush.bf16.msrb.mxu0 %v2796_v4 }
 0xbc8   :  { %1491 = vmatpush.bf16.msra.mxu2 %v3872_v44 }
 0xbca   :  { %1505 = vmatpush.bf16.msra.mxu3 %v3886_v52 }
 0xbcb   :  { %1251 = vmatpush.bf16.msrb.mxu0 %v2780_v15 }
 0xbcc   :  { %1492 = vmatpush.bf16.msra.mxu2 %v3878_v62 }
 0xbcf   :  { %1398 = vmatpush.bf16.msra.mxu0 %v3859_v29 }
 0xbd3   :  { %1399 = vmatpush.bf16.msra.mxu0 %v3862_v34 }
 0xbd7   :  { %1400 = vmatpush.bf16.msra.mxu0 %v3872_v44 }
 0xbdb   :  { %1401 = vmatpush.bf16.msra.mxu0 %v3878_v62 }
 0xc06   :  { %v1121_v22 = vpop.permute.xlu2 %1120 }
 0xc07   :  { %v1123_v56 = vadd.f32 %v1121_v22, %v1117_v18  ;;  %v2781_v18 = vld [vmem:[%s4162_s26 + $0x10] sm:$0xf0] }
 0xc08   :  { %v2784_v20 = vor.u32 %v3001_v17, %v2781_v18 }
 0xc09   :  { %3156 = vtanh.f32 %v1123_v56 }
 0xc0a   :  { %1265 = vmatpush.bf16.msrb.mxu1 %v2784_v20 }
 0xc0e   :  { %v626_v31 = vpop.permute.xlu2 %625  ;;  %1411 = vmatpush.bf16.msra.mxu1 %v3864_v35 }
 0xc0f   :  { %v3157_v58 = vpop.eup %3156  ;;  %629 = vst.msk [vmem:[#allocation3] sm:$0x30] %vm628_vm3, %v626_v31 }
 0xc10   :  { %631 = vst.msk [vmem:[#allocation3 + $0x6] sm:$0x30] %vm630_vm4, %v626_v31  ;;  %v1125_v59 = vmul.f32 %v3157_v58, %v1112_v33 }
 0xc12   :  { %1127 = vrot.lane.b32.xlu1 %v1125_v59, %s3420_s6  ;;  %1412 = vmatpush.bf16.msra.mxu1 %v3868_v43 }
 0xc16   :  { %v926_v38 = vpop.permute.xlu2 %925  ;;  %1413 = vmatpush.bf16.msra.mxu1 %v3883_v50 }
 0xc17   :  { %928 = vst.msk [vmem:[#allocation3 + $0x8] sm:$0xc] %vm525_vm1, %v926_v38 }
 0xc18   :  { %929 = vst.msk [vmem:[#allocation3 + $0x2] sm:$0xc] %vm527_vm2, %v926_v38 }
 0xc1a   :  { %1414 = vmatpush.bf16.msra.mxu1 %v3886_v52 }
 0xc84   :  { %v1128_v54 = vpop.permute.xlu1 %1127 }
 0xc85   :  { %1130 = vst.msk [vmem:[#allocation3 + $0x8] sm:$0xc0] %vm731_vm15, %v1128_v54 }
 0xc86   :  { %1131 = vst.msk [vmem:[#allocation3 - $0x6] sm:$0xc0] %vm733_vm0, %v1128_v54 }
 0xc8c   :  { %v1133_v55 = vld [vmem:[#allocation3 + $0x8] sm:$0xff] }
 0xc8d   :  { %v1132_v16 = vld [vmem:[#allocation3] sm:$0xff] }
 0xc8e   :  { %v1134_v22 = vpack.c.bf16 %v1133_v55, %v1132_v16 }
 0xc90   :  { %2841 = vmatmul.msk.bf16.vlgmr.msrb.gmra.mxu0 %vm339_vm9, %v1134_v22  ;;  %2842 = vmatmul.msk.bf16.vlgmr.msrb.gmra.mxu1 %vm339_vm9, %v1134_v22 }
 0xc91   :  { %2843 = vmatmul.msk.bf16.vlgmr.msrb.gmra.mxu2 %vm339_vm9, %v1134_v22  ;;  %2844 = vmatmul.msk.bf16.vlgmr.msrb.gmra.mxu3 %vm339_vm9, %v1134_v22 }
 0xc92   :  { %1590 = vmatpush.bf16.msrb.mxu0 %v3859_v29  ;;  %1603 = vmatpush.bf16.msrb.mxu1 %v3864_v35 }
 0xc93   :  { %1691 = vmatpush.bf16.msrb.mxu2 %v3859_v29  ;;  %1704 = vmatpush.bf16.msrb.mxu3 %v3864_v35 }
 0xc96   :  { %1591 = vmatpush.bf16.msrb.mxu0 %v3862_v34  ;;  %1604 = vmatpush.bf16.msrb.mxu1 %v3868_v43 }
 0xc97   :  { %1692 = vmatpush.bf16.msrb.mxu2 %v3862_v34  ;;  %1705 = vmatpush.bf16.msrb.mxu3 %v3868_v43 }
 0xc9a   :  { %1592 = vmatpush.bf16.msrb.mxu0 %v3872_v44  ;;  %1605 = vmatpush.bf16.msrb.mxu1 %v3883_v50 }
 0xc9b   :  { %1693 = vmatpush.bf16.msrb.mxu2 %v3872_v44  ;;  %1706 = vmatpush.bf16.msrb.mxu3 %v3883_v50 }
 0xc9e   :  { %1593 = vmatpush.bf16.msrb.mxu0 %v3878_v62  ;;  %1606 = vmatpush.bf16.msrb.mxu1 %v3886_v52 }
 0xc9f   :  { %1694 = vmatpush.bf16.msrb.mxu2 %v3878_v62  ;;  %1707 = vmatpush.bf16.msrb.mxu3 %v3886_v52 }
 0xca0   :  { %1402 = vmatmul.bf16.vlgmr.msra.gmra.mxu0 %v3425_v39  ;;  %1415 = vmatmul.bf16.vlgmr.msra.gmra.mxu1 %v3425_v39  ;;  %v1151_v39 = vld [vmem:[%s4163_s22] sm:$0xf] }
 0xca1   :  { %v1155_v57 = vperm.slane %v1151_v39, 2  ;;  %v1156_v53 = vperm.slane %v1151_v39, 3  ;;  %v1153_v8 = vperm.slane %v1151_v39, 0  ;;  %v1154_v28 = vperm.slane %v1151_v39, 1 }
 0xca2   :  { %1792 = vmatpush.bf16.msra.mxu0 %v3859_v29  ;;  %1805 = vmatpush.bf16.msra.mxu1 %v3864_v35 }
 0xca6   :  { %1793 = vmatpush.bf16.msra.mxu0 %v3862_v34  ;;  %1806 = vmatpush.bf16.msra.mxu1 %v3868_v43 }
 0xcaa   :  { %1794 = vmatpush.bf16.msra.mxu0 %v3872_v44  ;;  %1807 = vmatpush.bf16.msra.mxu1 %v3883_v50 }
 0xcae   :  { %1795 = vmatpush.bf16.msra.mxu0 %v3878_v62  ;;  %1808 = vmatpush.bf16.msra.mxu1 %v3886_v52 }
 0xd0d   :  { %v1253_v56 = vpop.f32.mrf.mxu0  ;;  %v1267_v25 = vpop.f32.mrf.mxu1 }
 0xd0e   :  { %v1254_v15 = vadd.f32 %v1253_v56, %v1153_v8  ;;  %v1268_v17 = vadd.f32 %v1267_v25, %v1154_v28 }
 0xd14   :  { %v1281_v31 = vpop.f32.mrf.mxu2  ;;  %v1295_v58 = vpop.f32.mrf.mxu3 }
 0xd15   :  { %v1282_v33 = vadd.f32 %v1281_v31, %v1155_v57  ;;  %v1296_v59 = vadd.f32 %v1295_v58, %v1156_v53  ;;  %v1255_v38 = vpop.f32.mrf.mxu0  ;;  %v1269_v60 = vpop.f32.mrf.mxu1 }
 0xd16   :  { %v1256_v61 = vadd.f32 %v1255_v38, %v1153_v8  ;;  %v1270_v63 = vadd.f32 %v1269_v60, %v1154_v28 }
 0xd17   :  { %v1324_v0 = vrot.slane %v1282_v33, 6  ;;  %v1332_v1 = vrot.slane %v1282_v33, 2  ;;  %v1325_v2 = vrot.slane %v1296_v59, 6  ;;  %v1333_v3 = vrot.slane %v1296_v59, 2 }
 0xd19   :  { %v1328_v4 = vadd.f32 %v1324_v0, %v1256_v61  ;;  %v1336_v5 = vadd.f32 %v1332_v1, %v1256_v61  ;;  %v1329_v6 = vadd.f32 %v1325_v2, %v1270_v63  ;;  %v1337_v7 = vadd.f32 %v1333_v3, %v1270_v63 }
 0xd1b   :  { %1330 = vst [vmem:[#allocation2 + $0x18] sm:$0x33] %v1328_v4  }
 0xd1c   :  { %1338 = vst [vmem:[#allocation2 + $0x18] sm:$0xcc] %v1336_v5   ;;  %v1283_v9 = vpop.f32.mrf.mxu2  ;;  %v1297_v10 = vpop.f32.mrf.mxu3 }
 0xd1d   :  { %1331 = vst [vmem:[#allocation2 + $0x8] sm:$0x33] %v1329_v6   ;;  %v1284_v11 = vadd.f32 %v1283_v9, %v1155_v57  ;;  %v1298_v12 = vadd.f32 %v1297_v10, %v1156_v53  ;;  %v1403_v13 = vpop.f32.mrf.mxu0  ;;  %v1416_v14 = vpop.f32.mrf.mxu1 }
 0xd1e   :  { %1339 = vst [vmem:[#allocation2 + $0x8] sm:$0xcc] %v1337_v7  }
 0xd1f   :  { %v1302_v18 = vrot.slane %v1284_v11, 6  ;;  %v1310_v19 = vrot.slane %v1284_v11, 2  ;;  %v1303_v20 = vrot.slane %v1298_v12, 6  ;;  %v1311_v21 = vrot.slane %v1298_v12, 2 }
 0xd21   :  { %v1306_v23 = vadd.f32 %v1302_v18, %v1254_v15  ;;  %v1314_v24 = vadd.f32 %v1310_v19, %v1254_v15  ;;  %v1307_v46 = vadd.f32 %v1303_v20, %v1268_v17  ;;  %v1315_v27 = vadd.f32 %v1311_v21, %v1268_v17 }
 0xd23   :  { %1308 = vst [vmem:[#allocation2 + $0x10] sm:$0x33] %v1306_v23  }
 0xd24   :  { %1316 = vst [vmem:[#allocation2 + $0x10] sm:$0xcc] %v1314_v24  }
 0xd25   :  { %1309 = vst [vmem:[#allocation2] sm:$0x33] %v1307_v46   ;;  %v1405_v37 = vpop.f32.mrf.mxu0  ;;  %v1418_v30 = vpop.f32.mrf.mxu1 }
 0xd26   :  { %1317 = vst [vmem:[#allocation2] sm:$0xcc] %v1315_v27  }
 0xd2a   :  { %v1352_v32 = vld [vmem:[#allocation2 + $0x10] sm:$0x3] }
 0xd2b   :  { %v1420_v36 = vadd.f32 %v1403_v13, %v1352_v32  ;;  %v1476_v13 = vld [vmem:[#allocation2 + $0x10] sm:$0xc] }
 0xd2c   :  { %v1353_v45 = vld [vmem:[#allocation2] sm:$0x3] }
 0xd2d   :  { %v2877_v40 = vmul.f32 -1.442695, %v1420_v36  ;;  %v1421_v48 = vadd.f32 %v1416_v14, %v1353_v45  ;;  %v1477_v23 = vld [vmem:[#allocation2] sm:$0xc] }
 0xd2f   :  { %3158 = vpow2.f32 %v2877_v40  ;;  %v2878_v53 = vmul.f32 -1.442695, %v1421_v48 }
 0xd35   :  { %v3159_v41 = vpop.eup %3158 }
 0xd36   :  { %v1425_v42 = vadd.f32 1.0, %v3159_v41 }
 0xd38   :  { %3160 = vrcp.f32 %v1425_v42  ;;  %v1437_v51 = vand.u32 2147483648, %v1425_v42  ;;  %v1435_v55 = vand.u32 2147483647, %v1425_v42  ;;  %vm1431_vm7 = vweird.f32 %v1425_v42 }
 0xd39   :  { %3162 = vtanh.f32 %v1421_v48 }
 0xd3a   :  { %v1438_v22 = vor.u32 1.1754944e-38, %v1437_v51  ;;  %vm1436_vm10 = vcmp.eq.f32.partialorder %v1435_v55, 8.507059e+37  ;;  %3164 = vpow2.f32 %v2878_v53 }
 0xd3e   :  { %v3161_v47 = vpop.eup %3160 }
 0xd3f   :  { %v1427_v26 = vmul.f32 %v3161_v47, %v1425_v42  ;;  %vm1432_vm6 = vweird.f32 %v3161_v47  ;;  %v3163_v25 = vpop.eup %3162 }
 0xd40   :  { %vm1433_vm8 = vmor %vm1431_vm7, %vm1432_vm6  ;;  %v3165_v8 = vpop.eup %3164 }
 0xd41   :  { %v1428_v49 = vsub.f32 1.0, %v1427_v26  ;;  %v1445_v28 = vadd.f32 1.0, %v3165_v8 }
 0xd43   :  { %v1429_v54 = vmul.f32 %v3161_v47, %v1428_v49  ;;  %3166 = vrcp.f32 %v1445_v28  ;;  %v1457_v0 = vand.u32 2147483648, %v1445_v28  ;;  %vm1451_vm14 = vweird.f32 %v1445_v28 }
 0xd44   :  { %v1455_v1 = vand.u32 2147483647, %v1445_v28 }
 0xd45   :  { %v1430_v16 = vadd.f32 %v3161_v47, %v1429_v54  ;;  %v1458_v3 = vor.u32 1.1754944e-38, %v1457_v0 }
 0xd46   :  { %vm1456_vm6 = vcmp.eq.f32.partialorder %v1455_v1, 8.507059e+37 }
 0xd47   :  { %v1434_v56 = vsel %vm1433_vm8, %v3161_v47, %v1430_v16 }
 0xd48   :  { %v1439_v39 = vsel %vm1436_vm10, %v1438_v22, %v1434_v56 }
 0xd49   :  { %v1462_v57 = vmul.f32 %v3163_v25, %v1439_v39  ;;  %v3167_v31 = vpop.eup %3166  ;;  %v1461_v38 = vmul.f32 0.0, %v1439_v39 }
 0xd4a   :  { %v1447_v58 = vmul.f32 %v3167_v31, %v1445_v28  ;;  %vm1452_vm11 = vweird.f32 %v3167_v31 }
 0xd4b   :  { %1464 = vrot.lane.b32.xlu2 %v1462_v57, %s3420_s6  ;;  %vm1453_vm5 = vmor %vm1451_vm14, %vm1452_vm11 }
 0xd4c   :  { %v1448_v33 = vsub.f32 1.0, %v1447_v58 }
 0xd4e   :  { %v1449_v59 = vmul.f32 %v3167_v31, %v1448_v33 }
 0xd50   :  { %v1450_v63 = vadd.f32 %v3167_v31, %v1449_v59 }
 0xd52   :  { %v1454_v2 = vsel %vm1453_vm5, %v3167_v31, %v1450_v63 }
 0xd53   :  { %v1459_v5 = vsel %vm1456_vm6, %v1458_v3, %v1454_v2  ;;  %v1576_v3 = vld [vmem:[#allocation2 + $0x10] sm:$0x30] }
 0xda5   :  { %v1465_v60 = vpop.permute.xlu2 %1464 }
 0xda6   :  { %v1467_v61 = vadd.f32 %v1465_v60, %v1461_v38 }
 0xda8   :  { %3168 = vtanh.f32 %v1467_v61  ;;  %v1559_v42 = vrot.slane %v1467_v61, 6 }
 0xdae   :  { %v3169_v4 = vpop.eup %3168 }
 0xdaf   :  { %v3927_v6 = vmul.f32 %v3169_v4, %v1459_v5 }
 0xdb1   :  { %v1478_v7 = vpack.c.bf16 %v3927_v6, %v3927_v6 }
 0xdb3   :  { %1480 = vrot.lane.b32.xlu0 %v1478_v7, %s3420_s6 }
 0xe25   :  { %v1481_v9 = vpop.permute.xlu0 %1480 }
 0xe26   :  { %2879 = vmatmul.msk.bf16.vlgmr.msra.gmra.mxu2 %vm339_vm9, %v1481_v9  ;;  %2880 = vmatmul.msk.bf16.vlgmr.msra.gmra.mxu3 %vm339_vm9, %v1481_v9 }
 0xe27   :  { %1886 = vmatpush.bf16.msra.mxu2 %v3859_v29  ;;  %1899 = vmatpush.bf16.msra.mxu3 %v3864_v35 }
 0xe2b   :  { %1887 = vmatpush.bf16.msra.mxu2 %v3862_v34  ;;  %1900 = vmatpush.bf16.msra.mxu3 %v3868_v43 }
 0xe2f   :  { %1888 = vmatpush.bf16.msra.mxu2 %v3872_v44  ;;  %1901 = vmatpush.bf16.msra.mxu3 %v3883_v50 }
 0xe33   :  { %1889 = vmatpush.bf16.msra.mxu2 %v3878_v62  ;;  %1902 = vmatpush.bf16.msra.mxu3 %v3886_v52 }
 0xea9   :  { %v1494_v10 = vpop.f32.mrf.mxu2  ;;  %v1507_v11 = vpop.f32.mrf.mxu3 }
 0xeaa   :  { %v1513_v12 = vrot.slane %v1494_v10, 6  ;;  %v1514_v21 = vrot.slane %v1507_v11, 6 }
 0xeac   :  { %v1517_v14 = vadd.f32 %v1513_v12, %v1476_v13  ;;  %v1518_v46 = vadd.f32 %v1514_v21, %v1477_v23  ;;  %v1577_v13 = vld [vmem:[#allocation2] sm:$0x30] }
 0xeae   :  { %v2881_v15 = vmul.f32 -1.442695, %v1517_v14  ;;  %v2882_v51 = vmul.f32 -1.442695, %v1518_v46 }
 0xeb0   :  { %3170 = vpow2.f32 %v2881_v15 }
 0xeb1   :  { %v1496_v17 = vpop.f32.mrf.mxu2  ;;  %v1509_v18 = vpop.f32.mrf.mxu3 }
 0xeb6   :  { %v3171_v19 = vpop.eup %3170 }
 0xeb7   :  { %v1522_v20 = vadd.f32 1.0, %v3171_v19 }
 0xeb9   :  { %3172 = vrcp.f32 %v1522_v20  ;;  %v1534_v30 = vand.u32 2147483648, %v1522_v20  ;;  %v1532_v36 = vand.u32 2147483647, %v1522_v20  ;;  %vm1528_vm8 = vweird.f32 %v1522_v20 }
 0xeba   :  { %3174 = vtanh.f32 %v1518_v46 }
 0xebb   :  { %v1535_v41 = vor.u32 1.1754944e-38, %v1534_v30  ;;  %vm1533_vm11 = vcmp.eq.f32.partialorder %v1532_v36, 8.507059e+37  ;;  %3176 = vpow2.f32 %v2882_v51 }
 0xebf   :  { %v3173_v24 = vpop.eup %3172 }
 0xec0   :  { %v1524_v27 = vmul.f32 %v3173_v24, %v1522_v20  ;;  %vm1529_vm7 = vweird.f32 %v3173_v24  ;;  %v3175_v47 = vpop.eup %3174 }
 0xec1   :  { %vm1530_vm10 = vmor %vm1528_vm8, %vm1529_vm7  ;;  %v3177_v54 = vpop.eup %3176 }
 0xec2   :  { %v1525_v37 = vsub.f32 1.0, %v1524_v27  ;;  %v1542_v55 = vadd.f32 1.0, %v3177_v54 }
 0xec4   :  { %v1526_v32 = vmul.f32 %v3173_v24, %v1525_v37  ;;  %3178 = vrcp.f32 %v1542_v55  ;;  %v1554_v8 = vand.u32 2147483648, %v1542_v55  ;;  %vm1548_vm5 = vweird.f32 %v1542_v55 }
 0xec5   :  { %v1552_v28 = vand.u32 2147483647, %v1542_v55 }
 0xec6   :  { %v1527_v40 = vadd.f32 %v3173_v24, %v1526_v32  ;;  %v1555_v58 = vor.u32 1.1754944e-38, %v1554_v8 }
 0xec7   :  { %vm1553_vm7 = vcmp.eq.f32.partialorder %v1552_v28, 8.507059e+37 }
 0xec8   :  { %v1531_v45 = vsel %vm1530_vm10, %v3173_v24, %v1527_v40 }
 0xec9   :  { %v1536_v48 = vsel %vm1533_vm11, %v1535_v41, %v1531_v45 }
 0xeca   :  { %v1562_v26 = vmul.f32 %v3175_v47, %v1536_v48  ;;  %v1561_v49 = vmul.f32 %v1559_v42, %v1536_v48  ;;  %v3179_v16 = vpop.eup %3178 }
 0xecb   :  { %v1544_v22 = vmul.f32 %v3179_v16, %v1542_v55  ;;  %vm1549_vm14 = vweird.f32 %v3179_v16 }
 0xecc   :  { %1564 = vrot.lane.b32.xlu1 %v1562_v26, %s3420_s6  ;;  %vm1550_vm6 = vmor %vm1548_vm5, %vm1549_vm14 }
 0xecd   :  { %v1545_v56 = vsub.f32 1.0, %v1544_v22 }
 0xecf   :  { %v1546_v25 = vmul.f32 %v3179_v16, %v1545_v56 }
 0xed1   :  { %v1547_v53 = vadd.f32 %v3179_v16, %v1546_v25 }
 0xed3   :  { %v1551_v31 = vsel %vm1550_vm6, %v3179_v16, %v1547_v53 }
 0xed4   :  { %v1556_v59 = vsel %vm1553_vm7, %v1555_v58, %v1551_v31 }
 0xf3e   :  { %v1565_v39 = vpop.permute.xlu1 %1564 }
 0xf3f   :  { %v1567_v57 = vadd.f32 %v1565_v39, %v1561_v49 }
 0xf41   :  { %3180 = vtanh.f32 %v1567_v57  ;;  %v1660_v46 = vrot.slane %v1567_v57, 6 }
 0xf47   :  { %v3181_v33 = vpop.eup %3180 }
 0xf48   :  { %v3943_v38 = vmul.f32 %v3181_v33, %v1556_v59  ;;  %v1677_v59 = vld [vmem:[#allocation2 + $0x10] sm:$0xc0] }
 0xf4a   :  { %v1578_v60 = vpack.c.bf16 %v3943_v38, %v3943_v38 }
 0xf4c   :  { %v1580_v61 = vrot.slane %v1578_v60, 1 }
 0xf4e   :  { %1581 = vrot.lane.b32.xlu2 %v1580_v61, %s3420_s6 }
 0xfa8   :  { %v1582_v63 = vpop.permute.xlu2 %1581 }
 0xfa9   :  { %2883 = vmatmul.msk.bf16.vlgmr.msrb.gmra.mxu0 %vm339_vm9, %v1582_v63  ;;  %2884 = vmatmul.msk.bf16.vlgmr.msrb.gmra.mxu1 %vm339_vm9, %v1582_v63 }
 0xfaa   :  { %1987 = vmatpush.bf16.msrb.mxu0 %v3859_v29  ;;  %2000 = vmatpush.bf16.msrb.mxu1 %v3864_v35 }
 0xfae   :  { %1988 = vmatpush.bf16.msrb.mxu0 %v3862_v34  ;;  %2001 = vmatpush.bf16.msrb.mxu1 %v3868_v43 }
 0xfb2   :  { %1989 = vmatpush.bf16.msrb.mxu0 %v3872_v44  ;;  %2002 = vmatpush.bf16.msrb.mxu1 %v3883_v50 }
 0xfb6   :  { %1990 = vmatpush.bf16.msrb.mxu0 %v3878_v62  ;;  %2003 = vmatpush.bf16.msrb.mxu1 %v3886_v52 }
0x1026   :  { %v1595_v0 = vpop.f32.mrf.mxu0  ;;  %v1608_v1 = vpop.f32.mrf.mxu1 }
0x1027   :  { %v1614_v2 = vrot.slane %v1595_v0, 4  ;;  %v1615_v12 = vrot.slane %v1608_v1, 4 }
0x1029   :  { %v1618_v4 = vadd.f32 %v1614_v2, %v1576_v3  ;;  %v1619_v15 = vadd.f32 %v1615_v12, %v1577_v13 }
0x102b   :  { %v2885_v5 = vmul.f32 -1.442695, %v1618_v4  ;;  %v2886_v40 = vmul.f32 -1.442695, %v1619_v15 }
0x102d   :  { %3182 = vpow2.f32 %v2885_v5 }
0x102e   :  { %v1597_v7 = vpop.f32.mrf.mxu0  ;;  %v1610_v9 = vpop.f32.mrf.mxu1 }
0x1033   :  { %v3183_v10 = vpop.eup %3182 }
0x1034   :  { %v1623_v11 = vadd.f32 1.0, %v3183_v10 }
0x1036   :  { %3184 = vrcp.f32 %v1623_v11  ;;  %v1635_v19 = vand.u32 2147483648, %v1623_v11  ;;  %v1633_v21 = vand.u32 2147483647, %v1623_v11  ;;  %vm1629_vm10 = vweird.f32 %v1623_v11 }
0x1037   :  { %3186 = vtanh.f32 %v1619_v15 }
0x1038   :  { %v1636_v24 = vor.u32 1.1754944e-38, %v1635_v19  ;;  %vm1634_vm14 = vcmp.eq.f32.partialorder %v1633_v21, 8.507059e+37  ;;  %3188 = vpow2.f32 %v2886_v40 }
0x103c   :  { %v3185_v14 = vpop.eup %3184 }
0x103d   :  { %v1625_v17 = vmul.f32 %v3185_v14, %v1623_v11  ;;  %vm1630_vm8 = vweird.f32 %v3185_v14  ;;  %v3187_v37 = vpop.eup %3186 }
0x103e   :  { %vm1631_vm11 = vmor %vm1629_vm10, %vm1630_vm8  ;;  %v3189_v41 = vpop.eup %3188 }
0x103f   :  { %v1626_v18 = vsub.f32 1.0, %v1625_v17  ;;  %v1643_v42 = vadd.f32 1.0, %v3189_v41 }
0x1041   :  { %v1627_v20 = vmul.f32 %v3185_v14, %v1626_v18  ;;  %3190 = vrcp.f32 %v1643_v42  ;;  %v1655_v55 = vand.u32 2147483648, %v1643_v42  ;;  %vm1649_vm6 = vweird.f32 %v1643_v42 }
0x1042   :  { %v1653_v16 = vand.u32 2147483647, %v1643_v42 }
0x1043   :  { %v1628_v23 = vadd.f32 %v3185_v14, %v1627_v20  ;;  %v1656_v56 = vor.u32 1.1754944e-38, %v1655_v55 }
0x1044   :  { %vm1654_vm8 = vcmp.eq.f32.partialorder %v1653_v16, 8.507059e+37 }
0x1045   :  { %v1632_v27 = vsel %vm1631_vm11, %v3185_v14, %v1628_v23 }
0x1046   :  { %v1637_v30 = vsel %vm1634_vm14, %v1636_v24, %v1632_v27 }
0x1047   :  { %v1663_v32 = vmul.f32 %v3187_v37, %v1637_v30  ;;  %v1662_v36 = vmul.f32 %v1660_v46, %v1637_v30  ;;  %v3191_v45 = vpop.eup %3190 }
0x1048   :  { %v1645_v47 = vmul.f32 %v3191_v45, %v1643_v42  ;;  %vm1650_vm5 = vweird.f32 %v3191_v45 }
0x1049   :  { %1665 = vrot.lane.b32.xlu0 %v1663_v32, %s3420_s6  ;;  %vm1651_vm7 = vmor %vm1649_vm6, %vm1650_vm5 }
0x104a   :  { %v1646_v48 = vsub.f32 1.0, %v1645_v47 }
0x104c   :  { %v1647_v26 = vmul.f32 %v3191_v45, %v1646_v48  ;;  %v1778_v48 = vld [vmem:[#allocation2 + $0x18] sm:$0x3] }
0x104e   :  { %v1648_v54 = vadd.f32 %v3191_v45, %v1647_v26 }
0x1050   :  { %v1652_v22 = vsel %vm1651_vm7, %v3191_v45, %v1648_v54 }
0x1051   :  { %v1657_v39 = vsel %vm1654_vm8, %v1656_v56, %v1652_v22 }
0x10bb   :  { %v1666_v49 = vpop.permute.xlu0 %1665 }
0x10bc   :  { %v1668_v51 = vadd.f32 %v1666_v49, %v1662_v36 }
0x10be   :  { %3192 = vtanh.f32 %v1668_v51  ;;  %v1761_v7 = vrot.slane %v1668_v51, 6 }
0x10c4   :  { %v3193_v25 = vpop.eup %3192 }
0x10c5   :  { %v3959_v57 = vmul.f32 %v3193_v25, %v1657_v39  ;;  %v1779_v25 = vld [vmem:[#allocation2 + $0x8] sm:$0x3] }
0x10c7   :  { %v1679_v53 = vpack.c.bf16 %v3959_v57, %v3959_v57 }
0x10c9   :  { %v1681_v8 = vrot.slane %v1679_v53, 2 }
0x10cb   :  { %1682 = vrot.lane.b32.xlu1 %v1681_v8, %s3420_s6 }
0x113d   :  { %v1683_v28 = vpop.permute.xlu1 %1682 }
0x113e   :  { %2887 = vmatmul.msk.bf16.vlgmr.msrb.gmra.mxu2 %vm339_vm9, %v1683_v28  ;;  %2888 = vmatmul.msk.bf16.vlgmr.msrb.gmra.mxu3 %vm339_vm9, %v1683_v28 }
0x113f   :  { %2088 = vmatpush.bf16.msrb.mxu2 %v3859_v29  ;;  %2101 = vmatpush.bf16.msrb.mxu3 %v3864_v35 }
0x1143   :  { %2089 = vmatpush.bf16.msrb.mxu2 %v3862_v34  ;;  %2102 = vmatpush.bf16.msrb.mxu3 %v3868_v43 }
0x1147   :  { %2090 = vmatpush.bf16.msrb.mxu2 %v3872_v44  ;;  %2103 = vmatpush.bf16.msrb.mxu3 %v3883_v50  ;;  %v1678_v44 = vld [vmem:[#allocation2] sm:$0xc0] }
0x114b   :  { %2091 = vmatpush.bf16.msrb.mxu2 %v3878_v62  ;;  %2104 = vmatpush.bf16.msrb.mxu3 %v3886_v52 }
0x11c1   :  { %v1696_v31 = vpop.f32.mrf.mxu2  ;;  %v1709_v58 = vpop.f32.mrf.mxu3 }
0x11c2   :  { %v1715_v33 = vrot.slane %v1696_v31, 2  ;;  %v1716_v43 = vrot.slane %v1709_v58, 2 }
0x11c4   :  { %v1719_v60 = vadd.f32 %v1715_v33, %v1677_v59  ;;  %v1720_v50 = vadd.f32 %v1716_v43, %v1678_v44 }
0x11c6   :  { %v2889_v29 = vmul.f32 -1.442695, %v1719_v60  ;;  %v2890_v14 = vmul.f32 -1.442695, %v1720_v50 }
0x11c8   :  { %3194 = vpow2.f32 %v2889_v29 }
0x11c9   :  { %v1698_v35 = vpop.f32.mrf.mxu2  ;;  %v1711_v61 = vpop.f32.mrf.mxu3 }
0x11ce   :  { %v3195_v34 = vpop.eup %3194 }
0x11cf   :  { %v1724_v63 = vadd.f32 1.0, %v3195_v34 }
0x11d1   :  { %3196 = vrcp.f32 %v1724_v63  ;;  %v1736_v52 = vand.u32 2147483648, %v1724_v63  ;;  %v1734_v3 = vand.u32 2147483647, %v1724_v63  ;;  %vm1730_vm11 = vweird.f32 %v1724_v63 }
0x11d2   :  { %3198 = vtanh.f32 %v1720_v50 }
0x11d3   :  { %v1737_v5 = vor.u32 1.1754944e-38, %v1736_v52  ;;  %vm1735_vm5 = vcmp.eq.f32.partialorder %v1734_v3, 8.507059e+37  ;;  %3200 = vpow2.f32 %v2890_v14 }
0x11d7   :  { %v3197_v0 = vpop.eup %3196 }
0x11d8   :  { %v1726_v1 = vmul.f32 %v3197_v0, %v1724_v63  ;;  %vm1731_vm10 = vweird.f32 %v3197_v0  ;;  %v3199_v10 = vpop.eup %3198 }
0x11d9   :  { %vm1732_vm14 = vmor %vm1730_vm11, %vm1731_vm10  ;;  %v3201_v15 = vpop.eup %3200 }
0x11da   :  { %v1727_v62 = vsub.f32 1.0, %v1726_v1  ;;  %v1744_v17 = vadd.f32 1.0, %v3201_v15 }
0x11dc   :  { %v1728_v2 = vmul.f32 %v3197_v0, %v1727_v62  ;;  %3202 = vrcp.f32 %v1744_v17  ;;  %v1756_v27 = vand.u32 2147483648, %v1744_v17  ;;  %vm1750_vm7 = vweird.f32 %v1744_v17 }
0x11dd   :  { %v1754_v37 = vand.u32 2147483647, %v1744_v17 }
0x11de   :  { %v1729_v4 = vadd.f32 %v3197_v0, %v1728_v2  ;;  %v1757_v32 = vor.u32 1.1754944e-38, %v1756_v27 }
0x11df   :  { %vm1755_vm10 = vcmp.eq.f32.partialorder %v1754_v37, 8.507059e+37 }
0x11e0   :  { %v1733_v9 = vsel %vm1732_vm14, %v3197_v0, %v1729_v4 }
0x11e1   :  { %v1738_v11 = vsel %vm1735_vm5, %v1737_v5, %v1733_v9 }
0x11e2   :  { %v1764_v12 = vmul.f32 %v3199_v10, %v1738_v11  ;;  %v1763_v13 = vmul.f32 %v1761_v7, %v1738_v11  ;;  %v3203_v18 = vpop.eup %3202 }
0x11e3   :  { %v1746_v19 = vmul.f32 %v3203_v18, %v1744_v17  ;;  %vm1751_vm6 = vweird.f32 %v3203_v18 }
0x11e4   :  { %1766 = vrot.lane.b32.xlu2 %v1764_v12, %s3420_s6  ;;  %vm1752_vm8 = vmor %vm1750_vm7, %vm1751_vm6 }
0x11e5   :  { %v1747_v20 = vsub.f32 1.0, %v1746_v19 }
0x11e7   :  { %v1748_v21 = vmul.f32 %v3203_v18, %v1747_v20 }
0x11e9   :  { %v1749_v46 = vadd.f32 %v3203_v18, %v1748_v21  ;;  %v1873_v21 = vld [vmem:[#allocation2 + $0x18] sm:$0xc] }
0x11eb   :  { %v1753_v30 = vsel %vm1752_vm8, %v3203_v18, %v1749_v46 }
0x11ec   :  { %v1758_v40 = vsel %vm1755_vm10, %v1757_v32, %v1753_v30 }
0x123e   :  { %v1767_v23 = vpop.permute.xlu2 %1766 }
0x123f   :  { %v1769_v24 = vadd.f32 %v1767_v23, %v1763_v13 }
0x1241   :  { %3204 = vtanh.f32 %v1769_v24  ;;  %v1856_v29 = vrot.slane %v1769_v24, 6 }
0x1247   :  { %v3205_v36 = vpop.eup %3204 }
0x1248   :  { %v3975_v41 = vmul.f32 %v3205_v36, %v1758_v40  ;;  %v1874_v36 = vld [vmem:[#allocation2 + $0x8] sm:$0xc] }
0x124a   :  { %v1780_v42 = vpack.c.bf16 %v3975_v41, %v3975_v41 }
0x124c   :  { %v1782_v45 = vrot.slane %v1780_v42, 3 }
0x124e   :  { %1783 = vrot.lane.b32.xlu0 %v1782_v45, %s3420_s6 }
0x12c0   :  { %v1784_v47 = vpop.permute.xlu0 %1783 }
0x12c1   :  { %2891 = vmatmul.msk.bf16.vlgmr.msra.gmra.mxu0 %vm339_vm9, %v1784_v47  ;;  %2892 = vmatmul.msk.bf16.vlgmr.msra.gmra.mxu1 %vm339_vm9, %v1784_v47 }
0x133e   :  { %v1797_v26 = vpop.f32.mrf.mxu0  ;;  %v1810_v49 = vpop.f32.mrf.mxu1 }
0x133f   :  { %v1814_v51 = vadd.f32 %v1797_v26, %v1778_v48  ;;  %v1815_v53 = vadd.f32 %v1810_v49, %v1779_v25 }
0x1341   :  { %v2893_v54 = vmul.f32 -1.442695, %v1814_v51  ;;  %v2894_v44 = vmul.f32 -1.442695, %v1815_v53 }
0x1343   :  { %3206 = vpow2.f32 %v2893_v54 }
0x1346   :  { %v1799_v55 = vpop.f32.mrf.mxu0  ;;  %v1812_v16 = vpop.f32.mrf.mxu1 }
0x1349   :  { %v3207_v22 = vpop.eup %3206 }
0x134a   :  { %v1819_v56 = vadd.f32 1.0, %v3207_v22 }
0x134c   :  { %3208 = vrcp.f32 %v1819_v56  ;;  %v1831_v31 = vand.u32 2147483648, %v1819_v56  ;;  %v1829_v33 = vand.u32 2147483647, %v1819_v56  ;;  %vm1825_vm14 = vweird.f32 %v1819_v56 }
0x134d   :  { %3210 = vtanh.f32 %v1815_v53 }
0x134e   :  { %v1832_v60 = vor.u32 1.1754944e-38, %v1831_v31  ;;  %vm1830_vm6 = vcmp.eq.f32.partialorder %v1829_v33, 8.507059e+37  ;;  %3212 = vpow2.f32 %v2894_v44 }
0x1352   :  { %v3209_v39 = vpop.eup %3208 }
0x1353   :  { %v1821_v8 = vmul.f32 %v3209_v39, %v1819_v56  ;;  %vm1826_vm11 = vweird.f32 %v3209_v39  ;;  %v3211_v61 = vpop.eup %3210 }
0x1354   :  { %vm1827_vm5 = vmor %vm1825_vm14, %vm1826_vm11  ;;  %v3213_v0 = vpop.eup %3212 }
0x1355   :  { %v1822_v28 = vsub.f32 1.0, %v1821_v8  ;;  %v1839_v50 = vadd.f32 1.0, %v3213_v0 }
0x1357   :  { %v1823_v58 = vmul.f32 %v3209_v39, %v1822_v28  ;;  %3214 = vrcp.f32 %v1839_v50  ;;  %v1851_v7 = vand.u32 2147483648, %v1839_v50  ;;  %vm1845_vm8 = vweird.f32 %v1839_v50 }
0x1358   :  { %v1849_v9 = vand.u32 2147483647, %v1839_v50 }
0x1359   :  { %v1824_v59 = vadd.f32 %v3209_v39, %v1823_v58  ;;  %v1852_v11 = vor.u32 1.1754944e-38, %v1851_v7 }
0x135a   :  { %vm1850_vm11 = vcmp.eq.f32.partialorder %v1849_v9, 8.507059e+37 }
0x135b   :  { %v1828_v35 = vsel %vm1827_vm5, %v3209_v39, %v1824_v59 }
0x135c   :  { %v1833_v34 = vsel %vm1830_vm6, %v1832_v60, %v1828_v35 }
0x135d   :  { %v1859_v63 = vmul.f32 %v3211_v61, %v1833_v34  ;;  %v1858_v43 = vmul.f32 %v1856_v29, %v1833_v34  ;;  %v3215_v1 = vpop.eup %3214 }
0x135e   :  { %v1841_v62 = vmul.f32 %v3215_v1, %v1839_v50  ;;  %vm1846_vm7 = vweird.f32 %v3215_v1 }
0x135f   :  { %1861 = vrot.lane.b32.xlu1 %v1859_v63, %s3420_s6  ;;  %vm1847_vm10 = vmor %vm1845_vm8, %vm1846_vm7 }
0x1360   :  { %v1842_v52 = vsub.f32 1.0, %v1841_v62 }
0x1362   :  { %v1843_v2 = vmul.f32 %v3215_v1, %v1842_v52 }
0x1364   :  { %v1844_v5 = vadd.f32 %v3215_v1, %v1843_v2 }
0x1366   :  { %v1848_v10 = vsel %vm1847_vm10, %v3215_v1, %v1844_v5  ;;  %v1973_v5 = vld [vmem:[#allocation2 + $0x18] sm:$0x30] }
0x1367   :  { %v1853_v13 = vsel %vm1850_vm11, %v1852_v11, %v1848_v10 }
0x13d1   :  { %v1862_v3 = vpop.permute.xlu1 %1861 }
0x13d2   :  { %v1864_v4 = vadd.f32 %v1862_v3, %v1858_v43 }
0x13d4   :  { %3216 = vtanh.f32 %v1864_v4  ;;  %v1956_v55 = vrot.slane %v1864_v4, 6 }
0x13da   :  { %v3217_v12 = vpop.eup %3216 }
0x13db   :  { %v3983_v14 = vmul.f32 %v3217_v12, %v1853_v13 }
0x13dd   :  { %v1875_v15 = vpack.c.bf16 %v3983_v14, %v3983_v14 }
0x13df   :  { %1877 = vrot.lane.b32.xlu2 %v1875_v15, %s3420_s6 }
0x1439   :  { %v1878_v17 = vpop.permute.xlu2 %1877 }
0x143a   :  { %2895 = vmatmul.msk.bf16.vlgmr.msra.gmra.mxu2 %vm339_vm9, %v1878_v17  ;;  %2896 = vmatmul.msk.bf16.vlgmr.msra.gmra.mxu3 %vm339_vm9, %v1878_v17  ;;  %v1974_v17 = vld [vmem:[#allocation2 + $0x8] sm:$0x30] }
0x14bd   :  { %v1891_v18 = vpop.f32.mrf.mxu2  ;;  %v1904_v19 = vpop.f32.mrf.mxu3 }
0x14be   :  { %v1910_v20 = vrot.slane %v1891_v18, 6  ;;  %v1911_v32 = vrot.slane %v1904_v19, 6 }
0x14c0   :  { %v1914_v23 = vadd.f32 %v1910_v20, %v1873_v21  ;;  %v1915_v42 = vadd.f32 %v1911_v32, %v1874_v36 }
0x14c2   :  { %v2897_v24 = vmul.f32 -1.442695, %v1914_v23  ;;  %v2898_v53 = vmul.f32 -1.442695, %v1915_v42 }
0x14c4   :  { %3218 = vpow2.f32 %v2897_v24 }
0x14c5   :  { %v1893_v46 = vpop.f32.mrf.mxu2  ;;  %v1906_v27 = vpop.f32.mrf.mxu3 }
0x14ca   :  { %v3219_v37 = vpop.eup %3218 }
0x14cb   :  { %v1919_v30 = vadd.f32 1.0, %v3219_v37 }
0x14cd   :  { %3220 = vrcp.f32 %v1919_v30  ;;  %v1931_v48 = vand.u32 2147483648, %v1919_v30  ;;  %v1929_v49 = vand.u32 2147483647, %v1919_v30  ;;  %vm1925_vm5 = vweird.f32 %v1919_v30 }
0x14ce   :  { %3222 = vtanh.f32 %v1915_v42 }
0x14cf   :  { %v1932_v54 = vor.u32 1.1754944e-38, %v1931_v48  ;;  %vm1930_vm7 = vcmp.eq.f32.partialorder %v1929_v49, 8.507059e+37  ;;  %3224 = vpow2.f32 %v2898_v53 }
0x14d3   :  { %v3221_v40 = vpop.eup %3220 }
0x14d4   :  { %v1921_v45 = vmul.f32 %v3221_v40, %v1919_v30  ;;  %vm1926_vm14 = vweird.f32 %v3221_v40  ;;  %v3223_v22 = vpop.eup %3222 }
0x14d5   :  { %vm1927_vm6 = vmor %vm1925_vm5, %vm1926_vm14  ;;  %v3225_v8 = vpop.eup %3224 }
0x14d6   :  { %v1922_v47 = vsub.f32 1.0, %v1921_v45  ;;  %v1939_v28 = vadd.f32 1.0, %v3225_v8 }
0x14d8   :  { %v1923_v26 = vmul.f32 %v3221_v40, %v1922_v47  ;;  %3226 = vrcp.f32 %v1939_v28  ;;  %v1951_v61 = vand.u32 2147483648, %v1939_v28  ;;  %vm1945_vm10 = vweird.f32 %v1939_v28 }
0x14d9   :  { %v1949_v34 = vand.u32 2147483647, %v1939_v28 }
0x14da   :  { %v1924_v51 = vadd.f32 %v3221_v40, %v1923_v26  ;;  %v1952_v43 = vor.u32 1.1754944e-38, %v1951_v61 }
0x14db   :  { %vm1950_vm14 = vcmp.eq.f32.partialorder %v1949_v34, 8.507059e+37 }
0x14dc   :  { %v1928_v16 = vsel %vm1927_vm6, %v3221_v40, %v1924_v51 }
0x14dd   :  { %v1933_v56 = vsel %vm1930_vm7, %v1932_v54, %v1928_v16 }
0x14de   :  { %v1959_v25 = vmul.f32 %v3223_v22, %v1933_v56  ;;  %v1958_v39 = vmul.f32 %v1956_v55, %v1933_v56  ;;  %v3227_v31 = vpop.eup %3226 }
0x14df   :  { %v1941_v58 = vmul.f32 %v3227_v31, %v1939_v28  ;;  %vm1946_vm8 = vweird.f32 %v3227_v31 }
0x14e0   :  { %1961 = vrot.lane.b32.xlu0 %v1959_v25, %s3420_s6  ;;  %vm1947_vm11 = vmor %vm1945_vm10, %vm1946_vm8 }
0x14e1   :  { %v1942_v33 = vsub.f32 1.0, %v1941_v58 }
0x14e3   :  { %v1943_v59 = vmul.f32 %v3227_v31, %v1942_v33 }
0x14e5   :  { %v1944_v35 = vadd.f32 %v3227_v31, %v1943_v59 }
0x14e7   :  { %v1948_v63 = vsel %vm1947_vm11, %v3227_v31, %v1944_v35 }
0x14e8   :  { %v1953_v0 = vsel %vm1950_vm14, %v1952_v43, %v1948_v63  ;;  %v2074_v63 = vld [vmem:[#allocation2 + $0x18] sm:$0xc0] }
0x1552   :  { %v1962_v60 = vpop.permute.xlu0 %1961 }
0x1553   :  { %v1964_v29 = vadd.f32 %v1962_v60, %v1958_v39 }
0x1555   :  { %3228 = vtanh.f32 %v1964_v29  ;;  %v2057_v30 = vrot.slane %v1964_v29, 6 }
0x155b   :  { %v3229_v44 = vpop.eup %3228 }
0x155c   :  { %v3991_v50 = vmul.f32 %v3229_v44, %v1953_v0 }
0x155e   :  { %v1975_v1 = vpack.c.bf16 %v3991_v50, %v3991_v50 }
0x1560   :  { %v1977_v62 = vrot.slane %v1975_v1, 1 }
0x1562   :  { %1978 = vrot.lane.b32.xlu1 %v1977_v62, %s3420_s6 }
0x15d4   :  { %v1979_v52 = vpop.permute.xlu1 %1978 }
0x15d5   :  { %2899 = vmatmul.msk.bf16.vlgmr.msrb.gmra.mxu0 %vm339_vm9, %v1979_v52  ;;  %2900 = vmatmul.msk.bf16.vlgmr.msrb.gmra.mxu1 %vm339_vm9, %v1979_v52 }
0x1652   :  { %v1992_v2 = vpop.f32.mrf.mxu0  ;;  %v2005_v3 = vpop.f32.mrf.mxu1 }
0x1653   :  { %v2011_v4 = vrot.slane %v1992_v2, 4  ;;  %v2012_v15 = vrot.slane %v2005_v3, 4  ;;  %v2075_v3 = vld [vmem:[#allocation2 + $0x8] sm:$0xc0] }
0x1655   :  { %v2015_v7 = vadd.f32 %v2011_v4, %v1973_v5  ;;  %v2016_v19 = vadd.f32 %v2012_v15, %v1974_v17 }
0x1657   :  { %v2901_v9 = vmul.f32 -1.442695, %v2015_v7  ;;  %v2902_v47 = vmul.f32 -1.442695, %v2016_v19 }
0x1659   :  { %3230 = vpow2.f32 %v2901_v9 }
0x165a   :  { %v1994_v10 = vpop.f32.mrf.mxu0  ;;  %v2007_v11 = vpop.f32.mrf.mxu1 }
0x165f   :  { %v3231_v12 = vpop.eup %3230 }
0x1660   :  { %v2020_v13 = vadd.f32 1.0, %v3231_v12 }
0x1662   :  { %3232 = vrcp.f32 %v2020_v13  ;;  %v2032_v23 = vand.u32 2147483648, %v2020_v13  ;;  %v2030_v46 = vand.u32 2147483647, %v2020_v13  ;;  %vm2026_vm6 = vweird.f32 %v2020_v13 }
0x1663   :  { %3234 = vtanh.f32 %v2016_v19 }
0x1664   :  { %v2033_v37 = vor.u32 1.1754944e-38, %v2032_v23  ;;  %vm2031_vm8 = vcmp.eq.f32.partialorder %v2030_v46, 8.507059e+37  ;;  %3236 = vpow2.f32 %v2902_v47 }
0x1668   :  { %v3233_v18 = vpop.eup %3232 }
0x1669   :  { %v2022_v20 = vmul.f32 %v3233_v18, %v2020_v13  ;;  %vm2027_vm5 = vweird.f32 %v3233_v18  ;;  %v3235_v36 = vpop.eup %3234 }
0x166a   :  { %vm2028_vm7 = vmor %vm2026_vm6, %vm2027_vm5  ;;  %v3237_v48 = vpop.eup %3236 }
0x166b   :  { %v2023_v21 = vsub.f32 1.0, %v2022_v20  ;;  %v2040_v26 = vadd.f32 1.0, %v3237_v48 }
0x166d   :  { %v2024_v24 = vmul.f32 %v3233_v18, %v2023_v21  ;;  %3238 = vrcp.f32 %v2040_v26  ;;  %vm2046_vm11 = vweird.f32 %v2040_v26  ;;  %v2050_v25 = vand.u32 2147483647, %v2040_v26 }
0x166f   :  { %v2025_v27 = vadd.f32 %v3233_v18, %v2024_v24  ;;  %vm2051_vm5 = vcmp.eq.f32.partialorder %v2050_v25, 8.507059e+37  ;;  %v3030_v25 = vld [vmem:[#allocation10 + $0x8] sm:$0xff] }
0x1671   :  { %v2029_v32 = vsel %vm2028_vm7, %v3233_v18, %v2025_v27 }
0x1672   :  { %v2034_v40 = vsel %vm2031_vm8, %v2033_v37, %v2029_v32  ;;  %v3032_v37 = vld [vmem:[#allocation10 + $0x18] sm:$0xff] }
0x1673   :  { %v2060_v42 = vmul.f32 %v3235_v36, %v2034_v40  ;;  %v2059_v45 = vmul.f32 %v2057_v30, %v2034_v40  ;;  %v3239_v49 = vpop.eup %3238  ;;  %v3028_v30 = vld [vmem:[#allocation9 + $0x18] sm:$0xff]  ;;  %2277 = vmatpush.bf16.msra.mxu1 %v3032_v37  ;;  %v3031_v36 = vld [vmem:[#allocation10 + $0x10] sm:$0xff] }
0x1674   :  { %v2042_v51 = vmul.f32 %v3239_v49, %v2040_v26  ;;  %vm2047_vm10 = vweird.f32 %v3239_v49  ;;  %2223 = vmatpush.bf16.msra.mxu0 %v3028_v30 }
0x1675   :  { %2062 = vrot.lane.b32.xlu2 %v2060_v42, %s3420_s6  ;;  %vm2048_vm14 = vmor %vm2046_vm11, %vm2047_vm10 }
0x1676   :  { %v2043_v54 = vsub.f32 1.0, %v2042_v51 }
0x1677   :  { %2278 = vmatpush.bf16.msra.mxu1 %v3031_v36 }
0x1678   :  { %v2044_v55 = vmul.f32 %v3239_v49, %v2043_v54 }
0x167a   :  { %v2045_v56 = vadd.f32 %v3239_v49, %v2044_v55 }
0x167b   :  { %2279 = vmatpush.bf16.msra.mxu1 %v3030_v25 }
0x167d   :  { %1471 = vrot.lane.b32.xlu2 %v3927_v6, %s3420_s6  ;;  %v2052_v6 = vand.u32 2147483648, %v2040_v26 }
0x167f   :  { %v2053_v39 = vor.u32 1.1754944e-38, %v2052_v6  ;;  %v3027_v6 = vld [vmem:[#allocation9 + $0x10] sm:$0xff] }
0x1680   :  { %2224 = vmatpush.bf16.msra.mxu0 %v3027_v6 }
0x1685   :  { %1773 = vrot.lane.b32.xlu2 %v3975_v41, %s3420_s6  ;;  %v2049_v41 = vsel %vm2048_vm14, %v3239_v49, %v2045_v56 }
0x1686   :  { %v2054_v28 = vsel %vm2051_vm5, %v2053_v39, %v2049_v41  ;;  %v3026_v41 = vld [vmem:[#allocation9 + $0x8] sm:$0xff]  ;;  %v3029_v39 = vld [vmem:[#allocation10] sm:$0xff] }
0x1687   :  { %2225 = vmatpush.bf16.msra.mxu0 %v3026_v41  ;;  %2280 = vmatpush.bf16.msra.mxu1 %v3029_v39 }
0x16cf   :  { %v2063_v16 = vpop.permute.xlu2 %2062 }
0x16d0   :  { %v4003_v22 = vadd.f32 %v2063_v16, %v2059_v45 }
0x16d2   :  { %3240 = vtanh.f32 %v4003_v22  ;;  %v2158_v17 = vrot.slane %v4003_v22, 6 }
0x16d7   :  { %v1472_v53 = vpop.permute.xlu2 %1471 }
0x16d8   :  { %v3241_v8 = vpop.eup %3240  ;;  %1474 = vst.msk [vmem:[#allocation3] sm:$0x3] %vm423_vm12, %v1472_v53 }
0x16d9   :  { %1475 = vst.msk [vmem:[#allocation3 + $0xe] sm:$0x3] %vm425_vm13, %v1472_v53  ;;  %v2067_v31 = vmul.f32 %v3241_v8, %v2054_v28  ;;  %v3025_v53 = vld [vmem:[#allocation9] sm:$0xff]  ;;  %v2309_v8 = vld [vmem:[%s4137_s11 + $0x38] sm:$0xff] }
0x16da   :  { %2226 = vmatpush.bf16.msra.mxu0 %v3025_v53  ;;  %2324 = vmatpush.msra.mxu2 %v2309_v8 }
0x16db   :  { %2069 = vrot.lane.b32.xlu2 %v2067_v31, %s3420_s6  ;;  %v2076_v58 = vpack.c.bf16 %v2067_v31, %v2067_v31 }
0x16dd   :  { %v2078_v33 = vrot.slane %v2076_v58, 2 }
0x16df   :  { %v1774_v59 = vpop.permute.xlu2 %1773  ;;  %2079 = vrot.lane.b32.xlu0 %v2078_v33, %s3420_s6 }
0x16e0   :  { %1776 = vst.msk [vmem:[#allocation3] sm:$0xc0] %vm731_vm15, %v1774_v59 }
0x16e1   :  { %1777 = vst.msk [vmem:[#allocation3 + $0x2] sm:$0xc0] %vm733_vm0, %v1774_v59 }
0x16e7   :  { %1571 = vrot.lane.b32.xlu0 %v3943_v38, %s3420_s6 }
0x16ef   :  { %1868 = vrot.lane.b32.xlu0 %v3983_v14, %s3420_s6 }
0x1735   :  { %v2070_v35 = vpop.permute.xlu2 %2069 }
0x1751   :  { %v2080_v60 = vpop.permute.xlu0 %2079 }
0x1752   :  { %2903 = vmatmul.msk.bf16.vlgmr.msrb.gmra.mxu2 %vm339_vm9, %v2080_v60  ;;  %2904 = vmatmul.msk.bf16.vlgmr.msrb.gmra.mxu3 %vm339_vm9, %v2080_v60 }
0x1759   :  { %v1572_v29 = vpop.permute.xlu0 %1571 }
0x175a   :  { %1574 = vst.msk [vmem:[#allocation3] sm:$0xc] %vm525_vm1, %v1572_v29 }
0x175b   :  { %1575 = vst.msk [vmem:[#allocation3 + $0xa] sm:$0xc] %vm527_vm2, %v1572_v29  ;;  %v2308_v29 = vld [vmem:[%s4137_s11 + $0x30] sm:$0xff] }
0x175c   :  { %2072 = vst.msk [vmem:[#allocation3 + $0x8] sm:$0x30] %vm628_vm3, %v2070_v35  ;;  %2325 = vmatpush.msra.mxu2 %v2308_v29 }
0x175d   :  { %2073 = vst.msk [vmem:[#allocation3 - $0x2] sm:$0x30] %vm630_vm4, %v2070_v35  ;;  %v2307_v35 = vld [vmem:[%s4137_s11 + $0x28] sm:$0xff] }
0x175e   :  { %2326 = vmatpush.msra.mxu2 %v2307_v35 }
0x1761   :  { %v1869_v61 = vpop.permute.xlu0 %1868 }
0x1762   :  { %1871 = vst.msk [vmem:[#allocation3 + $0x8] sm:$0x3] %vm423_vm12, %v1869_v61 }
0x1763   :  { %1872 = vst.msk [vmem:[#allocation3 + $0x6] sm:$0x3] %vm425_vm13, %v1869_v61  ;;  %v2306_v61 = vld [vmem:[%s4137_s11 + $0x20] sm:$0xff] }
0x1764   :  { %2327 = vmatpush.msra.mxu2 %v2306_v61 }
0x17d5   :  { %v2093_v38 = vpop.f32.mrf.mxu2  ;;  %v2106_v14 = vpop.f32.mrf.mxu3 }
0x17d6   :  { %v2112_v34 = vrot.slane %v2093_v38, 2  ;;  %v2113_v2 = vrot.slane %v2106_v14, 2  ;;  %v2305_v38 = vld [vmem:[%s4137_s11 + $0x18] sm:$0xff]  ;;  %v2304_v14 = vld [vmem:[%s4137_s11 + $0x10] sm:$0xff] }
0x17d7   :  { %2328 = vmatpush.msra.mxu2 %v2305_v38 }
0x17d8   :  { %v2116_v43 = vadd.f32 %v2112_v34, %v2074_v63  ;;  %v2117_v5 = vadd.f32 %v2113_v2, %v2075_v3  ;;  %v2303_v34 = vld [vmem:[%s4137_s11 + $0x8] sm:$0xff]  ;;  %v2302_v63 = vld [vmem:[%s4137_s11] sm:$0xff] }
0x17d9   :  { %2329 = vmatpush.msra.mxu2 %v2304_v14 }
0x17da   :  { %v2905_v44 = vmul.f32 -1.442695, %v2116_v43  ;;  %v2906_v24 = vmul.f32 -1.442695, %v2117_v5  ;;  %v3055_v43 = vld [vmem:[%s4136_s10] ss:$0 sm:$0xff] }
0x17db   :  { %2330 = vmatpush.msra.mxu2 %v2303_v34 }
0x17dc   :  { %3242 = vpow2.f32 %v2905_v44  ;;  %v3056_v44 = vld [vmem:[%s4135_s9] ss:$0 sm:$0xff]  ;;  %s2683_s9 = sshll.u32 %s4164_s7, 4  ;;  %s2684_s9 = int_to_ptr.hbm [resolvable:$true] %s2683_s9 }
0x17dd   :  { %v2095_v0 = vpop.f32.mrf.mxu2  ;;  %v2108_v1 = vpop.f32.mrf.mxu3  ;;  %2331 = vmatpush.msra.mxu2 %v2302_v63 }
0x17e2   :  { %v3243_v62 = vpop.eup %3242 }
0x17e3   :  { %v2121_v52 = vadd.f32 1.0, %v3243_v62 }
0x17e5   :  { %3244 = vrcp.f32 %v2121_v52  ;;  %v2133_v10 = vand.u32 2147483648, %v2121_v52  ;;  %v2131_v12 = vand.u32 2147483647, %v2121_v52  ;;  %vm2127_vm13 = vweird.f32 %v2121_v52 }
0x17e6   :  { %3246 = vtanh.f32 %v2117_v5 }
0x17e7   :  { %v2134_v15 = vor.u32 1.1754944e-38, %v2133_v10  ;;  %vm2132_vm7 = vcmp.eq.f32.partialorder %v2131_v12, 8.507059e+37  ;;  %3248 = vpow2.f32 %v2906_v24 }
0x17eb   :  { %v3245_v4 = vpop.eup %3244 }
0x17ec   :  { %v2123_v7 = vmul.f32 %v3245_v4, %v2121_v52  ;;  %vm2128_vm12 = vweird.f32 %v3245_v4  ;;  %v3247_v19 = vpop.eup %3246 }
0x17ed   :  { %vm2129_vm6 = vmor %vm2127_vm13, %vm2128_vm12  ;;  %v3249_v46 = vpop.eup %3248  ;;  %vm2425_vm12 = vcmask 31744   ;;  %vm2542_vm13 = vcmask 517120  }
0x17ee   :  { %v2124_v9 = vsub.f32 1.0, %v2123_v7  ;;  %v2141_v27 = vadd.f32 1.0, %v3249_v46 }
0x17f0   :  { %v2125_v11 = vmul.f32 %v3245_v4, %v2124_v9  ;;  %3250 = vrcp.f32 %v2141_v27  ;;  %vm2147_vm10 = vweird.f32 %v2141_v27  ;;  %v2151_v26 = vand.u32 2147483647, %v2141_v27 }
0x17f2   :  { %v2126_v13 = vadd.f32 %v3245_v4, %v2125_v11  ;;  %vm2152_vm14 = vcmp.eq.f32.partialorder %v2151_v26, 8.507059e+37 }
0x17f4   :  { %v2130_v18 = vsel %vm2129_vm6, %v3245_v4, %v2126_v13 }
0x17f5   :  { %v2135_v20 = vsel %vm2132_vm7, %v2134_v15, %v2130_v18  ;;  %v2424_v18 = vld [vmem:[%s4138_s12] sm:$0xf] }
0x17f6   :  { %v2161_v21 = vmul.f32 %v3247_v19, %v2135_v20  ;;  %v2160_v23 = vmul.f32 %v2158_v17, %v2135_v20  ;;  %v3251_v32 = vpop.eup %3250 }
0x17f7   :  { %v2143_v40 = vmul.f32 %v3251_v32, %v2141_v27  ;;  %vm2148_vm8 = vweird.f32 %v3251_v32 }
0x17f8   :  { %2163 = vrot.lane.b32.xlu1 %v2161_v21, %s3420_s6  ;;  %vm2149_vm11 = vmor %vm2147_vm10, %vm2148_vm8 }
0x17f9   :  { %v2144_v42 = vsub.f32 1.0, %v2143_v40 }
0x17fb   :  { %v2145_v45 = vmul.f32 %v3251_v32, %v2144_v42 }
0x17fd   :  { %v2146_v48 = vadd.f32 %v3251_v32, %v2145_v45 }
0x17ff   :  { %v2150_v49 = vsel %vm2149_vm11, %v3251_v32, %v2146_v48  ;;  %vm2657_vm11 = vcmask 261120  }
0x1800   :  { %1672 = vrot.lane.b32.xlu1 %v3959_v57, %s3420_s6 }
0x1808   :  { %1968 = vrot.lane.b32.xlu1 %v3991_v50, %s3420_s6  ;;  %v2153_v50 = vand.u32 2147483648, %v2141_v27 }
0x180a   :  { %v2154_v51 = vor.u32 1.1754944e-38, %v2153_v50 }
0x180c   :  { %v2155_v16 = vsel %vm2152_vm14, %v2154_v51, %v2150_v49 }
0x186a   :  { %v2164_v47 = vpop.permute.xlu1 %2163 }
0x186b   :  { %v2166_v57 = vadd.f32 %v2164_v47, %v2160_v23 }
0x186d   :  { %3252 = vtanh.f32 %v2166_v57 }
0x1872   :  { %v1673_v54 = vpop.permute.xlu1 %1672 }
0x1873   :  { %v3253_v55 = vpop.eup %3252  ;;  %1675 = vst.msk [vmem:[#allocation3] sm:$0x30] %vm628_vm3, %v1673_v54 }
0x1874   :  { %1676 = vst.msk [vmem:[#allocation3 + $0x6] sm:$0x30] %vm630_vm4, %v1673_v54  ;;  %v2168_v22 = vmul.f32 %v3253_v55, %v2155_v16 }
0x1876   :  { %2170 = vrot.lane.b32.xlu0 %v2168_v22, %s3420_s6 }
0x187a   :  { %v1969_v56 = vpop.permute.xlu1 %1968 }
0x187b   :  { %1971 = vst.msk [vmem:[#allocation3 + $0x8] sm:$0xc] %vm525_vm1, %v1969_v56  ;;  %vm2298_vm1 = vcmask 1045504  }
0x187c   :  { %1972 = vst.msk [vmem:[#allocation3 + $0x2] sm:$0xc] %vm527_vm2, %v1969_v56 }
0x18e8   :  { %v2171_v28 = vpop.permute.xlu0 %2170 }
0x18e9   :  { %2173 = vst.msk [vmem:[#allocation3 + $0x8] sm:$0xc0] %vm731_vm15, %v2171_v28  ;;  %vm2294_vm15 = vcmask 1041408  }
0x18ea   :  { %2174 = vst.msk [vmem:[#allocation3 - $0x6] sm:$0xc0] %vm733_vm0, %v2171_v28  ;;  %vm2296_vm0 = vcmask 1043456  }
0x18eb   :  { %2943 = vmatpush.msk.msra.mxu3 %vm2296_vm0, %v2424_v18 }
0x18f0   :  { %v2176_v31 = vld [vmem:[#allocation3 + $0x8] sm:$0xff] }
0x18f1   :  { %v2175_v58 = vld [vmem:[#allocation3] sm:$0xff]  ;;  %v2177_v33 = vpack.c.bf16 %v2176_v31, %v2176_v31 }
0x18f2   :  { %v2233_v59 = vpack.c.bf16 %v2176_v31, %v2175_v58 }
0x18f3   :  { %v2191_v60 = vrot.slane %v2177_v33, 3 }
0x18f4   :  { %2940 = vmatmul.msk.bf16.vlgmr.msra.gmra.mxu1 %vm339_vm9, %v2233_v59 }
0x18f5   :  { %2923 = vmatmul.msk.bf16.vlgmr.msra.gmra.mxu0 %vm339_vm9, %v2191_v60 }
0x1971   :  { %v2282_v0 = vpop.f32.mrf.mxu1 }
0x1972   :  { %v2283_v1 = vadd.f32 %v3055_v43, %v2282_v0  ;;  %v2228_v62 = vpop.f32.mrf.mxu0 }
0x1973   :  { %v2229_v52 = vadd.f32 %v3056_v44, %v2228_v62 }
0x1974   :  { %2460 = vrot.lane.b32.xlu1 %v2283_v1, %s3420_s6 }
0x1975   :  { %v2232_v2 = vmul.f32 0.25, %v2229_v52 }
0x1977   :  { %v2288_v3 = vrot.slane %v2232_v2, 6  ;;  %v2290_v4 = vrot.slane %v2232_v2, 4  ;;  %v2292_v7 = vrot.slane %v2232_v2, 2 }
0x1979   :  { %v2284_v5 = vpop.f32.mrf.mxu1  ;;  %v2295_v9 = vsel %vm2294_vm15, %v2232_v2, %v2288_v3 }
0x197a   :  { %v2285_v10 = vadd.f32 %v3055_v43, %v2284_v5  ;;  %v2297_v11 = vsel %vm2296_vm0, %v2295_v9, %v2290_v4  ;;  %v2230_v12 = vpop.f32.mrf.mxu0 }
0x197b   :  { %v2299_v13 = vsel %vm2298_vm1, %v2297_v11, %v2292_v7  ;;  %v3036_v11 = vld [vmem:[#allocation12 + $0x18] sm:$0xff]  ;;  %v3035_v12 = vld [vmem:[#allocation12 + $0x10] sm:$0xff] }
0x197c   :  { %v2300_v15 = vmul.f32 %v2299_v13, %v2283_v1  ;;  %2462 = vrot.lane.b32.xlu2 %v2285_v10, %s3420_s6  ;;  %v2301_v17 = vmul.f32 %v2299_v13, %v2285_v10  ;;  %2533 = vmatpush.bf16.msrb.mxu0 %v3036_v11  ;;  %v3034_v13 = vld [vmem:[#allocation12 + $0x8] sm:$0xff] }
0x197e   :  { %2941 = vmatmul.msk.f32.vlgmr.msra.gmra.mxu2 %vm339_vm9, %v2300_v15  ;;  %v3033_v15 = vld [vmem:[#allocation12] sm:$0xff] }
0x1980   :  { %2534 = vmatpush.bf16.msrb.mxu0 %v3035_v12 }
0x1984   :  { %2535 = vmatpush.bf16.msrb.mxu0 %v3034_v13 }
0x1986   :  { %2942 = vmatmul.msk.f32.gmra.mxu2 %vm339_vm9, %v2301_v17 }
0x1988   :  { %2536 = vmatpush.bf16.msrb.mxu0 %v3033_v15 }
0x19e6   :  { %v2461_v17 = vpop.permute.xlu1 %2460 }
0x1a01   :  { %v2333_v19 = vpop.f32.mrf.mxu2 }
0x1a02   :  { %v2340_v20 = vrot.slane %v2333_v19, 2  ;;  %v2343_v23 = vrot.slane %v2333_v19, 4  ;;  %v2346_v46 = vrot.slane %v2333_v19, 6 }
0x1a04   :  { %v2342_v21 = vmax.f32 %v2333_v19, %v2340_v20 }
0x1a06   :  { %v2345_v24 = vmax.f32 %v2342_v21, %v2343_v23 }
0x1a08   :  { %v2348_v27 = vmax.f32 %v2345_v24, %v2346_v46 }
0x1a09   :  { %v2336_v37 = vpop.f32.mrf.mxu2 }
0x1a0a   :  { %v2349_v30 = vmax.f32 %v2348_v27, %v2336_v37  ;;  %v2351_v32 = vrot.slane %v2336_v37, 2  ;;  %v2354_v40 = vrot.slane %v2336_v37, 4  ;;  %v2357_v45 = vrot.slane %v2336_v37, 6  ;;  %v2463_v27 = vpop.permute.xlu2 %2462 }
0x1a0c   :  { %v2353_v36 = vmax.f32 %v2349_v30, %v2351_v32 }
0x1a0e   :  { %v2356_v42 = vmax.f32 %v2353_v36, %v2354_v40 }
0x1a10   :  { %v2359_v47 = vmax.f32 %v2356_v42, %v2357_v45 }
0x1a12   :  { %v2361_v57 = vrot.slane %v2359_v47, 6  ;;  %v2363_v48 = vrot.slane %v2359_v47, 4  ;;  %v2365_v50 = vrot.slane %v2359_v47, 2 }
0x1a14   :  { %v2367_v26 = vsel %vm2294_vm15, %v2359_v47, %v2361_v57 }
0x1a15   :  { %v2368_v49 = vsel %vm2296_vm0, %v2367_v26, %v2363_v48  ;;  %v3057_v26 = vld [vmem:[%s4140_s14] ss:$0 sm:$0xff] }
0x1a16   :  { %v2369_v51 = vsel %vm2298_vm1, %v2368_v49, %v2365_v50 }
0x1a17   :  { %v2370_v54 = vsub.f32 %v2333_v19, %v2369_v51  ;;  %v2371_v55 = vsub.f32 %v2336_v37, %v2369_v51 }
0x1a19   :  { %v2372_v16 = vmul.f32 1.442695, %v2370_v54  ;;  %v2374_v22 = vmul.f32 1.442695, %v2371_v55 }
0x1a1b   :  { %3254 = vpow2.f32 %v2372_v16  ;;  %v3426_v16 = vmov 64.0  }
0x1a1c   :  { %3256 = vpow2.f32 %v2374_v22 }
0x1a21   :  { %v3255_v56 = vpop.eup %3254 }
0x1a22   :  { %v2377_v6 = vrot.slane %v3255_v56, 2  ;;  %v2380_v41 = vrot.slane %v3255_v56, 4  ;;  %v2383_v53 = vrot.slane %v3255_v56, 6  ;;  %v3257_v8 = vpop.eup %3256 }
0x1a23   :  { %v2388_v58 = vrot.slane %v3257_v8, 2  ;;  %v2391_v59 = vrot.slane %v3257_v8, 4  ;;  %v2394_v29 = vrot.slane %v3257_v8, 6 }
0x1a24   :  { %v2379_v25 = vadd.f32 %v3255_v56, %v2377_v6 }
0x1a26   :  { %v2382_v39 = vadd.f32 %v2380_v41, %v2379_v25 }
0x1a28   :  { %v2385_v28 = vadd.f32 %v2383_v53, %v2382_v39 }
0x1a2a   :  { %v2386_v31 = vadd.f32 %v3257_v8, %v2385_v28 }
0x1a2c   :  { %v2390_v33 = vadd.f32 %v2388_v58, %v2386_v31 }
0x1a2e   :  { %v2393_v60 = vadd.f32 %v2391_v59, %v2390_v33  ;;  %v3040_v33 = vld [vmem:[%s4143_s17 + $0x18] sm:$0xff]  ;;  %v3039_v59 = vld [vmem:[%s4143_s17 + $0x10] sm:$0xff] }
0x1a2f   :  { %2626 = vmatpush.bf16.msrb.mxu1 %v3040_v33 }
0x1a30   :  { %v2396_v35 = vadd.f32 %v2394_v29, %v2393_v60  ;;  %v3038_v60 = vld [vmem:[%s4143_s17 + $0x8] sm:$0xff]  ;;  %v3037_v29 = vld [vmem:[%s4143_s17] sm:$0xff] }
0x1a32   :  { %3258 = vrcp.f32 %v2396_v35  ;;  %v2408_v34 = vand.u32 2147483648, %v2396_v35  ;;  %v2406_v43 = vand.u32 2147483647, %v2396_v35  ;;  %vm2402_vm3 = vweird.f32 %v2396_v35 }
0x1a33   :  { %3260 = vrcp.f32 %v3426_v16  ;;  %2627 = vmatpush.bf16.msrb.mxu1 %v3039_v59 }
0x1a34   :  { %v2409_v0 = vor.u32 1.1754944e-38, %v2408_v34  ;;  %vm2407_vm5 = vcmp.eq.f32.partialorder %v2406_v43, 8.507059e+37 }
0x1a37   :  { %2628 = vmatpush.bf16.msrb.mxu1 %v3038_v60 }
0x1a38   :  { %v3259_v61 = vpop.eup %3258 }
0x1a39   :  { %v2398_v38 = vmul.f32 %v3259_v61, %v2396_v35  ;;  %vm2403_vm2 = vweird.f32 %v3259_v61  ;;  %v3261_v22 = vpop.eup %3260  ;;  %v3042_v35 = vld [vmem:[%s4145_s19 + $0x8] sm:$0xff] }
0x1a3a   :  { %vm2404_vm4 = vmor %vm2402_vm3, %vm2403_vm2  ;;  %vm2551_vm6 = vweird.f32 %v3261_v22  ;;  %2667 = vmatpush.bf16.msrb.mxu2 %v3042_v35 }
0x1a3b   :  { %v2399_v14 = vsub.f32 1.0, %v2398_v38  ;;  %2629 = vmatpush.bf16.msrb.mxu1 %v3037_v29 }
0x1a3d   :  { %v2400_v63 = vmul.f32 %v3259_v61, %v2399_v14  ;;  %v3041_v14 = vld [vmem:[%s4145_s19] sm:$0xff] }
0x1a3e   :  { %2668 = vmatpush.bf16.msrb.mxu2 %v3041_v14 }
0x1a3f   :  { %v2401_v44 = vadd.f32 %v3259_v61, %v2400_v63 }
0x1a41   :  { %v2405_v1 = vsel %vm2404_vm4, %v3259_v61, %v2401_v44 }
0x1a42   :  { %v2410_v62 = vsel %vm2407_vm5, %v2409_v0, %v2405_v1 }
0x1a43   :  { %v2413_v52 = vrot.slane %v2410_v62, 6  ;;  %v2415_v2 = vrot.slane %v2410_v62, 4  ;;  %v2417_v3 = vrot.slane %v2410_v62, 2 }
0x1a45   :  { %v2419_v4 = vsel %vm2294_vm15, %v2410_v62, %v2413_v52  ;;  %v3058_v52 = vld [vmem:[%s4141_s15] ss:$0 sm:$0xff] }
0x1a46   :  { %v2420_v5 = vsel %vm2296_vm0, %v2419_v4, %v2415_v2  ;;  %v3059_v4 = vld [vmem:[%s4142_s16] ss:$0 sm:$0xff]  ;;  %s3427_s16 = smov [#allocation13]  }
0x1a47   :  { %v2421_v7 = vsel %vm2298_vm1, %v2420_v5, %v2417_v3  ;;  %s2681_s26 = sshll.u32 %s3427_s16, 4  ;;  %s2682_s26 = int_to_ptr.vmem [resolvable:$true] %s2681_s26 }
0x1a48   :  { %v2422_v9 = vmul.f32 %v3255_v56, %v2421_v7  ;;  %v2423_v10 = vmul.f32 %v3257_v8, %v2421_v7  ;;  %v2547_v56 = vmul.f32 64.0, %v3261_v22 }
0x1a4a   :  { %2944 = vmatmul.msk.f32.vlgmr.msra.gmra.mxu3 %vm2425_vm12, %v2422_v9  ;;  %v2548_v6 = vsub.f32 1.0, %v2547_v56 }
0x1a4c   :  { %v2549_v25 = vmul.f32 %v3261_v22, %v2548_v6 }
0x1a4e   :  { %v2550_v41 = vadd.f32 %v3261_v22, %v2549_v25 }
0x1a50   :  { %v2552_v39 = vsel %vm2551_vm6, %v3261_v22, %v2550_v41 }
0x1a52   :  { %2945 = vmatmul.msk.f32.gmra.mxu3 %vm2425_vm12, %v2423_v10  ;;  %v3060_v10 = vld [vmem:[%s4144_s18] ss:$0 sm:$0xff] }
0x1acd   :  { %v2452_v18 = vpop.f32.mrf.mxu3 }
0x1ace   :  { %v2466_v19 = vmul.f32 %v2461_v17, %v2452_v18  ;;  %v3061_v18 = vld [vmem:[%s4146_s20] ss:$0 sm:$0xff] }
0x1ad0   :  { %v2469_v20 = vrot.slane %v2466_v19, 2  ;;  %v2472_v23 = vrot.slane %v2466_v19, 4  ;;  %v2475_v46 = vrot.slane %v2466_v19, 6 }
0x1ad2   :  { %v2471_v21 = vadd.f32 %v2469_v20, %v2466_v19 }
0x1ad4   :  { %v2474_v24 = vadd.f32 %v2472_v23, %v2471_v21 }
0x1ad5   :  { %v2455_v37 = vpop.f32.mrf.mxu3 }
0x1ad6   :  { %v2467_v30 = vmul.f32 %v2463_v27, %v2455_v37  ;;  %v2477_v32 = vadd.f32 %v2475_v46, %v2474_v24 }
0x1ad8   :  { %v2478_v36 = vadd.f32 %v2477_v32, %v2467_v30  ;;  %v2480_v40 = vrot.slane %v2467_v30, 2  ;;  %v2483_v45 = vrot.slane %v2467_v30, 4  ;;  %v2486_v57 = vrot.slane %v2467_v30, 6 }
0x1ada   :  { %v2482_v42 = vadd.f32 %v2480_v40, %v2478_v36 }
0x1adc   :  { %v2485_v47 = vadd.f32 %v2483_v45, %v2482_v42 }
0x1ade   :  { %v2488_v48 = vadd.f32 %v2486_v57, %v2485_v47 }
0x1ae0   :  { %v2489_v50 = vpack.c.bf16 %v2488_v48, %v2488_v48 }
0x1ae2   :  { %2962 = vmatmul.msk.bf16.vlgmr.msrb.gmra.mxu0 %vm339_vm9, %v2489_v50 }
0x1b5f   :  { %v2538_v49 = vpop.f32.mrf.mxu0 }
0x1b60   :  { %v2539_v51 = vadd.f32 %v3057_v26, %v2538_v49 }
0x1b62   :  { %v2543_v54 = vsel %vm2542_vm13, %v2539_v51, 0.0 }
0x1b63   :  { %2544 = vadd.xlane.f32.xlu0 %v2543_v54 }
0x1b67   :  { %v2540_v55 = vpop.f32.mrf.mxu0 }
0x1bd6   :  { %v2545_v53 = vpop.xlane.xlu0 %2544 }
0x1bd7   :  { %v2553_v8 = vmul.f32 %v2552_v39, %v2545_v53 }
0x1bd9   :  { %v2554_v28 = vsub.f32 %v2539_v51, %v2553_v8 }
0x1bdb   :  { %v2555_v31 = vmul.f32 %v2554_v28, %v2554_v28 }
0x1bdd   :  { %v2556_v58 = vsel %vm2542_vm13, %v2555_v31, 0.0 }
0x1bde   :  { %2557 = vadd.xlane.f32.xlu1 %v2556_v58 }
0x1c51   :  { %v2558_v61 = vpop.xlane.xlu1 %2557 }
0x1c52   :  { %v2559_v38 = vmul.f32 %v2558_v61, %v2552_v39 }
0x1c54   :  { %v2560_v34 = vadd.f32 1e-05, %v2559_v38 }
0x1c56   :  { %3262 = vrsqrt.f32 %v2560_v34  ;;  %vm2567_vm8 = vweird.f32 %v2560_v34 }
0x1c5c   :  { %v3263_v63 = vpop.eup %3262 }
0x1c5d   :  { %v2562_v43 = vmul.f32 %v3263_v63, %v2560_v34  ;;  %vm2568_vm7 = vweird.f32 %v3263_v63 }
0x1c5e   :  { %vm2569_vm10 = vmor %vm2567_vm8, %vm2568_vm7 }
0x1c5f   :  { %v2563_v44 = vmul.f32 %v3263_v63, %v2562_v43 }
0x1c61   :  { %v2564_v0 = vmul.f32 0.5, %v2563_v44 }
0x1c63   :  { %v2565_v1 = vsub.f32 1.5, %v2564_v0 }
0x1c65   :  { %v2566_v62 = vmul.f32 %v3263_v63, %v2565_v1 }
0x1c67   :  { %v2570_v2 = vsel %vm2569_vm10, %v3263_v63, %v2566_v62 }
0x1c68   :  { %v2571_v3 = vmul.f32 %v2570_v2, %v2554_v28 }
0x1c6a   :  { %v2576_v5 = vmul.f32 %v3058_v52, %v2571_v3 }
0x1c6c   :  { %v2581_v7 = vadd.f32 %v3059_v4, %v2576_v5 }
0x1c6e   :  { %v2582_v9 = vpack.c.bf16 %v2581_v7, %v2581_v7 }
0x1c70   :  { %2979 = vmatmul.msk.bf16.vlgmr.msrb.gmra.mxu1 %vm339_vm9, %v2582_v9  ;;  %vm2674_vm9 = vcmask 58368  }
0x1ced   :  { %v2631_v11 = vpop.f32.mrf.mxu1 }
0x1cee   :  { %v2632_v12 = vadd.f32 %v3060_v10, %v2631_v11 }
0x1cf0   :  { %v2635_v13 = vmax.f32 %v2632_v12, 0.0 }
0x1cf2   :  { %v2636_v15 = vpack.c.bf16 %v2635_v13, %v2635_v13 }
0x1cf4   :  { %2988 = vmatmul.msk.bf16.vlgmr.msrb.gmra.mxu2 %vm2657_vm11, %v2636_v15 }
0x1cf5   :  { %v2633_v17 = vpop.f32.mrf.mxu1 }
0x1d77   :  { %v2670_v19 = vpop.f32.mrf.mxu2 }
0x1d78   :  { %v2671_v20 = vadd.f32 %v3061_v18, %v2670_v19 }
0x1d7a   :  { %2675 = vst.msk [vmem:[#allocation13] sm:$0x3] %vm2674_vm9, %v2671_v20 }
0x1d7b   :  { %2686 = dma.vmem_to_hbm [thread:$0]  %s2682_s26, 32, %s2684_s9, [#allocation6]  }
0x1d7f   :  { %v2672_v21 = vpop.f32.mrf.mxu2 }
0x1d80   :  { %3414 = dma.done.wait [#allocation6], 32  }
0x1d81   :  { %3415 = vsyncadd [#allocation6], 4294967264 }
0x1d82   :  { %2691 = vsyncpa [#allocation5], 1 }
0x1d83   :  { %2692 = vsyncpa [#allocation8], 1 }
0x1d84   :  { %2693 = vsyncpa [#allocation11], 1 }
0x1d85   :  { %2694 = vsyncpa [#allocation6], 1 }

</bundles_post_ra>
